<compile_context>
chip_gen: v6e
topology: v6e:2x2x1
jax: 0.10.0
libtpu: 0.0.40
codegen_flags: <defaults>
</compile_context>

<pallas_src>
import functools

import numpy as np
import jax
import jax.numpy as jnp
from jax.experimental import pallas as pl
from jax.experimental.pallas import tpu as pltpu


# ----------------------------------------------------------------------------
# VMEM sizing: large tiles on v5e/v6e (128 MiB physical VMEM), tighter on v7x
# (64 MiB).  Detection is best-effort and falls back to the conservative 64MiB.
# ----------------------------------------------------------------------------
def _detect_vmem_bytes():
    try:
        info = pltpu.get_tpu_info()
        for attr in ("vmem_capacity_bytes", "vmem_bytes", "vmem_capacity"):
            v = getattr(info, attr, None)
            if v:
                return int(v)
    except Exception:
        pass
    return 64 << 20


_VMEM_BYTES = _detect_vmem_bytes()
_TILE_BUDGET = int(min(max(_VMEM_BYTES // 2, 16 << 20), 64 << 20))
_VMEM_LIMIT = int(min(max(_VMEM_BYTES * 3 // 4, 32 << 20), 100 << 20))


# ----------------------------------------------------------------------------
# In-kernel helpers
# ----------------------------------------------------------------------------
def _layernorm_f32(x, g, b, eps=1e-5):
    # torch.nn.LayerNorm default (biased variance, eps=1e-5), math in f32.
    mean = jnp.mean(x, axis=-1, keepdims=True)
    var = jnp.mean(jnp.square(x - mean), axis=-1, keepdims=True)
    return (x - mean) * jax.lax.rsqrt(var + eps) * g + b


def _gelu_tanh(x):
    # tanh-form GELU (nn.GELU(approximate='tanh')): ~6 VALU ops + one EUP tanh.
    # nn.GELU() default is exact erf; max abs deviation of the tanh form ~3e-3.
    c = 0.7978845608028654  # sqrt(2/pi)
    return 0.5 * x * (1.0 + jnp.tanh(c * (x + 0.044715 * x * x * x)))


# ----------------------------------------------------------------------------
# Pallas kernels
# ----------------------------------------------------------------------------
def _ln_qkv_kernel(x_ref, g_ref, b_ref, wq_ref, wk_ref, wv_ref,
                   q_ref, k_ref, v_ref):
    # Fused LayerNorm -> three matmuls (to_qkv has bias=False; scale folded
    # into Wq at trace time).
    f32 = jnp.float32
    xn = _layernorm_f32(x_ref[...].astype(f32),
                        g_ref[...].astype(f32), b_ref[...].astype(f32))
    q_ref[...] = jnp.dot(xn, wq_ref[...].astype(f32),
                         preferred_element_type=f32).astype(q_ref.dtype)
    k_ref[...] = jnp.dot(xn, wk_ref[...].astype(f32),
                         preferred_element_type=f32).astype(k_ref.dtype)
    v_ref[...] = jnp.dot(xn, wv_ref[...].astype(f32),
                         preferred_element_type=f32).astype(v_ref.dtype)


def _window_attn_kernel(q_ref, k_ref, v_ref, bias_ref, o_ref, *, heads, head_dim):
    # q/k/v_ref: (wt, ws2, inner)   bias_ref: (wt|1, ws2, ws2)
    # o_ref:     (wt, ws2, inner)
    #
    # Heads and windows are collapsed onto one leading batch axis so all
    # (wt*heads) attention problems run through TWO batched dot_generals, and
    # the result is written with a single dense (wt, ws2, inner) store.
    f32 = jnp.float32
    wt, ws2, _ = q_ref.shape
    hb = heads * wt

    def split_heads(ref):
        x = ref[...].astype(f32)                       # (wt, ws2, inner)
        # Head columns -> leading batch axis (batch order: head major, window
        # minor).  The per-head column selection is done once here; all compute
        # below is batched (no per-head / per-window dot unrolling).
        return jnp.concatenate(
            [x[:, :, h * head_dim:(h + 1) * head_dim] for h in range(heads)],
            axis=0)                                    # (heads*wt, ws2, d)

    q = split_heads(q_ref)
    k = split_heads(k_ref)
    v = split_heads(v_ref)

    # scores: (hb, ws2, ws2); attention scale is already folded into Wq.
    s = jax.lax.dot_general(q, k, (((2,), (2,)), ((0,), (0,))),
                            preferred_element_type=f32)
    # bias (wt|1, ws2, ws2) broadcasts over the heads axis (and over windows
    # for the non-shifted single-window bias).
    s = s.reshape(heads, wt, ws2, ws2) + bias_ref[...].astype(f32)[None]

    m = jnp.max(s, axis=-1, keepdims=True)             # stable softmax (f32)
    e = jnp.exp(s - m)
    # approx reciprocal (EUP): softmax rows sum to 1 within ~1e-4 rel. error.
    p = e * pl.reciprocal(jnp.sum(e, axis=-1, keepdims=True), approx=True)
    p = p.reshape(hb, ws2, ws2)

    o = jax.lax.dot_general(p, v, (((2,), (1,)), ((0,), (0,))),
                            preferred_element_type=f32)        # (hb, ws2, d)
    o = o.reshape(heads, wt, ws2, head_dim)
    # Single lane-dense store of all heads / all windows of the tile at once.
    o_ref[...] = jnp.concatenate([o[h] for h in range(heads)],
                                 axis=-1).astype(o_ref.dtype)


def _out_ffn_kernel(a_ref, x_ref, wo_ref, bo_ref, g2_ref, bb2_ref,
                    w1_ref, b1_ref, w2_ref, b2_ref, o_ref):
    # Fused: x1 = attn @ Wo + bo + x ; y = x1 + W2(GELU(W1(LN(x1)) + b1)) + b2
    # x1 and the (tm, mlp) hidden stay in VMEM/registers.
    f32 = jnp.float32
    a = a_ref[...].astype(f32)                                   # (tm, inner)
    x1 = jnp.dot(a, wo_ref[...].astype(f32), preferred_element_type=f32)
    x1 = x1 + bo_ref[...].astype(f32) + x_ref[...].astype(f32)   # (tm, C)
    xn = _layernorm_f32(x1, g2_ref[...].astype(f32), bb2_ref[...].astype(f32))
    h = jnp.dot(xn, w1_ref[...].astype(f32), preferred_element_type=f32)
    h = _gelu_tanh(h + b1_ref[...].astype(f32))                  # (tm, mlp)
    y = jnp.dot(h, w2_ref[...].astype(f32), preferred_element_type=f32)
    y = y + b2_ref[...].astype(f32) + x1
    o_ref[...] = y.astype(o_ref.dtype)


# ----------------------------------------------------------------------------
# Tiling heuristics
# ----------------------------------------------------------------------------
def _round_up(x, m):
    return ((x + m - 1) // m) * m


def _pick_m_tile(M, row_bytes, weight_bytes=0, budget_bytes=None, min_steps=2):
    """Largest multiple-of-8 divisor of M whose double-buffered tile (after
    reserving double-buffered weights) fits the VMEM budget, preferring
    >= min_steps grid steps so both v7x TensorCores stay busy.  If no divisor
    fits, returns a non-divisor tile and the caller pads the row dimension."""
    if budget_bytes is None:
        budget_bytes = _TILE_BUDGET
    avail = max(1 << 20, budget_bytes - 2 * weight_bytes)
    cap = max(8, avail // (2 * max(row_bytes, 1)))
    cap = min(cap, _round_up(M, 8))
    divisors = [t for t in range(8, M + 1, 8) if M % t == 0 and t <= cap]
    if divisors:
        multi = [t for t in divisors if M // t >= min_steps]
        return multi[-1] if multi else divisors[-1]
    return max(8, (cap // 8) * 8)          # caller pads rows to this tile


def _pick_window_tile(nw, batch, per_window_bytes, budget_bytes=None):
    """Largest divisor of nw whose double-buffered block fits the budget while
    keeping >= 2 total grid steps (megacore / v7x)."""
    if budget_bytes is None:
        budget_bytes = _TILE_BUDGET // 2
    best = 1
    for wt in range(1, nw + 1):
        if nw % wt:
            continue
        if 2 * wt * per_window_bytes > budget_bytes:
            break
        if wt > 1 and batch * (nw // wt) < 2:
            continue
        best = wt
    return best


def _pad_rows(a, mult):
    pad = (-a.shape[0]) % mult
    if pad:
        a = jnp.pad(a, ((0, pad), (0, 0)))
    return a, pad


# ----------------------------------------------------------------------------
# Pallas wrappers
# ----------------------------------------------------------------------------
def ln_qkv(x, g, b, wq, wk, wv):
    """q,k,v = LayerNorm(x) @ (Wq, Wk, Wv); x: (M, C)."""
    M, C = x.shape
    inner = wq.shape[1]
    tm = _pick_m_tile(M, row_bytes=4 * (C + 3 * inner),
                      weight_bytes=4 * (3 * C * inner + 2 * C))
    xp, pad = _pad_rows(x, tm)
    Mp = xp.shape[0]
    cp = pltpu.CompilerParams(dimension_semantics=("parallel",),
                              vmem_limit_bytes=_VMEM_LIMIT)
    q, k, v = pl.pallas_call(
        _ln_qkv_kernel,
        out_shape=tuple(jax.ShapeDtypeStruct((Mp, inner), x.dtype) for _ in range(3)),
        grid=(Mp // tm,),
        in_specs=[
            pl.BlockSpec((tm, C), lambda i: (i, 0)),
            pl.BlockSpec((1, C), lambda i: (0, 0)),
            pl.BlockSpec((1, C), lambda i: (0, 0)),
            pl.BlockSpec((C, inner), lambda i: (0, 0)),
            pl.BlockSpec((C, inner), lambda i: (0, 0)),
            pl.BlockSpec((C, inner), lambda i: (0, 0)),
        ],
        out_specs=tuple(pl.BlockSpec((tm, inner), lambda i: (i, 0)) for _ in range(3)),
        compiler_params=cp,
    )(xp, g.reshape(1, C), b.reshape(1, C), wq, wk, wv)
    if pad:
        q, k, v = q[:M], k[:M], v[:M]
    return q, k, v


def window_attention(q, k, v, bias, heads, head_dim):
    """q/k/v: (B, nw, ws2, inner); bias: (nw|1, ws2, ws2) -> (B, nw, ws2, inner)."""
    B, nw, ws2, inner = q.shape
    per_window_bytes = 4 * (4 * ws2 * inner + ws2 * ws2 * (heads + 2))
    wt = _pick_window_tile(nw, B, per_window_bytes)
    kern = functools.partial(_window_attn_kernel, heads=heads, head_dim=head_dim)

    qkv_spec = pl.BlockSpec((None, wt, ws2, inner), lambda wi, b: (b, wi, 0, 0))
    if bias.shape[0] == 1:
        # non-shifted: single (ws2, ws2) bias stays resident for the whole grid.
        bias_spec = pl.BlockSpec((1, ws2, ws2), lambda wi, b: (0, 0, 0))
    else:
        # shifted: bias indexed by window position only -> resident across the
        # inner batch axis of the grid.
        bias_spec = pl.BlockSpec((wt, ws2, ws2), lambda wi, b: (wi, 0, 0))

    return pl.pallas_call(
        kern,
        out_shape=jax.ShapeDtypeStruct((B, nw, ws2, inner), q.dtype),
        grid=(nw // wt, B),
        in_specs=[qkv_spec, qkv_spec, qkv_spec, bias_spec],
        out_specs=pl.BlockSpec((None, wt, ws2, inner), lambda wi, b: (b, wi, 0, 0)),
        compiler_params=pltpu.CompilerParams(
            dimension_semantics=("parallel", "parallel"),
            vmem_limit_bytes=_VMEM_LIMIT),
    )(q, k, v, bias)


def out_ffn(a, xres, wo, bo, g2, bb2, w1, b1, w2, b2):
    """Fused to_out + residual + LN2 + MLP + residual; a: (M, inner), xres: (M, C)."""
    M, inner = a.shape
    C = wo.shape[1]
    Hd = w1.shape[1]
    row_bytes = 4 * (inner + 3 * C + Hd)
    weight_bytes = 4 * (inner * C + C * Hd + Hd * C + 4 * C + Hd)
    tm = _pick_m_tile(M, row_bytes, weight_bytes)
    ap, pad = _pad_rows(a, tm)
    xp, _ = _pad_rows(xres, tm)
    Mp = ap.shape[0]
    y = pl.pallas_call(
        _out_ffn_kernel,
        out_shape=jax.ShapeDtypeStruct((Mp, C), xres.dtype),
        grid=(Mp // tm,),
        in_specs=[
            pl.BlockSpec((tm, inner), lambda i: (i, 0)),
            pl.BlockSpec((tm, C), lambda i: (i, 0)),
            pl.BlockSpec((inner, C), lambda i: (0, 0)),
            pl.BlockSpec((1, C), lambda i: (0, 0)),
            pl.BlockSpec((1, C), lambda i: (0, 0)),
            pl.BlockSpec((1, C), lambda i: (0, 0)),
            pl.BlockSpec((C, Hd), lambda i: (0, 0)),
            pl.BlockSpec((1, Hd), lambda i: (0, 0)),
            pl.BlockSpec((Hd, C), lambda i: (0, 0)),
            pl.BlockSpec((1, C), lambda i: (0, 0)),
        ],
        out_specs=pl.BlockSpec((tm, C), lambda i: (i, 0)),
        compiler_params=pltpu.CompilerParams(
            dimension_semantics=("parallel",), vmem_limit_bytes=_VMEM_LIMIT),
    )(ap, xp, wo, bo.reshape(1, C), g2.reshape(1, C), bb2.reshape(1, C),
      w1, b1.reshape(1, Hd), w2, b2.reshape(1, C))
    return y[:M] if pad else y


# ----------------------------------------------------------------------------
# Trace-time constants (rel-pos indices, shift mask)
# ----------------------------------------------------------------------------
def _relative_indices(window_size):
    idx = np.array([[x, y] for x in range(window_size) for y in range(window_size)])
    rel = idx[None, :, :] - idx[:, None, :] + window_size - 1
    return rel.astype(np.int32)


def _build_shift_mask(window_size, nw_h, nw_w, neg=-1e9):
    """Per-window additive mask (nw, ws2, ws2) reproducing create_mask placement.
    Uses a large finite negative instead of -inf (robust if dtypes ever narrow)."""
    disp = window_size // 2
    ws2 = window_size ** 2
    ul = np.zeros((ws2, ws2), np.float32)
    ul[-disp * window_size:, :-disp * window_size] = neg
    ul[:-disp * window_size, -disp * window_size:] = neg
    lr = np.zeros((window_size, window_size, window_size, window_size), np.float32)
    lr[:, -disp:, :, :-disp] = neg
    lr[:, :-disp, :, -disp:] = neg
    lr = lr.reshape(ws2, ws2)
    nw = nw_h * nw_w
    m = np.zeros((nw, ws2, ws2), np.float32)
    for w in range(nw):
        if w // nw_w == nw_h - 1:      # dots[:, :, -nw_w:]       += upper_lower_mask
            m[w] += ul
        if w % nw_w == nw_w - 1:       # dots[:, :, nw_w-1::nw_w] += left_right_mask
            m[w] += lr
    return jnp.asarray(m)


# ----------------------------------------------------------------------------
# SwinBlock forward
# ----------------------------------------------------------------------------
def swin_block_forward(x, params, *, heads, head_dim, window_size, shifted,
                       relative_pos_embedding):
    B, H, W, C = x.shape
    ws = window_size
    assert H % ws == 0 and W % ws == 0
    ws2 = ws * ws
    nw_h, nw_w = H // ws, W // ws
    nw = nw_h * nw_w
    inner = heads * head_dim
    M = B * H * W
    disp = ws // 2
    scale = head_dim ** -0.5

    # --- bias (rel-pos + optional shift mask), built once per block ---
    if relative_pos_embedding:
        rel = _relative_indices(ws)
        pos_bias = params["pos_emb"][rel[..., 0], rel[..., 1]]       # (ws2, ws2)
    else:
        pos_bias = params["pos_emb"]
    pos_bias = pos_bias.astype(jnp.float32)
    if shifted:
        bias = pos_bias[None] + _build_shift_mask(ws, nw_h, nw_w)    # (nw, ws2, ws2)
    else:
        bias = pos_bias[None]                                        # (1, ws2, ws2)

    # --- cyclic shift + window partition, done once on the C-wide input ---
    xs = jnp.roll(x, shift=(-disp, -disp), axis=(1, 2)) if shifted else x
    xw = (xs.reshape(B, nw_h, ws, nw_w, ws, C)
            .transpose(0, 1, 3, 2, 4, 5)
            .reshape(M, C))                         # window-row order

    # --- weights: split to_qkv and fold the attention scale into Wq ---
    wqkv = params["wqkv"]
    wq = wqkv[:, :inner] * scale
    wk = wqkv[:, inner:2 * inner]
    wv = wqkv[:, 2 * inner:]

    # ---- Residual(PreNorm(WindowAttention)), in window-row order ----
    q, k, v = ln_qkv(xw, params["ln1_g"], params["ln1_b"], wq, wk, wv)   # (M, inner) x3

    attn = window_attention(q.reshape(B, nw, ws2, inner),
                            k.reshape(B, nw, ws2, inner),
                            v.reshape(B, nw, ws2, inner),
                            bias, heads, head_dim)                       # (B, nw, ws2, inner)

    # ---- to_out + residual + Residual(PreNorm(FeedForward)), fused ----
    yw = out_ffn(attn.reshape(M, inner), xw,
                 params["wo"], params["bo"],
                 params["ln2_g"], params["ln2_b"],
                 params["w1"], params["b1"], params["w2"], params["b2"])  # (M, C)

    # --- un-partition (+ back shift) of the final output only ---
    y = (yw.reshape(B, nw_h, nw_w, ws, ws, C)
           .transpose(0, 1, 3, 2, 4, 5)
           .reshape(B, H, W, C))
    if shifted:
        y = jnp.roll(y, shift=(disp, disp), axis=(1, 2))
    return y


def init_params(key, dim, heads, head_dim, mlp_dim, window_size, relative_pos_embedding):
    inner = heads * head_dim
    ks = jax.random.split(key, 8)

    def nrm(k, shape, scale=0.02):
        return scale * jax.random.normal(k, shape, jnp.float32)

    pos_shape = ((2 * window_size - 1, 2 * window_size - 1)
                 if relative_pos_embedding else (window_size ** 2, window_size ** 2))
    return dict(
        ln1_g=jnp.ones((dim,), jnp.float32), ln1_b=jnp.zeros((dim,), jnp.float32),
        wqkv=nrm(ks[0], (dim, 3 * inner)),                       # to_qkv (bias=False)
        pos_emb=jax.random.normal(ks[1], pos_shape, jnp.float32),
        wo=nrm(ks[2], (inner, dim)), bo=nrm(ks[3], (dim,)),      # to_out
        ln2_g=jnp.ones((dim,), jnp.float32), ln2_b=jnp.zeros((dim,), jnp.float32),
        w1=nrm(ks[4], (dim, mlp_dim)), b1=nrm(ks[5], (mlp_dim,)),
        w2=nrm(ks[6], (mlp_dim, dim)), b2=nrm(ks[7], (dim,)),
    )


# ----------------------------------------------------------------------------
if __name__ == "__main__":
    # Small shapes consistent with SwinBlock: window_size=4 -> H, W multiples of 4.
    B, H, W = 2, 8, 8
    dim, heads, head_dim, mlp_dim = 32, 4, 8, 128
    window_size, shifted, relative_pos_embedding = 4, True, True

    key = jax.random.PRNGKey(0)
    kx, kp = jax.random.split(key)
    x = jax.random.normal(kx, (B, H, W, dim), jnp.float32)
    params = init_params(kp, dim, heads, head_dim, mlp_dim, window_size,
                         relative_pos_embedding)

    fwd = jax.jit(functools.partial(
        swin_block_forward, heads=heads, head_dim=head_dim, window_size=window_size,
        shifted=shifted, relative_pos_embedding=relative_pos_embedding))

    out = jax.block_until_ready(fwd(x, params))

    assert out.shape == (B, H, W, dim), out.shape
    assert bool(jnp.all(jnp.isfinite(out)))
    print("KERNEL_OK")
</pallas_src>

<mosaic_0001>
module attributes {stable_mosaic.version = 11 : i64} {
  func.func @_window_attn_kernel(%arg0: i32, %arg1: i32, %arg2: memref<1x4x16x32xf32, #tpu.memory_space<vmem>>, %arg3: memref<1x4x16x32xf32, #tpu.memory_space<vmem>>, %arg4: memref<1x4x16x32xf32, #tpu.memory_space<vmem>>, %arg5: memref<4x16x16xf32, #tpu.memory_space<vmem>>, %arg6: memref<1x4x16x32xf32, #tpu.memory_space<vmem>>) attributes {dimension_semantics = [#tpu.dimension_semantics<parallel>, #tpu.dimension_semantics<parallel>], iteration_bounds = array<i64: 1, 2>, scalar_prefetch = 0 : i64, scratch_operands = 0 : i64, tpu.core_type = #tpu.core_type<tc>, window_params = [{transform_indices = @transform_0, window_bounds = array<i64: 1, 4, 16, 32>}, {transform_indices = @transform_1, window_bounds = array<i64: 1, 4, 16, 32>}, {transform_indices = @transform_2, window_bounds = array<i64: 1, 4, 16, 32>}, {transform_indices = @transform_3, window_bounds = array<i64: 4, 16, 16>}, {transform_indices = @transform_4, window_bounds = array<i64: 1, 4, 16, 32>}]} {
    %c0 = arith.constant 0 : index
    %c0_0 = arith.constant 0 : index
    %c0_1 = arith.constant 0 : index
    %c0_2 = arith.constant 0 : index
    %0 = vector.load %arg2[%c0, %c0_0, %c0_1, %c0_2] : memref<1x4x16x32xf32, #tpu.memory_space<vmem>>, vector<1x4x16x32xf32>
    %1 = vector.shape_cast %0 : vector<1x4x16x32xf32> to vector<4x16x32xf32>
    %2 = vector.extract_strided_slice %1 {offsets = [0, 0, 0], sizes = [4, 16, 8], strides = [1, 1, 1]} : vector<4x16x32xf32> to vector<4x16x8xf32>
    %3 = vector.extract_strided_slice %1 {offsets = [0, 0, 8], sizes = [4, 16, 8], strides = [1, 1, 1]} : vector<4x16x32xf32> to vector<4x16x8xf32>
    %4 = vector.extract_strided_slice %1 {offsets = [0, 0, 16], sizes = [4, 16, 8], strides = [1, 1, 1]} : vector<4x16x32xf32> to vector<4x16x8xf32>
    %5 = vector.extract_strided_slice %1 {offsets = [0, 0, 24], sizes = [4, 16, 8], strides = [1, 1, 1]} : vector<4x16x32xf32> to vector<4x16x8xf32>
    %6 = tpu.concatenate %2, %3, %4, %5 in 0 : vector<4x16x8xf32>, vector<4x16x8xf32>, vector<4x16x8xf32>, vector<4x16x8xf32> -> vector<16x16x8xf32>
    %c0_3 = arith.constant 0 : index
    %c0_4 = arith.constant 0 : index
    %c0_5 = arith.constant 0 : index
    %c0_6 = arith.constant 0 : index
    %7 = vector.load %arg3[%c0_3, %c0_4, %c0_5, %c0_6] : memref<1x4x16x32xf32, #tpu.memory_space<vmem>>, vector<1x4x16x32xf32>
    %8 = vector.shape_cast %7 : vector<1x4x16x32xf32> to vector<4x16x32xf32>
    %9 = vector.extract_strided_slice %8 {offsets = [0, 0, 0], sizes = [4, 16, 8], strides = [1, 1, 1]} : vector<4x16x32xf32> to vector<4x16x8xf32>
    %10 = vector.extract_strided_slice %8 {offsets = [0, 0, 8], sizes = [4, 16, 8], strides = [1, 1, 1]} : vector<4x16x32xf32> to vector<4x16x8xf32>
    %11 = vector.extract_strided_slice %8 {offsets = [0, 0, 16], sizes = [4, 16, 8], strides = [1, 1, 1]} : vector<4x16x32xf32> to vector<4x16x8xf32>
    %12 = vector.extract_strided_slice %8 {offsets = [0, 0, 24], sizes = [4, 16, 8], strides = [1, 1, 1]} : vector<4x16x32xf32> to vector<4x16x8xf32>
    %13 = tpu.concatenate %9, %10, %11, %12 in 0 : vector<4x16x8xf32>, vector<4x16x8xf32>, vector<4x16x8xf32>, vector<4x16x8xf32> -> vector<16x16x8xf32>
    %c0_7 = arith.constant 0 : index
    %c0_8 = arith.constant 0 : index
    %c0_9 = arith.constant 0 : index
    %c0_10 = arith.constant 0 : index
    %14 = vector.load %arg4[%c0_7, %c0_8, %c0_9, %c0_10] : memref<1x4x16x32xf32, #tpu.memory_space<vmem>>, vector<1x4x16x32xf32>
    %15 = vector.shape_cast %14 : vector<1x4x16x32xf32> to vector<4x16x32xf32>
    %16 = vector.extract_strided_slice %15 {offsets = [0, 0, 0], sizes = [4, 16, 8], strides = [1, 1, 1]} : vector<4x16x32xf32> to vector<4x16x8xf32>
    %17 = vector.extract_strided_slice %15 {offsets = [0, 0, 8], sizes = [4, 16, 8], strides = [1, 1, 1]} : vector<4x16x32xf32> to vector<4x16x8xf32>
    %18 = vector.extract_strided_slice %15 {offsets = [0, 0, 16], sizes = [4, 16, 8], strides = [1, 1, 1]} : vector<4x16x32xf32> to vector<4x16x8xf32>
    %19 = vector.extract_strided_slice %15 {offsets = [0, 0, 24], sizes = [4, 16, 8], strides = [1, 1, 1]} : vector<4x16x32xf32> to vector<4x16x8xf32>
    %20 = tpu.concatenate %16, %17, %18, %19 in 0 : vector<4x16x8xf32>, vector<4x16x8xf32>, vector<4x16x8xf32>, vector<4x16x8xf32> -> vector<16x16x8xf32>
    %cst = arith.constant dense<0.000000e+00> : vector<16x16x16xf32>
    %21 = tpu.matmul %6, %13, %cst {dimension_numbers = #tpu.dot_dimension_numbers<[2], [2], [1], [1], [0, 0, 0, 1, 1, 1], [0], [0]>} : vector<16x16x8xf32>, vector<16x16x8xf32>, vector<16x16x16xf32> -> vector<16x16x16xf32>
    %22 = vector.shape_cast %21 : vector<16x16x16xf32> to vector<4x4x16x16xf32>
    %c0_11 = arith.constant 0 : index
    %c0_12 = arith.constant 0 : index
    %c0_13 = arith.constant 0 : index
    %23 = vector.load %arg5[%c0_11, %c0_12, %c0_13] : memref<4x16x16xf32, #tpu.memory_space<vmem>>, vector<4x16x16xf32>
    %24 = vector.shape_cast %23 : vector<4x16x16xf32> to vector<1x4x16x16xf32>
    %25 = vector.broadcast %24 : vector<1x4x16x16xf32> to vector<4x4x16x16xf32>
    %26 = arith.addf %22, %25 : vector<4x4x16x16xf32>
    %cst_14 = arith.constant dense<0xFF800000> : vector<4x4x16xf32>
    %27 = vector.multi_reduction <maximumf>, %26, %cst_14 [3] : vector<4x4x16x16xf32> to vector<4x4x16xf32>
    %28 = vector.shape_cast %27 : vector<4x4x16xf32> to vector<4x4x16x1xf32>
    %29 = vector.broadcast %28 : vector<4x4x16x1xf32> to vector<4x4x16x16xf32>
    %30 = arith.subf %26, %29 : vector<4x4x16x16xf32>
    %31 = math.exp %30 : vector<4x4x16x16xf32>
    %cst_15 = arith.constant dense<0.000000e+00> : vector<4x4x16xf32>
    %32 = vector.multi_reduction <add>, %31, %cst_15 [3] : vector<4x4x16x16xf32> to vector<4x4x16xf32>
    %33 = vector.shape_cast %32 : vector<4x4x16xf32> to vector<4x4x16x1xf32>
    %34 = tpu.reciprocal %33 {approx = true} : vector<4x4x16x1xf32> -> vector<4x4x16x1xf32>
    %35 = vector.broadcast %34 : vector<4x4x16x1xf32> to vector<4x4x16x16xf32>
    %36 = arith.mulf %31, %35 : vector<4x4x16x16xf32>
    %37 = vector.shape_cast %36 : vector<4x4x16x16xf32> to vector<16x16x16xf32>
    %cst_16 = arith.constant dense<0.000000e+00> : vector<16x16x8xf32>
    %38 = tpu.matmul %37, %20, %cst_16 {dimension_numbers = #tpu.dot_dimension_numbers<[2], [1], [1], [2], [0, 0, 0, 1, 1, 2], [0], [0]>} : vector<16x16x16xf32>, vector<16x16x8xf32>, vector<16x16x8xf32> -> vector<16x16x8xf32>
    %39 = vector.shape_cast %38 : vector<16x16x8xf32> to vector<4x4x16x8xf32>
    %40 = vector.extract_strided_slice %39 {offsets = [0, 0, 0, 0], sizes = [1, 4, 16, 8], strides = [1, 1, 1, 1]} : vector<4x4x16x8xf32> to vector<1x4x16x8xf32>
    %41 = vector.shape_cast %40 : vector<1x4x16x8xf32> to vector<4x16x8xf32>
    %42 = vector.extract_strided_slice %39 {offsets = [1, 0, 0, 0], sizes = [1, 4, 16, 8], strides = [1, 1, 1, 1]} : vector<4x4x16x8xf32> to vector<1x4x16x8xf32>
    %43 = vector.shape_cast %42 : vector<1x4x16x8xf32> to vector<4x16x8xf32>
    %44 = vector.extract_strided_slice %39 {offsets = [2, 0, 0, 0], sizes = [1, 4, 16, 8], strides = [1, 1, 1, 1]} : vector<4x4x16x8xf32> to vector<1x4x16x8xf32>
    %45 = vector.shape_cast %44 : vector<1x4x16x8xf32> to vector<4x16x8xf32>
    %46 = vector.extract_strided_slice %39 {offsets = [3, 0, 0, 0], sizes = [1, 4, 16, 8], strides = [1, 1, 1, 1]} : vector<4x4x16x8xf32> to vector<1x4x16x8xf32>
    %47 = vector.shape_cast %46 : vector<1x4x16x8xf32> to vector<4x16x8xf32>
    %48 = tpu.concatenate %41, %43, %45, %47 in 2 : vector<4x16x8xf32>, vector<4x16x8xf32>, vector<4x16x8xf32>, vector<4x16x8xf32> -> vector<4x16x32xf32>
    %c0_17 = arith.constant 0 : index
    %c0_18 = arith.constant 0 : index
    %c0_19 = arith.constant 0 : index
    %c0_20 = arith.constant 0 : index
    %49 = vector.load %arg6[%c0_17, %c0_18, %c0_19, %c0_20] : memref<1x4x16x32xf32, #tpu.memory_space<vmem>>, vector<1x4x16x32xf32>
    %50 = vector.shape_cast %49 : vector<1x4x16x32xf32> to vector<4x16x32xf32>
    %51 = vector.shape_cast %48 : vector<4x16x32xf32> to vector<1x4x16x32xf32>
    tpu.vector_store %arg6[%c0_17, %c0_18, %c0_19, %c0_20], %51 {strides = array<i32>} : memref<1x4x16x32xf32, #tpu.memory_space<vmem>>, vector<1x4x16x32xf32>,
    return
  }
  func.func @transform_0(%arg0: i32, %arg1: i32) -> (i32, i32, i32, i32) {
    %c0_i32 = arith.constant 0 : i32
    %c0_i32_0 = arith.constant 0 : i32
    %c0_i32_1 = arith.constant 0 : i32
    return %arg1, %arg0, %c0_i32, %c0_i32_0 : i32, i32, i32, i32
  }
  func.func @transform_1(%arg0: i32, %arg1: i32) -> (i32, i32, i32, i32) {
    %c0_i32 = arith.constant 0 : i32
    %c0_i32_0 = arith.constant 0 : i32
    %c0_i32_1 = arith.constant 0 : i32
    return %arg1, %arg0, %c0_i32, %c0_i32_0 : i32, i32, i32, i32
  }
  func.func @transform_2(%arg0: i32, %arg1: i32) -> (i32, i32, i32, i32) {
    %c0_i32 = arith.constant 0 : i32
    %c0_i32_0 = arith.constant 0 : i32
    %c0_i32_1 = arith.constant 0 : i32
    return %arg1, %arg0, %c0_i32, %c0_i32_0 : i32, i32, i32, i32
  }
  func.func @transform_3(%arg0: i32, %arg1: i32) -> (i32, i32, i32) {
    %c0_i32 = arith.constant 0 : i32
    %c0_i32_0 = arith.constant 0 : i32
    %c0_i32_1 = arith.constant 0 : i32
    return %arg0, %c0_i32, %c0_i32_0 : i32, i32, i32
  }
  func.func @transform_4(%arg0: i32, %arg1: i32) -> (i32, i32, i32, i32) {
    %c0_i32 = arith.constant 0 : i32
    %c0_i32_0 = arith.constant 0 : i32
    %c0_i32_1 = arith.constant 0 : i32
    return %arg1, %arg0, %c0_i32, %c0_i32_0 : i32, i32, i32, i32
  }
}

module attributes {stable_mosaic.version = 11 : i64} {
  func.func @_ln_qkv_kernel(%arg0: i32, %arg1: memref<64x32xf32, #tpu.memory_space<vmem>>, %arg2: memref<1x32xf32, #tpu.memory_space<vmem>>, %arg3: memref<1x32xf32, #tpu.memory_space<vmem>>, %arg4: memref<32x32xf32, #tpu.memory_space<vmem>>, %arg5: memref<32x32xf32, #tpu.memory_space<vmem>>, %arg6: memref<32x32xf32, #tpu.memory_space<vmem>>, %arg7: memref<64x32xf32, #tpu.memory_space<vmem>>, %arg8: memref<64x32xf32, #tpu.memory_space<vmem>>, %arg9: memref<64x32xf32, #tpu.memory_space<vmem>>) attributes {dimension_semantics = [#tpu.dimension_semantics<parallel>], iteration_bounds = array<i64: 2>, scalar_prefetch = 0 : i64, scratch_operands = 0 : i64, tpu.core_type = #tpu.core_type<tc>, window_params = [{transform_indices = @transform_0, window_bounds = array<i64: 64, 32>}, {pipeline_mode = #tpu.pipeline_mode<synchronous>, transform_indices = @transform_1, window_bounds = array<i64: 1, 32>}, {pipeline_mode = #tpu.pipeline_mode<synchronous>, transform_indices = @transform_2, window_bounds = array<i64: 1, 32>}, {pipeline_mode = #tpu.pipeline_mode<synchronous>, transform_indices = @transform_3, window_bounds = array<i64: 32, 32>}, {pipeline_mode = #tpu.pipeline_mode<synchronous>, transform_indices = @transform_4, window_bounds = array<i64: 32, 32>}, {pipeline_mode = #tpu.pipeline_mode<synchronous>, transform_indices = @transform_5, window_bounds = array<i64: 32, 32>}, {transform_indices = @transform_6, window_bounds = array<i64: 64, 32>}, {transform_indices = @transform_7, window_bounds = array<i64: 64, 32>}, {transform_indices = @transform_8, window_bounds = array<i64: 64, 32>}]} {
    %c0 = arith.constant 0 : index
    %c0_0 = arith.constant 0 : index
    %0 = vector.load %arg1[%c0, %c0_0] : memref<64x32xf32, #tpu.memory_space<vmem>>, vector<64x32xf32>
    %c0_1 = arith.constant 0 : index
    %c0_2 = arith.constant 0 : index
    %1 = vector.load %arg2[%c0_1, %c0_2] : memref<1x32xf32, #tpu.memory_space<vmem>>, vector<1x32xf32>
    %c0_3 = arith.constant 0 : index
    %c0_4 = arith.constant 0 : index
    %2 = vector.load %arg3[%c0_3, %c0_4] : memref<1x32xf32, #tpu.memory_space<vmem>>, vector<1x32xf32>
    %cst = arith.constant dense<0.000000e+00> : vector<64xf32>
    %3 = vector.multi_reduction <add>, %0, %cst [1] : vector<64x32xf32> to vector<64xf32>
    %4 = vector.shape_cast %3 : vector<64xf32> to vector<64x1xf32>
    %cst_5 = arith.constant 3.200000e+01 : f32
    %5 = vector.broadcast %cst_5 : f32 to vector<64x1xf32>
    %6 = arith.divf %4, %5 : vector<64x1xf32>
    %7 = vector.broadcast %6 : vector<64x1xf32> to vector<64x32xf32>
    %8 = arith.subf %0, %7 : vector<64x32xf32>
    %9 = arith.mulf %8, %8 : vector<64x32xf32>
    %cst_6 = arith.constant dense<0.000000e+00> : vector<64xf32>
    %10 = vector.multi_reduction <add>, %9, %cst_6 [1] : vector<64x32xf32> to vector<64xf32>
    %11 = vector.shape_cast %10 : vector<64xf32> to vector<64x1xf32>
    %cst_7 = arith.constant 3.200000e+01 : f32
    %12 = vector.broadcast %cst_7 : f32 to vector<64x1xf32>
    %13 = arith.divf %11, %12 : vector<64x1xf32>
    %14 = vector.broadcast %6 : vector<64x1xf32> to vector<64x32xf32>
    %15 = arith.subf %0, %14 : vector<64x32xf32>
    %cst_8 = arith.constant 9.99999974E-6 : f32
    %16 = vector.broadcast %cst_8 : f32 to vector<64x1xf32>
    %17 = arith.addf %13, %16 : vector<64x1xf32>
    %18 = math.rsqrt %17 : vector<64x1xf32>
    %19 = vector.broadcast %18 : vector<64x1xf32> to vector<64x32xf32>
    %20 = arith.mulf %15, %19 : vector<64x32xf32>
    %21 = vector.broadcast %1 : vector<1x32xf32> to vector<64x32xf32>
    %22 = arith.mulf %20, %21 : vector<64x32xf32>
    %23 = vector.broadcast %2 : vector<1x32xf32> to vector<64x32xf32>
    %24 = arith.addf %22, %23 : vector<64x32xf32>
    %c0_9 = arith.constant 0 : index
    %c0_10 = arith.constant 0 : index
    %25 = vector.load %arg4[%c0_9, %c0_10] : memref<32x32xf32, #tpu.memory_space<vmem>>, vector<32x32xf32>
    %cst_11 = arith.constant dense<0.000000e+00> : vector<64x32xf32>
    %26 = tpu.matmul %24, %25, %cst_11 {dimension_numbers = #tpu.dot_dimension_numbers<[1], [0], [0], [1], [0, 0, 1, 1], [], []>} : vector<64x32xf32>, vector<32x32xf32>, vector<64x32xf32> -> vector<64x32xf32>
    %c0_12 = arith.constant 0 : index
    %c0_13 = arith.constant 0 : index
    %27 = vector.load %arg7[%c0_12, %c0_13] : memref<64x32xf32, #tpu.memory_space<vmem>>, vector<64x32xf32>
    tpu.vector_store %arg7[%c0_12, %c0_13], %26 {strides = array<i32>} : memref<64x32xf32, #tpu.memory_space<vmem>>, vector<64x32xf32>,
    %c0_14 = arith.constant 0 : index
    %c0_15 = arith.constant 0 : index
    %28 = vector.load %arg5[%c0_14, %c0_15] : memref<32x32xf32, #tpu.memory_space<vmem>>, vector<32x32xf32>
    %cst_16 = arith.constant dense<0.000000e+00> : vector<64x32xf32>
    %29 = tpu.matmul %24, %28, %cst_16 {dimension_numbers = #tpu.dot_dimension_numbers<[1], [0], [0], [1], [0, 0, 1, 1], [], []>} : vector<64x32xf32>, vector<32x32xf32>, vector<64x32xf32> -> vector<64x32xf32>
    %c0_17 = arith.constant 0 : index
    %c0_18 = arith.constant 0 : index
    %30 = vector.load %arg8[%c0_17, %c0_18] : memref<64x32xf32, #tpu.memory_space<vmem>>, vector<64x32xf32>
    tpu.vector_store %arg8[%c0_17, %c0_18], %29 {strides = array<i32>} : memref<64x32xf32, #tpu.memory_space<vmem>>, vector<64x32xf32>,
    %c0_19 = arith.constant 0 : index
    %c0_20 = arith.constant 0 : index
    %31 = vector.load %arg6[%c0_19, %c0_20] : memref<32x32xf32, #tpu.memory_space<vmem>>, vector<32x32xf32>
    %cst_21 = arith.constant dense<0.000000e+00> : vector<64x32xf32>
    %32 = tpu.matmul %24, %31, %cst_21 {dimension_numbers = #tpu.dot_dimension_numbers<[1], [0], [0], [1], [0, 0, 1, 1], [], []>} : vector<64x32xf32>, vector<32x32xf32>, vector<64x32xf32> -> vector<64x32xf32>
    %c0_22 = arith.constant 0 : index
    %c0_23 = arith.constant 0 : index
    %33 = vector.load %arg9[%c0_22, %c0_23] : memref<64x32xf32, #tpu.memory_space<vmem>>, vector<64x32xf32>
    tpu.vector_store %arg9[%c0_22, %c0_23], %32 {strides = array<i32>} : memref<64x32xf32, #tpu.memory_space<vmem>>, vector<64x32xf32>,
    return
  }
  func.func @transform_0(%arg0: i32) -> (i32, i32) {
    %c0_i32 = arith.constant 0 : i32
    %c0_i32_0 = arith.constant 0 : i32
    return %arg0, %c0_i32 : i32, i32
  }
  func.func @transform_1(%arg0: i32) -> (i32, i32) {
    %c0_i32 = arith.constant 0 : i32
    %c0_i32_0 = arith.constant 0 : i32
    %c0_i32_1 = arith.constant 0 : i32
    return %c0_i32, %c0_i32_0 : i32, i32
  }
  func.func @transform_2(%arg0: i32) -> (i32, i32) {
    %c0_i32 = arith.constant 0 : i32
    %c0_i32_0 = arith.constant 0 : i32
    %c0_i32_1 = arith.constant 0 : i32
    return %c0_i32, %c0_i32_0 : i32, i32
  }
  func.func @transform_3(%arg0: i32) -> (i32, i32) {
    %c0_i32 = arith.constant 0 : i32
    %c0_i32_0 = arith.constant 0 : i32
    %c0_i32_1 = arith.constant 0 : i32
    return %c0_i32, %c0_i32_0 : i32, i32
  }
  func.func @transform_4(%arg0: i32) -> (i32, i32) {
    %c0_i32 = arith.constant 0 : i32
    %c0_i32_0 = arith.constant 0 : i32
    %c0_i32_1 = arith.constant 0 : i32
    return %c0_i32, %c0_i32_0 : i32, i32
  }
  func.func @transform_5(%arg0: i32) -> (i32, i32) {
    %c0_i32 = arith.constant 0 : i32
    %c0_i32_0 = arith.constant 0 : i32
    %c0_i32_1 = arith.constant 0 : i32
    return %c0_i32, %c0_i32_0 : i32, i32
  }
  func.func @transform_6(%arg0: i32) -> (i32, i32) {
    %c0_i32 = arith.constant 0 : i32
    %c0_i32_0 = arith.constant 0 : i32
    return %arg0, %c0_i32 : i32, i32
  }
  func.func @transform_7(%arg0: i32) -> (i32, i32) {
    %c0_i32 = arith.constant 0 : i32
    %c0_i32_0 = arith.constant 0 : i32
    return %arg0, %c0_i32 : i32, i32
  }
  func.func @transform_8(%arg0: i32) -> (i32, i32) {
    %c0_i32 = arith.constant 0 : i32
    %c0_i32_0 = arith.constant 0 : i32
    return %arg0, %c0_i32 : i32, i32
  }
}

module attributes {stable_mosaic.version = 11 : i64} {
  func.func @_out_ffn_kernel(%arg0: i32, %arg1: memref<64x32xf32, #tpu.memory_space<vmem>>, %arg2: memref<64x32xf32, #tpu.memory_space<vmem>>, %arg3: memref<32x32xf32, #tpu.memory_space<vmem>>, %arg4: memref<1x32xf32, #tpu.memory_space<vmem>>, %arg5: memref<1x32xf32, #tpu.memory_space<vmem>>, %arg6: memref<1x32xf32, #tpu.memory_space<vmem>>, %arg7: memref<32x128xf32, #tpu.memory_space<vmem>>, %arg8: memref<1x128xf32, #tpu.memory_space<vmem>>, %arg9: memref<128x32xf32, #tpu.memory_space<vmem>>, %arg10: memref<1x32xf32, #tpu.memory_space<vmem>>, %arg11: memref<64x32xf32, #tpu.memory_space<vmem>>) attributes {dimension_semantics = [#tpu.dimension_semantics<parallel>], iteration_bounds = array<i64: 2>, scalar_prefetch = 0 : i64, scratch_operands = 0 : i64, tpu.core_type = #tpu.core_type<tc>, window_params = [{transform_indices = @transform_0, window_bounds = array<i64: 64, 32>}, {transform_indices = @transform_1, window_bounds = array<i64: 64, 32>}, {pipeline_mode = #tpu.pipeline_mode<synchronous>, transform_indices = @transform_2, window_bounds = array<i64: 32, 32>}, {pipeline_mode = #tpu.pipeline_mode<synchronous>, transform_indices = @transform_3, window_bounds = array<i64: 1, 32>}, {pipeline_mode = #tpu.pipeline_mode<synchronous>, transform_indices = @transform_4, window_bounds = array<i64: 1, 32>}, {pipeline_mode = #tpu.pipeline_mode<synchronous>, transform_indices = @transform_5, window_bounds = array<i64: 1, 32>}, {pipeline_mode = #tpu.pipeline_mode<synchronous>, transform_indices = @transform_6, window_bounds = array<i64: 32, 128>}, {pipeline_mode = #tpu.pipeline_mode<synchronous>, transform_indices = @transform_7, window_bounds = array<i64: 1, 128>}, {pipeline_mode = #tpu.pipeline_mode<synchronous>, transform_indices = @transform_8, window_bounds = array<i64: 128, 32>}, {pipeline_mode = #tpu.pipeline_mode<synchronous>, transform_indices = @transform_9, window_bounds = array<i64: 1, 32>}, {transform_indices = @transform_10, window_bounds = array<i64: 64, 32>}]} {
    %c0 = arith.constant 0 : index
    %c0_0 = arith.constant 0 : index
    %0 = vector.load %arg1[%c0, %c0_0] : memref<64x32xf32, #tpu.memory_space<vmem>>, vector<64x32xf32>
    %c0_1 = arith.constant 0 : index
    %c0_2 = arith.constant 0 : index
    %1 = vector.load %arg3[%c0_1, %c0_2] : memref<32x32xf32, #tpu.memory_space<vmem>>, vector<32x32xf32>
    %cst = arith.constant dense<0.000000e+00> : vector<64x32xf32>
    %2 = tpu.matmul %0, %1, %cst {dimension_numbers = #tpu.dot_dimension_numbers<[1], [0], [0], [1], [0, 0, 1, 1], [], []>} : vector<64x32xf32>, vector<32x32xf32>, vector<64x32xf32> -> vector<64x32xf32>
    %c0_3 = arith.constant 0 : index
    %c0_4 = arith.constant 0 : index
    %3 = vector.load %arg4[%c0_3, %c0_4] : memref<1x32xf32, #tpu.memory_space<vmem>>, vector<1x32xf32>
    %4 = vector.broadcast %3 : vector<1x32xf32> to vector<64x32xf32>
    %5 = arith.addf %2, %4 : vector<64x32xf32>
    %c0_5 = arith.constant 0 : index
    %c0_6 = arith.constant 0 : index
    %6 = vector.load %arg2[%c0_5, %c0_6] : memref<64x32xf32, #tpu.memory_space<vmem>>, vector<64x32xf32>
    %7 = arith.addf %5, %6 : vector<64x32xf32>
    %c0_7 = arith.constant 0 : index
    %c0_8 = arith.constant 0 : index
    %8 = vector.load %arg5[%c0_7, %c0_8] : memref<1x32xf32, #tpu.memory_space<vmem>>, vector<1x32xf32>
    %c0_9 = arith.constant 0 : index
    %c0_10 = arith.constant 0 : index
    %9 = vector.load %arg6[%c0_9, %c0_10] : memref<1x32xf32, #tpu.memory_space<vmem>>, vector<1x32xf32>
    %cst_11 = arith.constant dense<0.000000e+00> : vector<64xf32>
    %10 = vector.multi_reduction <add>, %7, %cst_11 [1] : vector<64x32xf32> to vector<64xf32>
    %11 = vector.shape_cast %10 : vector<64xf32> to vector<64x1xf32>
    %cst_12 = arith.constant 3.200000e+01 : f32
    %12 = vector.broadcast %cst_12 : f32 to vector<64x1xf32>
    %13 = arith.divf %11, %12 : vector<64x1xf32>
    %14 = vector.broadcast %13 : vector<64x1xf32> to vector<64x32xf32>
    %15 = arith.subf %7, %14 : vector<64x32xf32>
    %16 = arith.mulf %15, %15 : vector<64x32xf32>
    %cst_13 = arith.constant dense<0.000000e+00> : vector<64xf32>
    %17 = vector.multi_reduction <add>, %16, %cst_13 [1] : vector<64x32xf32> to vector<64xf32>
    %18 = vector.shape_cast %17 : vector<64xf32> to vector<64x1xf32>
    %cst_14 = arith.constant 3.200000e+01 : f32
    %19 = vector.broadcast %cst_14 : f32 to vector<64x1xf32>
    %20 = arith.divf %18, %19 : vector<64x1xf32>
    %21 = vector.broadcast %13 : vector<64x1xf32> to vector<64x32xf32>
    %22 = arith.subf %7, %21 : vector<64x32xf32>
    %cst_15 = arith.constant 9.99999974E-6 : f32
    %23 = vector.broadcast %cst_15 : f32 to vector<64x1xf32>
    %24 = arith.addf %20, %23 : vector<64x1xf32>
    %25 = math.rsqrt %24 : vector<64x1xf32>
    %26 = vector.broadcast %25 : vector<64x1xf32> to vector<64x32xf32>
    %27 = arith.mulf %22, %26 : vector<64x32xf32>
    %28 = vector.broadcast %8 : vector<1x32xf32> to vector<64x32xf32>
    %29 = arith.mulf %27, %28 : vector<64x32xf32>
    %30 = vector.broadcast %9 : vector<1x32xf32> to vector<64x32xf32>
    %31 = arith.addf %29, %30 : vector<64x32xf32>
    %c0_16 = arith.constant 0 : index
    %c0_17 = arith.constant 0 : index
    %32 = vector.load %arg7[%c0_16, %c0_17] : memref<32x128xf32, #tpu.memory_space<vmem>>, vector<32x128xf32>
    %cst_18 = arith.constant dense<0.000000e+00> : vector<64x128xf32>
    %33 = tpu.matmul %31, %32, %cst_18 {dimension_numbers = #tpu.dot_dimension_numbers<[1], [0], [0], [1], [0, 0, 1, 1], [], []>} : vector<64x32xf32>, vector<32x128xf32>, vector<64x128xf32> -> vector<64x128xf32>
    %c0_19 = arith.constant 0 : index
    %c0_20 = arith.constant 0 : index
    %34 = vector.load %arg8[%c0_19, %c0_20] : memref<1x128xf32, #tpu.memory_space<vmem>>, vector<1x128xf32>
    %35 = vector.broadcast %34 : vector<1x128xf32> to vector<64x128xf32>
    %36 = arith.addf %33, %35 : vector<64x128xf32>
    %cst_21 = arith.constant 5.000000e-01 : f32
    %37 = vector.broadcast %cst_21 : f32 to vector<64x128xf32>
    %38 = arith.mulf %37, %36 : vector<64x128xf32>
    %cst_22 = arith.constant 4.471500e-02 : f32
    %39 = vector.broadcast %cst_22 : f32 to vector<64x128xf32>
    %40 = arith.mulf %39, %36 : vector<64x128xf32>
    %41 = arith.mulf %40, %36 : vector<64x128xf32>
    %42 = arith.mulf %41, %36 : vector<64x128xf32>
    %43 = arith.addf %36, %42 : vector<64x128xf32>
    %cst_23 = arith.constant 0.797884583 : f32
    %44 = vector.broadcast %cst_23 : f32 to vector<64x128xf32>
    %45 = arith.mulf %44, %43 : vector<64x128xf32>
    %46 = math.tanh %45 : vector<64x128xf32>
    %cst_24 = arith.constant 1.000000e+00 : f32
    %47 = vector.broadcast %cst_24 : f32 to vector<64x128xf32>
    %48 = arith.addf %47, %46 : vector<64x128xf32>
    %49 = arith.mulf %38, %48 : vector<64x128xf32>
    %c0_25 = arith.constant 0 : index
    %c0_26 = arith.constant 0 : index
    %50 = vector.load %arg9[%c0_25, %c0_26] : memref<128x32xf32, #tpu.memory_space<vmem>>, vector<128x32xf32>
    %cst_27 = arith.constant dense<0.000000e+00> : vector<64x32xf32>
    %51 = tpu.matmul %49, %50, %cst_27 {dimension_numbers = #tpu.dot_dimension_numbers<[1], [0], [0], [1], [0, 0, 1, 1], [], []>} : vector<64x128xf32>, vector<128x32xf32>, vector<64x32xf32> -> vector<64x32xf32>
    %c0_28 = arith.constant 0 : index
    %c0_29 = arith.constant 0 : index
    %52 = vector.load %arg10[%c0_28, %c0_29] : memref<1x32xf32, #tpu.memory_space<vmem>>, vector<1x32xf32>
    %53 = vector.broadcast %52 : vector<1x32xf32> to vector<64x32xf32>
    %54 = arith.addf %51, %53 : vector<64x32xf32>
    %55 = arith.addf %54, %7 : vector<64x32xf32>
    %c0_30 = arith.constant 0 : index
    %c0_31 = arith.constant 0 : index
    %56 = vector.load %arg11[%c0_30, %c0_31] : memref<64x32xf32, #tpu.memory_space<vmem>>, vector<64x32xf32>
    tpu.vector_store %arg11[%c0_30, %c0_31], %55 {strides = array<i32>} : memref<64x32xf32, #tpu.memory_space<vmem>>, vector<64x32xf32>,
    return
  }
  func.func @transform_0(%arg0: i32) -> (i32, i32) {
    %c0_i32 = arith.constant 0 : i32
    %c0_i32_0 = arith.constant 0 : i32
    return %arg0, %c0_i32 : i32, i32
  }
  func.func @transform_1(%arg0: i32) -> (i32, i32) {
    %c0_i32 = arith.constant 0 : i32
    %c0_i32_0 = arith.constant 0 : i32
    return %arg0, %c0_i32 : i32, i32
  }
  func.func @transform_2(%arg0: i32) -> (i32, i32) {
    %c0_i32 = arith.constant 0 : i32
    %c0_i32_0 = arith.constant 0 : i32
    %c0_i32_1 = arith.constant 0 : i32
    return %c0_i32, %c0_i32_0 : i32, i32
  }
  func.func @transform_3(%arg0: i32) -> (i32, i32) {
    %c0_i32 = arith.constant 0 : i32
    %c0_i32_0 = arith.constant 0 : i32
    %c0_i32_1 = arith.constant 0 : i32
    return %c0_i32, %c0_i32_0 : i32, i32
  }
  func.func @transform_4(%arg0: i32) -> (i32, i32) {
    %c0_i32 = arith.constant 0 : i32
    %c0_i32_0 = arith.constant 0 : i32
    %c0_i32_1 = arith.constant 0 : i32
    return %c0_i32, %c0_i32_0 : i32, i32
  }
  func.func @transform_5(%arg0: i32) -> (i32, i32) {
    %c0_i32 = arith.constant 0 : i32
    %c0_i32_0 = arith.constant 0 : i32
    %c0_i32_1 = arith.constant 0 : i32
    return %c0_i32, %c0_i32_0 : i32, i32
  }
  func.func @transform_6(%arg0: i32) -> (i32, i32) {
    %c0_i32 = arith.constant 0 : i32
    %c0_i32_0 = arith.constant 0 : i32
    %c0_i32_1 = arith.constant 0 : i32
    return %c0_i32, %c0_i32_0 : i32, i32
  }
  func.func @transform_7(%arg0: i32) -> (i32, i32) {
    %c0_i32 = arith.constant 0 : i32
    %c0_i32_0 = arith.constant 0 : i32
    %c0_i32_1 = arith.constant 0 : i32
    return %c0_i32, %c0_i32_0 : i32, i32
  }
  func.func @transform_8(%arg0: i32) -> (i32, i32) {
    %c0_i32 = arith.constant 0 : i32
    %c0_i32_0 = arith.constant 0 : i32
    %c0_i32_1 = arith.constant 0 : i32
    return %c0_i32, %c0_i32_0 : i32, i32
  }
  func.func @transform_9(%arg0: i32) -> (i32, i32) {
    %c0_i32 = arith.constant 0 : i32
    %c0_i32_0 = arith.constant 0 : i32
    %c0_i32_1 = arith.constant 0 : i32
    return %c0_i32, %c0_i32_0 : i32, i32
  }
  func.func @transform_10(%arg0: i32) -> (i32, i32) {
    %c0_i32 = arith.constant 0 : i32
    %c0_i32_0 = arith.constant 0 : i32
    return %arg0, %c0_i32 : i32, i32
  }
}

</mosaic_0001>

<bundles_post_ra>
// kernel: swin_block_forward.5
= control target key start
LH: loop header
LB: loop body
LE: loop exit
PB: predicated region body
PF: predicated region fallthrough
CT: control target
= control target key end

     0   :  { %s1378_s13 = smov 0   ;;  %s1655_s0 = inlined_call_operand.vmem [shape: f32[128,32], index: 0, kind: input, shape index: {}]   ;;  %s1656_s1 = inlined_call_operand.vmem [shape: f32[128,32], index: 1, kind: input, shape index: {}]   ;;  %s1657_s2 = inlined_call_operand.vmem [shape: f32[32,32], index: 2, kind: input, shape index: {}]   ;;  %s1658_s3 = inlined_call_operand.vmem [shape: f32[1,32], index: 3, kind: input, shape index: {}]   ;;  %s1659_s4 = inlined_call_operand.vmem [shape: f32[1,32], index: 4, kind: input, shape index: {}]   ;;  %s1660_s5 = inlined_call_operand.vmem [shape: f32[1,32], index: 5, kind: input, shape index: {}]   ;;  %s1661_s6 = inlined_call_operand.vmem [shape: f32[32,128], index: 6, kind: input, shape index: {}]   ;;  %s1662_s7 = inlined_call_operand.vmem [shape: f32[1,128], index: 7, kind: input, shape index: {}]   ;;  %s1663_s8 = inlined_call_operand.vmem [shape: f32[128,32], index: 8, kind: input, shape index: {}]   ;;  %s1664_s9 = inlined_call_operand.vmem [shape: f32[1,32], index: 9, kind: input, shape index: {}]   ;;  %s1665_s10 = inlined_call_operand.vmem [shape: f32[128,32], index: 10, kind: output, shape index: {}]  }
   0x1 LB: > { %s1109_s14 = sadd.s32 4294967295, %s1321_s13   ;;  %p1113_p0 = scmp.ge.s32.totalorder %s1321_s13, 1  ;;  %s1321_s13 = sphi %s1378_s13, %s20_s13  }
   0x2   : > { %p324_p1 = scmp.lt.s32.totalorder %s1321_s13, 3 }
   0x4   : > { %p325_p2 = pnand %p1113_p0, %p324_p1 }
   0x5   : > { %s1114_s19 = sshll.u32 (!%p325_p2), %s1109_s14, 3 }
   0x6   : > { %328 = sbr.rel (%p325_p2) target bundleno = 970 (0x3ca), region = 60  ;;  %p368_p3 = scmp.lt.s32.totalorder (!%p325_p2), %s1114_s19, 15 }
   0xb   : > { %v396_v0 = vld [vmem:[%s1657_s2 + $0x18] sm:$0xff]  ;;  %v395_v1 = vld [vmem:[%s1657_s2 + $0x10] sm:$0xff]  ;;  %v394_v2 = vld [vmem:[%s1657_s2 + $0x8] sm:$0xff]  ;;  %s1667_s19 = smov (!%p368_p3, %s1114_s19), 15  ;;  %vm404_vm0 = vcmask 261120  }
   0xc   : > { %1191 = vmatprep.subr.mxu1 %v396_v0  ;;  %v393_v3 = vld [vmem:[%s1657_s2] sm:$0xff]  ;;  %s1398_s24 = sshll.u32 %s1667_s19, 3 }
   0xd   : > { %1192 = vmatpush3.msra.mxu1 %v396_v0  ;;  %s371_s27 = scalar_lea.vmem %s1655_s0, %s1398_s24  ;;  %v1120_v13 = vld [vmem:[%s1658_s3] ss:$0 sm:$0xff]  ;;  %s1419_s12 = scalar_lea.vmem %s1656_s1, %s1398_s24 }
   0xe   : > { %1193 = vmatprep.subr.mxu1 %v395_v1  ;;  %v385_v4 = vld [vmem:[%s371_s27] sm:$0xff]  ;;  %v386_v5 = vld [vmem:[%s371_s27 + $0x8] sm:$0xff]  ;;  %v387_v6 = vld [vmem:[%s371_s27 + $0x10] sm:$0xff]  ;;  %s383_s29 = scalar_lea.vmem %s1665_s10, %s1398_s24 }
   0xf   : > { %1194 = vmatpush3.msra.mxu1 %v395_v1  ;;  %1199 = vmatprep.mubr.msk.f32.mxu1 %vm404_vm0, %v385_v4  ;;  %v388_v7 = vld [vmem:[%s371_s27 + $0x18] sm:$0xff]  ;;  %v389_v8 = vld [vmem:[%s371_s27 + $0x20] sm:$0xff]  ;;  %v390_v9 = vld [vmem:[%s371_s27 + $0x28] sm:$0xff] }
  0x10   : > { %1195 = vmatprep.subr.mxu1 %v394_v2  ;;  %v391_v10 = vld [vmem:[%s371_s27 + $0x30] sm:$0xff]  ;;  %v392_v11 = vld [vmem:[%s371_s27 + $0x38] sm:$0xff]  ;;  %v534_v15 = vld [vmem:[%s1419_s12] sm:$0xff] }
  0x11   : > { %1196 = vmatpush3.msra.mxu1 %v394_v2  ;;  %v535_v18 = vld [vmem:[%s1419_s12 + $0x8] sm:$0xff]  ;;  %v536_v23 = vld [vmem:[%s1419_s12 + $0x10] sm:$0xff]  ;;  %v537_v25 = vld [vmem:[%s1419_s12 + $0x18] sm:$0xff] }
  0x12   : > { %1197 = vmatprep.subr.mxu1 %v393_v3  ;;  %v538_v32 = vld [vmem:[%s1419_s12 + $0x20] sm:$0xff]  ;;  %v539_v37 = vld [vmem:[%s1419_s12 + $0x28] sm:$0xff]  ;;  %v540_v41 = vld [vmem:[%s1419_s12 + $0x30] sm:$0xff] }
  0x13   : > { %1198 = vmatpush3.msra.mxu1 %v393_v3  ;;  %v541_v47 = vld [vmem:[%s1419_s12 + $0x38] sm:$0xff] }
  0x14   : > { %1200 = vmatmul.mubr.msk.f32.vlgmr.msra.gmra.mxu1 %vm404_vm0, %v386_v5 }
  0x15   : > { %1202 = vmatprep.mubr.msk.f32.mxu1 %vm404_vm0, %v387_v6 }
  0x18   : > { %1203 = vmatmul.mubr.msk.f32.gmra.mxu1 %vm404_vm0, %v388_v7 }
  0x19   : > { %1205 = vmatprep.mubr.msk.f32.mxu1 %vm404_vm0, %v389_v8 }
  0x1c   : > { %1206 = vmatmul.mubr.msk.f32.gmra.mxu1 %vm404_vm0, %v390_v9 }
  0x1d   : > { %1208 = vmatprep.mubr.msk.f32.mxu1 %vm404_vm0, %v391_v10 }
  0x20   : > { %1209 = vmatmul.mubr.msk.f32.gmra.mxu1 %vm404_vm0, %v392_v11 }
  0xd4   : > { %v1201_v12 = vpop.f32.mrf.mxu1 }
  0xd5   : > { %v501_v16 = vadd.f32 %v1201_v12, %v1120_v13 }
  0xd6   : > { %v495_v14 = vpop.f32.mrf.mxu1 }
  0xd7   : > { %v496_v17 = vadd.f32 %v1120_v13, %v495_v14  ;;  %v1426_v24 = vadd.f32 %v535_v18, %v501_v16 }
  0xd8   : > { %v1204_v19 = vpop.f32.mrf.mxu1 }
  0xd9   : > { %v1423_v20 = vadd.f32 %v534_v15, %v496_v17  ;;  %v511_v21 = vadd.f32 %v1204_v19, %v1120_v13  ;;  %v555_v36 = vsel %vm404_vm0, %v1426_v24, 0.0 }
  0xda   : > { %v505_v22 = vpop.f32.mrf.mxu1 }
  0xdb   : > { %v506_v26 = vadd.f32 %v1120_v13, %v505_v22  ;;  %v552_v27 = vsel %vm404_vm0, %v1423_v20, 0.0  ;;  %v1433_v30 = vadd.f32 %v537_v25, %v511_v21 }
  0xdc   : > { %v1207_v28 = vpop.f32.mrf.mxu1  ;;  %553 = vadd.xlane.f32.xlu0 %v552_v27 }
  0xdd   : > { %v1431_v29 = vadd.f32 %v536_v23, %v506_v26  ;;  %v521_v33 = vadd.f32 %v1207_v28, %v1120_v13  ;;  %v561_v42 = vsel %vm404_vm0, %v1433_v30, 0.0 }
  0xde   : > { %v515_v31 = vpop.f32.mrf.mxu1 }
  0xdf   : > { %v516_v34 = vadd.f32 %v1120_v13, %v515_v31  ;;  %v558_v35 = vsel %vm404_vm0, %v1431_v29, 0.0  ;;  %v1446_v43 = vadd.f32 %v539_v37, %v521_v33  ;;  %v688_v33 = vld [vmem:[%s1661_s6 + $0x18] sm:$0xff] }
  0xe0   : > { %v1210_v38 = vpop.f32.mrf.mxu1  ;;  %559 = vadd.xlane.f32.xlu1 %v558_v35  ;;  %556 = vadd.xlane.f32.xlu0 %v555_v36  ;;  %v686_v35 = vld [vmem:[%s1661_s6 + $0x8] sm:$0xff]  ;;  %v685_v36 = vld [vmem:[%s1661_s6] sm:$0xff] }
  0xe1   : > { %v1441_v39 = vadd.f32 %v538_v32, %v516_v34  ;;  %v531_v44 = vadd.f32 %v1210_v38, %v1120_v13  ;;  %v567_v50 = vsel %vm404_vm0, %v1446_v43, 0.0  ;;  %1211 = vmatprep.subr.mxu1 %v688_v33  ;;  %v687_v34 = vld [vmem:[%s1661_s6 + $0x10] sm:$0xff] }
  0xe2   : > { %v525_v40 = vpop.f32.mrf.mxu1  ;;  %1212 = vmatpush3.msra.mxu1 %v688_v33 }
  0xe3   : > { %v526_v45 = vadd.f32 %v1120_v13, %v525_v40  ;;  %v564_v46 = vsel %vm404_vm0, %v1441_v39, 0.0  ;;  %v1453_v49 = vadd.f32 %v541_v47, %v531_v44  ;;  %1213 = vmatprep.subr.mxu1 %v687_v34 }
  0xe4   : > { %562 = vadd.xlane.f32.xlu1 %v561_v42  ;;  %565 = vadd.xlane.f32.xlu0 %v564_v46 }
  0xe5   : > { %v1451_v48 = vadd.f32 %v540_v41, %v526_v45  ;;  %v573_v52 = vsel %vm404_vm0, %v1453_v49, 0.0  ;;  %1214 = vmatpush3.msra.mxu1 %v687_v34 }
  0xe6   : > { %1215 = vmatprep.subr.mxu1 %v686_v35 }
  0xe7   : > { %v570_v51 = vsel %vm404_vm0, %v1451_v48, 0.0  ;;  %1216 = vmatpush3.msra.mxu1 %v686_v35 }
  0xe8   : > { %568 = vadd.xlane.f32.xlu1 %v567_v50  ;;  %571 = vadd.xlane.f32.xlu0 %v570_v51 }
  0xe9   : > { %1217 = vmatprep.subr.mxu1 %v685_v36 }
  0xea   : > { %1218 = vmatpush3.msra.mxu1 %v685_v36 }
  0xec   : > { %574 = vadd.xlane.f32.xlu1 %v573_v52 }
 0x165   : > { %v554_v53 = vpop.xlane.xlu0 %553 }
 0x166   : > { %v577_v54 = vmul.f32 0.03125, %v554_v53 }
 0x168   : > { %v1462_v55 = vsub.f32 %v1423_v20, %v577_v54 }
 0x169   : > { %v560_v56 = vpop.xlane.xlu1 %559  ;;  %v557_v57 = vpop.xlane.xlu0 %556 }
 0x16a   : > { %v579_v58 = vmul.f32 0.03125, %v560_v56  ;;  %v578_v59 = vmul.f32 0.03125, %v557_v57  ;;  %v593_v60 = vmul.f32 %v1462_v55, %v1462_v55 }
 0x16c   : > { %v1467_v61 = vsub.f32 %v1431_v29, %v579_v58  ;;  %v1470_v62 = vsub.f32 %v1426_v24, %v578_v59  ;;  %v601_v63 = vsel %vm404_vm0, %v593_v60, 0.0 }
 0x16d   : > { %v563_v0 = vpop.xlane.xlu1 %562  ;;  %602 = vadd.xlane.f32.xlu0 %v601_v63  ;;  %v566_v1 = vpop.xlane.xlu0 %565 }
 0x16e   : > { %v580_v2 = vmul.f32 0.03125, %v563_v0  ;;  %v581_v3 = vmul.f32 0.03125, %v566_v1  ;;  %v595_v4 = vmul.f32 %v1467_v61, %v1467_v61  ;;  %v594_v5 = vmul.f32 %v1470_v62, %v1470_v62 }
 0x170   : > { %v1478_v6 = vsub.f32 %v1433_v30, %v580_v2  ;;  %v1481_v7 = vsub.f32 %v1441_v39, %v581_v3  ;;  %v607_v8 = vsel %vm404_vm0, %v595_v4, 0.0  ;;  %v604_v9 = vsel %vm404_vm0, %v594_v5, 0.0  ;;  %v1129_v4 = vld [vmem:[%s1659_s4] ss:$0 sm:$0xff] }
 0x171   : > { %v569_v10 = vpop.xlane.xlu1 %568  ;;  %608 = vadd.xlane.f32.xlu0 %v607_v8  ;;  %605 = vadd.xlane.f32.xlu1 %v604_v9  ;;  %v572_v11 = vpop.xlane.xlu0 %571  ;;  %v1130_v9 = vld [vmem:[%s1660_s5] ss:$0 sm:$0xff] }
 0x172   : > { %v582_v12 = vmul.f32 0.03125, %v569_v10  ;;  %v583_v13 = vmul.f32 0.03125, %v572_v11  ;;  %v596_v14 = vmul.f32 %v1478_v6, %v1478_v6  ;;  %v597_v15 = vmul.f32 %v1481_v7, %v1481_v7 }
 0x174   : > { %v1490_v16 = vsub.f32 %v1446_v43, %v582_v12  ;;  %v1493_v17 = vsub.f32 %v1451_v48, %v583_v13  ;;  %v610_v18 = vsel %vm404_vm0, %v596_v14, 0.0  ;;  %v613_v19 = vsel %vm404_vm0, %v597_v15, 0.0 }
 0x175   : > { %v575_v21 = vpop.xlane.xlu1 %574  ;;  %611 = vadd.xlane.f32.xlu1 %v610_v18  ;;  %614 = vadd.xlane.f32.xlu0 %v613_v19 }
 0x176   : > { %v584_v22 = vmul.f32 0.03125, %v575_v21  ;;  %v598_v23 = vmul.f32 %v1490_v16, %v1490_v16  ;;  %v599_v25 = vmul.f32 %v1493_v17, %v1493_v17 }
 0x178   : > { %v1502_v26 = vsub.f32 %v1453_v49, %v584_v22  ;;  %v616_v27 = vsel %vm404_vm0, %v598_v23, 0.0  ;;  %v619_v28 = vsel %vm404_vm0, %v599_v25, 0.0 }
 0x179   : > { %617 = vadd.xlane.f32.xlu1 %v616_v27  ;;  %620 = vadd.xlane.f32.xlu0 %v619_v28 }
 0x17a   : > { %v600_v31 = vmul.f32 %v1502_v26, %v1502_v26 }
 0x17c   : > { %v622_v32 = vsel %vm404_vm0, %v600_v31, 0.0 }
 0x17d   : > { %623 = vadd.xlane.f32.xlu1 %v622_v32 }
 0x1f6   : > { %v603_v37 = vpop.xlane.xlu0 %602 }
 0x1f7   : > { %v625_v38 = vmul.f32 0.03125, %v603_v37 }
 0x1f9   : > { %v633_v40 = vadd.f32 1e-05, %v625_v38 }
 0x1fa   : > { %v606_v41 = vpop.xlane.xlu1 %605  ;;  %v609_v42 = vpop.xlane.xlu0 %608 }
 0x1fb   : > { %1283 = vrsqrt.f32 %v633_v40  ;;  %v626_v44 = vmul.f32 0.03125, %v606_v41  ;;  %v627_v45 = vmul.f32 0.03125, %v609_v42  ;;  %v911_v42 = vld [vmem:[%s1663_s8 + $0x70] sm:$0xff] }
 0x1fd   : > { %v634_v46 = vadd.f32 1e-05, %v626_v44  ;;  %v635_v47 = vadd.f32 1e-05, %v627_v45  ;;  %v909_v44 = vld [vmem:[%s1663_s8 + $0x60] sm:$0xff]  ;;  %v908_v45 = vld [vmem:[%s1663_s8 + $0x58] sm:$0xff] }
 0x1fe   : > { %v612_v50 = vpop.xlane.xlu1 %611  ;;  %v615_v51 = vpop.xlane.xlu0 %614 }
 0x1ff   : > { %1285 = vrsqrt.f32 %v634_v46  ;;  %v628_v52 = vmul.f32 0.03125, %v612_v50  ;;  %v629_v53 = vmul.f32 0.03125, %v615_v51  ;;  %v907_v46 = vld [vmem:[%s1663_s8 + $0x50] sm:$0xff]  ;;  %v905_v50 = vld [vmem:[%s1663_s8 + $0x40] sm:$0xff]  ;;  %v904_v51 = vld [vmem:[%s1663_s8 + $0x38] sm:$0xff] }
 0x200   : > { %1287 = vrsqrt.f32 %v635_v47  ;;  %v906_v47 = vld [vmem:[%s1663_s8 + $0x48] sm:$0xff] }
 0x201   : > { %v636_v54 = vadd.f32 1e-05, %v628_v52  ;;  %v637_v56 = vadd.f32 1e-05, %v629_v53  ;;  %v903_v52 = vld [vmem:[%s1663_s8 + $0x30] sm:$0xff]  ;;  %v902_v53 = vld [vmem:[%s1663_s8 + $0x28] sm:$0xff] }
 0x202   : > { %v618_v57 = vpop.xlane.xlu1 %617  ;;  %v621_v58 = vpop.xlane.xlu0 %620 }
 0x203   : > { %1289 = vrsqrt.f32 %v636_v54  ;;  %v630_v59 = vmul.f32 0.03125, %v618_v57  ;;  %v631_v60 = vmul.f32 0.03125, %v621_v58  ;;  %v901_v54 = vld [vmem:[%s1663_s8 + $0x20] sm:$0xff]  ;;  %v899_v57 = vld [vmem:[%s1663_s8 + $0x10] sm:$0xff]  ;;  %v898_v58 = vld [vmem:[%s1663_s8 + $0x8] sm:$0xff] }
 0x204   : > { %1291 = vrsqrt.f32 %v637_v56  ;;  %v900_v56 = vld [vmem:[%s1663_s8 + $0x18] sm:$0xff] }
 0x205   : > { %v638_v63 = vadd.f32 1e-05, %v630_v59  ;;  %v639_v0 = vadd.f32 1e-05, %v631_v60  ;;  %v897_v59 = vld [vmem:[%s1663_s8] sm:$0xff] }
 0x206   : > { %v624_v1 = vpop.xlane.xlu1 %623  ;;  %v1131_v60 = vld [vmem:[%s1662_s7] ss:$0 sm:$0xff] }
 0x207   : > { %1293 = vrsqrt.f32 %v638_v63  ;;  %v632_v2 = vmul.f32 0.03125, %v624_v1 }
 0x208   : > { %v1284_v3 = vpop.eup %1283  ;;  %1295 = vrsqrt.f32 %v639_v0 }
 0x209   : > { %v640_v5 = vadd.f32 1e-05, %v632_v2  ;;  %v649_v8 = vmul.f32 %v1284_v3, %v1462_v55 }
 0x20b   : > { %1297 = vrsqrt.f32 %v640_v5  ;;  %v663_v10 = vmul.f32 %v1129_v4, %v649_v8 }
 0x20c   : > { %v1286_v11 = vpop.eup %1285 }
 0x20d   : > { %v1288_v12 = vpop.eup %1287  ;;  %v650_v13 = vmul.f32 %v1286_v11, %v1470_v62  ;;  %v677_v14 = vadd.f32 %v1130_v9, %v663_v10 }
 0x20e   : > { %v651_v15 = vmul.f32 %v1288_v12, %v1467_v61 }
 0x20f   : > { %v664_v18 = vmul.f32 %v1129_v4, %v650_v13  ;;  %1219 = vmatprep.mubr.msk.f32.mxu1 %vm404_vm0, %v677_v14 }
 0x210   : > { %v1290_v19 = vpop.eup %1289  ;;  %v665_v21 = vmul.f32 %v1129_v4, %v651_v15 }
 0x211   : > { %v1292_v22 = vpop.eup %1291  ;;  %v678_v55 = vadd.f32 %v1130_v9, %v664_v18  ;;  %v652_v23 = vmul.f32 %v1290_v19, %v1478_v6 }
 0x212   : > { %v679_v25 = vadd.f32 %v1130_v9, %v665_v21  ;;  %v653_v27 = vmul.f32 %v1292_v22, %v1481_v7 }
 0x213   : > { %1220 = vmatmul.mubr.msk.f32.vlgmr.msra.gmra.mxu1 %vm404_vm0, %v678_v55  ;;  %v666_v28 = vmul.f32 %v1129_v4, %v652_v23 }
 0x214   : > { %v1294_v31 = vpop.eup %1293  ;;  %1222 = vmatprep.mubr.msk.f32.mxu1 %vm404_vm0, %v679_v25  ;;  %v667_v62 = vmul.f32 %v1129_v4, %v653_v27 }
 0x215   : > { %v1296_v61 = vpop.eup %1295  ;;  %v680_v32 = vadd.f32 %v1130_v9, %v666_v28  ;;  %v654_v33 = vmul.f32 %v1294_v31, %v1490_v16 }
 0x216   : > { %v681_v34 = vadd.f32 %v1130_v9, %v667_v62  ;;  %v655_v35 = vmul.f32 %v1296_v61, %v1493_v17  ;;  %v912_v17 = vld [vmem:[%s1663_s8 + $0x78] sm:$0xff] }
 0x217   : > { %1223 = vmatmul.mubr.msk.f32.gmra.mxu1 %vm404_vm0, %v680_v32  ;;  %v668_v6 = vmul.f32 %v1129_v4, %v654_v33  ;;  %1231 = vmatprep.subr.mxu0 %v912_v17 }
 0x218   : > { %v1298_v36 = vpop.eup %1297  ;;  %1225 = vmatprep.mubr.msk.f32.mxu1 %vm404_vm0, %v681_v34  ;;  %v669_v7 = vmul.f32 %v1129_v4, %v655_v35  ;;  %1232 = vmatpush3.msra.mxu0 %v912_v17 }
 0x219   : > { %v682_v37 = vadd.f32 %v1130_v9, %v668_v6  ;;  %v656_v38 = vmul.f32 %v1298_v36, %v1502_v26  ;;  %1233 = vmatprep.subr.mxu0 %v911_v42  ;;  %v910_v26 = vld [vmem:[%s1663_s8 + $0x68] sm:$0xff] }
 0x21a   : > { %v683_v40 = vadd.f32 %v1130_v9, %v669_v7  ;;  %1234 = vmatpush3.msra.mxu0 %v911_v42 }
 0x21b   : > { %1226 = vmatmul.mubr.msk.f32.gmra.mxu1 %vm404_vm0, %v682_v37  ;;  %v670_v41 = vmul.f32 %v1129_v4, %v656_v38  ;;  %1235 = vmatprep.subr.mxu0 %v910_v26 }
 0x21c   : > { %1228 = vmatprep.mubr.msk.f32.mxu1 %vm404_vm0, %v683_v40  ;;  %1236 = vmatpush3.msra.mxu0 %v910_v26 }
 0x21d   : > { %v684_v16 = vadd.f32 %v1130_v9, %v670_v41  ;;  %1237 = vmatprep.subr.mxu0 %v909_v44 }
 0x21e   : > { %1238 = vmatpush3.msra.mxu0 %v909_v44 }
 0x21f   : > { %1229 = vmatmul.mubr.msk.f32.gmra.mxu1 %vm404_vm0, %v684_v16  ;;  %1239 = vmatprep.subr.mxu0 %v908_v45 }
 0x220   : > { %1240 = vmatpush3.msra.mxu0 %v908_v45 }
 0x221   : > { %1241 = vmatprep.subr.mxu0 %v907_v46 }
 0x222   : > { %1242 = vmatpush3.msra.mxu0 %v907_v46 }
 0x223   : > { %1243 = vmatprep.subr.mxu0 %v906_v47 }
 0x224   : > { %1244 = vmatpush3.msra.mxu0 %v906_v47 }
 0x225   : > { %1245 = vmatprep.subr.mxu0 %v905_v50 }
 0x226   : > { %1246 = vmatpush3.msra.mxu0 %v905_v50 }
 0x227   : > { %1247 = vmatprep.subr.mxu0 %v904_v51 }
 0x228   : > { %1248 = vmatpush3.msra.mxu0 %v904_v51 }
 0x229   : > { %1249 = vmatprep.subr.mxu0 %v903_v52 }
 0x22a   : > { %1250 = vmatpush3.msra.mxu0 %v903_v52 }
 0x22b   : > { %1251 = vmatprep.subr.mxu0 %v902_v53 }
 0x22c   : > { %1252 = vmatpush3.msra.mxu0 %v902_v53 }
 0x22d   : > { %1253 = vmatprep.subr.mxu0 %v901_v54 }
 0x22e   : > { %1254 = vmatpush3.msra.mxu0 %v901_v54 }
 0x22f   : > { %1255 = vmatprep.subr.mxu0 %v900_v56 }
 0x230   : > { %1256 = vmatpush3.msra.mxu0 %v900_v56 }
 0x231   : > { %1257 = vmatprep.subr.mxu0 %v899_v57 }
 0x232   : > { %1258 = vmatpush3.msra.mxu0 %v899_v57 }
 0x233   : > { %1259 = vmatprep.subr.mxu0 %v898_v58 }
 0x234   : > { %1260 = vmatpush3.msra.mxu0 %v898_v58 }
 0x235   : > { %1261 = vmatprep.subr.mxu0 %v897_v59 }
 0x236   : > { %1262 = vmatpush3.msra.mxu0 %v897_v59 }
 0x2d3   : > { %v1221_v63 = vpop.f32.mrf.mxu1 }
 0x2d4   : > { %v1594_v0 = vadd.f32 %v1221_v63, %v1131_v60 }
 0x2d5   : > { %v786_v1 = vpop.f32.mrf.mxu1 }
 0x2d6   : > { %v834_v2 = vmul.f32 0.044715, %v1594_v0  ;;  %v787_v3 = vadd.f32 %v1131_v60, %v786_v1 }
 0x2d7   : > { %v1224_v4 = vpop.f32.mrf.mxu1 }
 0x2d8   : > { %v842_v5 = vmul.f32 %v834_v2, %v1594_v0  ;;  %v1598_v8 = vadd.f32 %v1224_v4, %v1131_v60  ;;  %v833_v9 = vmul.f32 0.044715, %v787_v3  ;;  %v825_v4 = vmul.f32 0.5, %v787_v3 }
 0x2d9   : > { %v796_v10 = vpop.f32.mrf.mxu1 }
 0x2da   : > { %v836_v11 = vmul.f32 0.044715, %v1598_v8  ;;  %v1601_v12 = vadd.f32 %v1131_v60, %v796_v10  ;;  %v841_v13 = vmul.f32 %v833_v9, %v787_v3  ;;  %v850_v14 = vmul.f32 %v842_v5, %v1594_v0 }
 0x2db   : > { %v1227_v15 = vpop.f32.mrf.mxu1  ;;  %v826_v9 = vmul.f32 0.5, %v1594_v0 }
 0x2dc   : > { %v844_v18 = vmul.f32 %v836_v11, %v1598_v8  ;;  %v835_v19 = vmul.f32 0.044715, %v1601_v12  ;;  %v1606_v21 = vadd.f32 %v1227_v15, %v1131_v60  ;;  %v849_v22 = vmul.f32 %v841_v13, %v787_v3 }
 0x2dd   : > { %v806_v55 = vpop.f32.mrf.mxu1  ;;  %v858_v23 = vadd.f32 %v850_v14, %v1594_v0 }
 0x2de   : > { %v843_v25 = vmul.f32 %v835_v19, %v1601_v12  ;;  %v838_v27 = vmul.f32 0.044715, %v1606_v21  ;;  %v807_v28 = vadd.f32 %v1131_v60, %v806_v55  ;;  %v857_v31 = vadd.f32 %v849_v22, %v787_v3 }
 0x2df   : > { %v1230_v62 = vpop.f32.mrf.mxu1  ;;  %v866_v61 = vmul.f32 0.7978846, %v858_v23  ;;  %v852_v32 = vmul.f32 %v844_v18, %v1598_v8  ;;  %v827_v18 = vmul.f32 0.5, %v1601_v12  ;;  %v828_v55 = vmul.f32 0.5, %v1598_v8 }
 0x2e0   : > { %v846_v33 = vmul.f32 %v838_v27, %v1606_v21  ;;  %v837_v34 = vmul.f32 0.044715, %v807_v28  ;;  %v1613_v35 = vadd.f32 %v1230_v62, %v1131_v60  ;;  %v865_v6 = vmul.f32 0.7978846, %v857_v31 }
 0x2e1   : > { %v816_v36 = vpop.f32.mrf.mxu1  ;;  %1299 = vtanh.f32 %v866_v61  ;;  %v851_v7 = vmul.f32 %v843_v25, %v1601_v12  ;;  %v860_v37 = vadd.f32 %v852_v32, %v1598_v8  ;;  %v829_v3 = vmul.f32 0.5, %v807_v28 }
 0x2e2   : > { %v845_v38 = vmul.f32 %v837_v34, %v807_v28  ;;  %v840_v40 = vmul.f32 0.044715, %v1613_v35  ;;  %v817_v41 = vadd.f32 %v1131_v60, %v816_v36  ;;  %1301 = vtanh.f32 %v865_v6 }
 0x2e3   : > { %v859_v16 = vadd.f32 %v851_v7, %v1601_v12  ;;  %v868_v17 = vmul.f32 0.7978846, %v860_v37  ;;  %v854_v42 = vmul.f32 %v846_v33, %v1606_v21  ;;  %v830_v32 = vmul.f32 0.5, %v1606_v21  ;;  %v1140_v37 = vld [vmem:[%s1664_s9] ss:$0 sm:$0xff] }
 0x2e4   : > { %v848_v26 = vmul.f32 %v840_v40, %v1613_v35  ;;  %v839_v44 = vmul.f32 0.044715, %v817_v41  ;;  %v853_v45 = vmul.f32 %v845_v38, %v807_v28  ;;  %v831_v34 = vmul.f32 0.5, %v817_v41 }
 0x2e5   : > { %v867_v46 = vmul.f32 0.7978846, %v859_v16  ;;  %1303 = vtanh.f32 %v868_v17  ;;  %v862_v47 = vadd.f32 %v854_v42, %v1606_v21  ;;  %v832_v7 = vmul.f32 0.5, %v1613_v35 }
 0x2e6   : > { %v847_v50 = vmul.f32 %v839_v44, %v817_v41  ;;  %v861_v51 = vadd.f32 %v853_v45, %v807_v28  ;;  %v856_v52 = vmul.f32 %v848_v26, %v1613_v35 }
 0x2e7   : > { %1305 = vtanh.f32 %v867_v46  ;;  %v870_v53 = vmul.f32 0.7978846, %v862_v47 }
 0x2e8   : > { %v869_v54 = vmul.f32 0.7978846, %v861_v51  ;;  %v855_v56 = vmul.f32 %v847_v50, %v817_v41  ;;  %v864_v57 = vadd.f32 %v856_v52, %v1613_v35 }
 0x2e9   : > { %1307 = vtanh.f32 %v870_v53 }
 0x2ea   : > { %1309 = vtanh.f32 %v869_v54  ;;  %v863_v58 = vadd.f32 %v855_v56, %v817_v41  ;;  %v872_v59 = vmul.f32 0.7978846, %v864_v57 }
 0x2ec   : > { %v871_v60 = vmul.f32 0.7978846, %v863_v58  ;;  %1311 = vtanh.f32 %v872_v59 }
 0x2ee   : > { %v1300_v63 = vpop.eup %1299  ;;  %1313 = vtanh.f32 %v871_v60 }
 0x2ef   : > { %v1302_v1 = vpop.eup %1301  ;;  %v882_v2 = vadd.f32 1.0, %v1300_v63 }
 0x2f0   : > { %v881_v5 = vadd.f32 1.0, %v1302_v1 }
 0x2f1   : > { %v890_v13 = vmul.f32 %v882_v2, %v826_v9 }
 0x2f2   : > { %v1304_v10 = vpop.eup %1303  ;;  %v889_v11 = vmul.f32 %v881_v5, %v825_v4 }
 0x2f3   : > { %v884_v15 = vadd.f32 1.0, %v1304_v10 }
 0x2f4   : > { %v1306_v14 = vpop.eup %1305  ;;  %1263 = vmatprep.mubr.f32.mxu0 %v889_v11 }
 0x2f5   : > { %1264 = vmatmul.mubr.f32.vlgmr.msra.gmra.mxu0 %v890_v13  ;;  %v883_v19 = vadd.f32 1.0, %v1306_v14  ;;  %v892_v27 = vmul.f32 %v884_v15, %v828_v55 }
 0x2f6   : > { %v1308_v22 = vpop.eup %1307 }
 0x2f7   : > { %v1310_v23 = vpop.eup %1309  ;;  %v891_v25 = vmul.f32 %v883_v19, %v827_v18  ;;  %v886_v62 = vadd.f32 1.0, %v1308_v22 }
 0x2f8   : > { %v885_v31 = vadd.f32 1.0, %v1310_v23 }
 0x2f9   : > { %v1312_v0 = vpop.eup %1311  ;;  %1266 = vmatprep.mubr.f32.mxu0 %v891_v25  ;;  %v894_v12 = vmul.f32 %v886_v62, %v830_v32 }
 0x2fa   : > { %1267 = vmatmul.mubr.f32.gmra.mxu0 %v892_v27  ;;  %v893_v61 = vmul.f32 %v885_v31, %v829_v3  ;;  %v888_v36 = vadd.f32 1.0, %v1312_v0 }
 0x2fb   : > { %v1314_v33 = vpop.eup %1313 }
 0x2fc   : > { %1269 = vmatprep.mubr.f32.mxu0 %v893_v61  ;;  %v887_v6 = vadd.f32 1.0, %v1314_v33  ;;  %v896_v28 = vmul.f32 %v888_v36, %v832_v7 }
 0x2fe   : > { %1270 = vmatmul.mubr.f32.gmra.mxu0 %v894_v12  ;;  %v895_v8 = vmul.f32 %v887_v6, %v831_v34 }
 0x300   : > { %1272 = vmatprep.mubr.f32.mxu0 %v895_v8 }
 0x302   : > { %1273 = vmatmul.mubr.f32.gmra.mxu0 %v896_v28 }
 0x3b5   : > { %v1265_v38 = vpop.f32.mrf.mxu0 }
 0x3b6   : > { %v992_v21 = vadd.f32 %v1265_v38, %v1140_v37 }
 0x3b7   : > { %v986_v40 = vpop.f32.mrf.mxu0 }
 0x3b8   : > { %v1026_v41 = vadd.f32 %v992_v21, %v1426_v24  ;;  %v987_v16 = vadd.f32 %v1140_v37, %v986_v40 }
 0x3ba   : > { %1034 = vst.msk [vmem:[%s383_s29 + $0x8] sm:$0xff] %vm404_vm0, %v1026_v41  ;;  %v1025_v35 = vadd.f32 %v987_v16, %v1423_v20  ;;  %v1268_v17 = vpop.f32.mrf.mxu0 }
 0x3bb   : > { %v1002_v42 = vadd.f32 %v1268_v17, %v1140_v37 }
 0x3bc   : > { %1033 = vst.msk [vmem:[%s383_s29] sm:$0xff] %vm404_vm0, %v1025_v35  ;;  %v996_v26 = vpop.f32.mrf.mxu0 }
 0x3bd   : > { %v1028_v44 = vadd.f32 %v1002_v42, %v1433_v30  ;;  %v997_v45 = vadd.f32 %v1140_v37, %v996_v26 }
 0x3be   : > { %v1271_v46 = vpop.f32.mrf.mxu0 }
 0x3bf   : > { %1036 = vst.msk [vmem:[%s383_s29 + $0x18] sm:$0xff] %vm404_vm0, %v1028_v44  ;;  %v1027_v47 = vadd.f32 %v997_v45, %v1431_v29  ;;  %v1012_v50 = vadd.f32 %v1271_v46, %v1140_v37 }
 0x3c0   : > { %v1006_v24 = vpop.f32.mrf.mxu0 }
 0x3c1   : > { %1035 = vst.msk [vmem:[%s383_s29 + $0x10] sm:$0xff] %vm404_vm0, %v1027_v47  ;;  %v1030_v51 = vadd.f32 %v1012_v50, %v1446_v43  ;;  %v1007_v20 = vadd.f32 %v1140_v37, %v1006_v24 }
 0x3c2   : > { %v1274_v52 = vpop.f32.mrf.mxu0 }
 0x3c3   : > { %1038 = vst.msk [vmem:[%s383_s29 + $0x28] sm:$0xff] %vm404_vm0, %v1030_v51  ;;  %v1029_v53 = vadd.f32 %v1007_v20, %v1441_v39  ;;  %v1022_v54 = vadd.f32 %v1274_v52, %v1140_v37 }
 0x3c4   : > { %v1016_v30 = vpop.f32.mrf.mxu0 }
 0x3c5   : > { %1037 = vst.msk [vmem:[%s383_s29 + $0x20] sm:$0xff] %vm404_vm0, %v1029_v53  ;;  %v1032_v56 = vadd.f32 %v1022_v54, %v1453_v49  ;;  %v1017_v57 = vadd.f32 %v1140_v37, %v1016_v30 }
 0x3c7   : > { %1040 = vst.msk [vmem:[%s383_s29 + $0x38] sm:$0xff] %vm404_vm0, %v1032_v56  ;;  %v1031_v29 = vadd.f32 %v1017_v57, %v1451_v48 }
 0x3c9   : > { %1039 = vst.msk [vmem:[%s383_s29 + $0x30] sm:$0xff] %vm404_vm0, %v1031_v29 }
 0x3ca PF: > { %s20_s13 = sadd.s32 1, %s1321_s13  }
 0x3cb   : > { %p17_p4 = scmp.ge.s32.totalorder %s20_s13, 4  }
 0x3cd   :  { %19 = sbr.rel (!%p17_p4) target bundleno = 1 (0x1), region = 93 }

// kernel: swin_block_forward.3
= control target key start
LH: loop header
LB: loop body
LE: loop exit
PB: predicated region body
PF: predicated region fallthrough
CT: control target
= control target key end

     0   :  { %s1201_s27 = smov 0   ;;  %s1404_s0 = inlined_call_operand.vmem [shape: f32[128,32], index: 0, kind: input, shape index: {}]   ;;  %s1405_s1 = inlined_call_operand.vmem [shape: f32[1,32], index: 1, kind: input, shape index: {}]   ;;  %s1406_s2 = inlined_call_operand.vmem [shape: f32[1,32], index: 2, kind: input, shape index: {}]   ;;  %s1407_s3 = inlined_call_operand.vmem [shape: f32[32,32], index: 3, kind: input, shape index: {}]   ;;  %s1408_s4 = inlined_call_operand.vmem [shape: f32[32,32], index: 4, kind: input, shape index: {}]   ;;  %s1409_s5 = inlined_call_operand.vmem [shape: f32[32,32], index: 5, kind: input, shape index: {}]   ;;  %s1410_s6 = inlined_call_operand.vmem [shape: f32[128,32], index: 6, kind: output, shape index: {0}]   ;;  %s1411_s7 = inlined_call_operand.vmem [shape: f32[128,32], index: 7, kind: output, shape index: {1}]   ;;  %s1412_s8 = inlined_call_operand.vmem [shape: f32[128,32], index: 8, kind: output, shape index: {2}]  }
   0x1 LB: > { %s979_s28 = sadd.s32 4294967295, %s1154_s27   ;;  %p983_p0 = scmp.ge.s32.totalorder %s1154_s27, 1  ;;  %s1154_s27 = sphi %s1201_s27, %s19_s27  }
   0x2   : > { %p268_p1 = scmp.lt.s32.totalorder %s1154_s27, 3 }
   0x4   : > { %p269_p2 = pnand %p983_p0, %p268_p1 }
   0x5   : > { %s984_s29 = sshll.u32 (!%p269_p2), %s979_s28, 3 }
   0x6   : > { %272 = sbr.rel (%p269_p2) target bundleno = 551 (0x227), region = 44  ;;  %p313_p3 = scmp.lt.s32.totalorder (!%p269_p2), %s984_s29, 15 }
   0xb   : > { %s1414_s29 = smov (!%p313_p3, %s984_s29), 15  ;;  %vm346_vm0 = vcmask 261120   ;;  %v483_v56 = vld [vmem:[%s1407_s3 + $0x18] sm:$0xff]  ;;  %v482_v57 = vld [vmem:[%s1407_s3 + $0x10] sm:$0xff]  ;;  %v481_v58 = vld [vmem:[%s1407_s3 + $0x8] sm:$0xff] }
   0xc   : > { %s1209_s30 = sshll.u32 %s1414_s29, 3  ;;  %1056 = vmatprep.subr.mxu0 %v483_v56  ;;  %1116 = vmatprep.subr.mxu1 %v483_v56  ;;  %v480_v59 = vld [vmem:[%s1407_s3] sm:$0xff]  ;;  %v1278_v60 = vld [vmem:[%s1409_s5 + $0x18] sm:$0xff] }
   0xd   : > { %s316_s11 = scalar_lea.vmem %s1404_s0, %s1209_s30  ;;  %1057 = vmatpush3.msra.mxu0 %v483_v56  ;;  %1120 = vmatpush3.msra.mxu1 %v483_v56  ;;  %v1284_v61 = vld [vmem:[%s1408_s4 + $0x18] sm:$0xff]  ;;  %s322_s22 = scalar_lea.vmem %s1410_s6, %s1209_s30 }
   0xe   : > { %v336_v0 = vld [vmem:[%s316_s11] sm:$0xff]  ;;  %v337_v1 = vld [vmem:[%s316_s11 + $0x8] sm:$0xff]  ;;  %v338_v8 = vld [vmem:[%s316_s11 + $0x10] sm:$0xff]  ;;  %1058 = vmatprep.subr.mxu0 %v482_v57  ;;  %1117 = vmatprep.subr.mxu1 %v482_v57  ;;  %s1358_s25 = scalar_lea.vmem %s1412_s8, %s1209_s30  ;;  %s1368_s29 = scalar_lea.vmem %s1411_s7, %s1209_s30 }
   0xf   : > { %v340_v2 = vld [vmem:[%s316_s11 + $0x20] sm:$0xff]  ;;  %v347_v3 = vsel %vm346_vm0, %v336_v0, 0.0  ;;  %v350_v4 = vsel %vm346_vm0, %v337_v1, 0.0  ;;  %v341_v5 = vld [vmem:[%s316_s11 + $0x28] sm:$0xff]  ;;  %v342_v9 = vld [vmem:[%s316_s11 + $0x30] sm:$0xff]  ;;  %v353_v10 = vsel %vm346_vm0, %v338_v8, 0.0  ;;  %1059 = vmatpush3.msra.mxu0 %v482_v57  ;;  %1121 = vmatpush3.msra.mxu1 %v482_v57 }
  0x10   : > { %348 = vadd.xlane.f32.xlu0 %v347_v3  ;;  %351 = vadd.xlane.f32.xlu1 %v350_v4  ;;  %v359_v6 = vsel %vm346_vm0, %v340_v2, 0.0  ;;  %v362_v7 = vsel %vm346_vm0, %v341_v5, 0.0  ;;  %v365_v11 = vsel %vm346_vm0, %v342_v9, 0.0  ;;  %v339_v12 = vld [vmem:[%s316_s11 + $0x18] sm:$0xff]  ;;  %v622_v57 = vld [vmem:[%s1408_s4 + $0x8] sm:$0xff] }
  0x11   : > { %v343_v13 = vld [vmem:[%s316_s11 + $0x38] sm:$0xff]  ;;  %v356_v14 = vsel %vm346_vm0, %v339_v12, 0.0  ;;  %1060 = vmatprep.subr.mxu0 %v481_v58  ;;  %1118 = vmatprep.subr.mxu1 %v481_v58 }
  0x12   : > { %v368_v15 = vsel %vm346_vm0, %v343_v13, 0.0  ;;  %1061 = vmatpush3.msra.mxu0 %v481_v58  ;;  %1122 = vmatpush3.msra.mxu1 %v481_v58 }
  0x13   : > { %1062 = vmatprep.subr.mxu0 %v480_v59  ;;  %1119 = vmatprep.subr.mxu1 %v480_v59 }
  0x14   : > { %360 = vadd.xlane.f32.xlu0 %v359_v6  ;;  %363 = vadd.xlane.f32.xlu1 %v362_v7 }
  0x15   : > { %1063 = vmatpush3.msra.mxu0 %v480_v59  ;;  %1123 = vmatpush3.msra.mxu1 %v480_v59 }
  0x16   : > { %1096 = vmatprep.subr.mxu0 %v1278_v60  ;;  %1076 = vmatprep.subr.mxu1 %v1284_v61 }
  0x18   : > { %354 = vadd.xlane.f32.xlu0 %v353_v10  ;;  %366 = vadd.xlane.f32.xlu1 %v365_v11 }
  0x1c   : > { %357 = vadd.xlane.f32.xlu0 %v356_v14  ;;  %369 = vadd.xlane.f32.xlu1 %v368_v15 }
  0x99   : > { %v349_v16 = vpop.xlane.xlu0 %348  ;;  %v352_v17 = vpop.xlane.xlu1 %351 }
  0x9a   : > { %v372_v18 = vmul.f32 0.03125, %v349_v16  ;;  %v373_v19 = vmul.f32 0.03125, %v352_v17 }
  0x9c   : > { %v1223_v20 = vsub.f32 %v336_v0, %v372_v18  ;;  %v1225_v21 = vsub.f32 %v337_v1, %v373_v19 }
  0x9d   : > { %v361_v22 = vpop.xlane.xlu0 %360  ;;  %v364_v23 = vpop.xlane.xlu1 %363 }
  0x9e   : > { %v376_v24 = vmul.f32 0.03125, %v361_v22  ;;  %v377_v25 = vmul.f32 0.03125, %v364_v23  ;;  %v388_v26 = vmul.f32 %v1223_v20, %v1223_v20  ;;  %v389_v27 = vmul.f32 %v1225_v21, %v1225_v21 }
  0xa0   : > { %v1231_v28 = vsub.f32 %v340_v2, %v376_v24  ;;  %v1233_v29 = vsub.f32 %v341_v5, %v377_v25  ;;  %v396_v30 = vsel %vm346_vm0, %v388_v26, 0.0  ;;  %v399_v33 = vsel %vm346_vm0, %v389_v27, 0.0  ;;  %v992_v24 = vld [vmem:[%s1405_s1] ss:$0 sm:$0xff] }
  0xa1   : > { %397 = vadd.xlane.f32.xlu0 %v396_v30  ;;  %v355_v31 = vpop.xlane.xlu0 %354  ;;  %v367_v32 = vpop.xlane.xlu1 %366  ;;  %v993_v27 = vld [vmem:[%s1406_s2] ss:$0 sm:$0xff] }
  0xa2   : > { %v374_v34 = vmul.f32 0.03125, %v355_v31  ;;  %v378_v35 = vmul.f32 0.03125, %v367_v32  ;;  %v392_v36 = vmul.f32 %v1231_v28, %v1231_v28  ;;  %v393_v37 = vmul.f32 %v1233_v29, %v1233_v29 }
  0xa4   : > { %v1241_v38 = vsub.f32 %v338_v8, %v374_v34  ;;  %v1243_v39 = vsub.f32 %v342_v9, %v378_v35  ;;  %v408_v40 = vsel %vm346_vm0, %v392_v36, 0.0  ;;  %v411_v43 = vsel %vm346_vm0, %v393_v37, 0.0 }
  0xa5   : > { %400 = vadd.xlane.f32.xlu0 %v399_v33  ;;  %409 = vadd.xlane.f32.xlu1 %v408_v40  ;;  %v358_v41 = vpop.xlane.xlu0 %357  ;;  %v370_v42 = vpop.xlane.xlu1 %369 }
  0xa6   : > { %v375_v44 = vmul.f32 0.03125, %v358_v41  ;;  %v379_v45 = vmul.f32 0.03125, %v370_v42  ;;  %v390_v46 = vmul.f32 %v1241_v38, %v1241_v38  ;;  %v394_v47 = vmul.f32 %v1243_v39, %v1243_v39 }
  0xa8   : > { %v1251_v48 = vsub.f32 %v339_v12, %v375_v44  ;;  %v1253_v49 = vsub.f32 %v343_v13, %v379_v45  ;;  %v402_v50 = vsel %vm346_vm0, %v390_v46, 0.0  ;;  %v414_v51 = vsel %vm346_vm0, %v394_v47, 0.0 }
  0xa9   : > { %412 = vadd.xlane.f32.xlu1 %v411_v43  ;;  %403 = vadd.xlane.f32.xlu0 %v402_v50 }
  0xaa   : > { %v391_v52 = vmul.f32 %v1251_v48, %v1251_v48  ;;  %v395_v53 = vmul.f32 %v1253_v49, %v1253_v49 }
  0xac   : > { %v405_v54 = vsel %vm346_vm0, %v391_v52, 0.0  ;;  %v417_v55 = vsel %vm346_vm0, %v395_v53, 0.0  ;;  %v739_v52 = vld [vmem:[%s1409_s5 + $0x8] sm:$0xff]  ;;  %v623_v53 = vld [vmem:[%s1408_s4 + $0x10] sm:$0xff] }
  0xad   : > { %415 = vadd.xlane.f32.xlu1 %v414_v51  ;;  %406 = vadd.xlane.f32.xlu0 %v405_v54 }
  0xb1   : > { %418 = vadd.xlane.f32.xlu1 %v417_v55 }
 0x12a   : > { %v398_v62 = vpop.xlane.xlu0 %397 }
 0x12b   : > { %v420_v63 = vmul.f32 0.03125, %v398_v62 }
 0x12d   : > { %v428_v0 = vadd.f32 1e-05, %v420_v63 }
 0x12e   : > { %v410_v1 = vpop.xlane.xlu1 %409  ;;  %v401_v2 = vpop.xlane.xlu0 %400 }
 0x12f   : > { %1132 = vrsqrt.f32 %v428_v0  ;;  %v424_v3 = vmul.f32 0.03125, %v410_v1  ;;  %v421_v4 = vmul.f32 0.03125, %v401_v2 }
 0x131   : > { %v432_v5 = vadd.f32 1e-05, %v424_v3  ;;  %v429_v6 = vadd.f32 1e-05, %v421_v4 }
 0x132   : > { %v413_v7 = vpop.xlane.xlu1 %412  ;;  %v404_v8 = vpop.xlane.xlu0 %403 }
 0x133   : > { %1134 = vrsqrt.f32 %v432_v5  ;;  %v425_v9 = vmul.f32 0.03125, %v413_v7  ;;  %v422_v10 = vmul.f32 0.03125, %v404_v8 }
 0x134   : > { %1136 = vrsqrt.f32 %v429_v6 }
 0x135   : > { %v433_v11 = vadd.f32 1e-05, %v425_v9  ;;  %v430_v12 = vadd.f32 1e-05, %v422_v10 }
 0x136   : > { %v416_v13 = vpop.xlane.xlu1 %415  ;;  %v407_v14 = vpop.xlane.xlu0 %406 }
 0x137   : > { %1138 = vrsqrt.f32 %v433_v11  ;;  %v426_v15 = vmul.f32 0.03125, %v416_v13  ;;  %v423_v16 = vmul.f32 0.03125, %v407_v14 }
 0x138   : > { %1140 = vrsqrt.f32 %v430_v12 }
 0x139   : > { %v434_v17 = vadd.f32 1e-05, %v426_v15  ;;  %v431_v18 = vadd.f32 1e-05, %v423_v16 }
 0x13a   : > { %v419_v19 = vpop.xlane.xlu1 %418 }
 0x13b   : > { %1142 = vrsqrt.f32 %v434_v17  ;;  %v427_v22 = vmul.f32 0.03125, %v419_v19 }
 0x13c   : > { %v1133_v23 = vpop.eup %1132  ;;  %1144 = vrsqrt.f32 %v431_v18 }
 0x13d   : > { %v435_v25 = vadd.f32 1e-05, %v427_v22  ;;  %v444_v26 = vmul.f32 %v1133_v23, %v1223_v20 }
 0x13f   : > { %1146 = vrsqrt.f32 %v435_v25  ;;  %v458_v30 = vmul.f32 %v992_v24, %v444_v26 }
 0x140   : > { %v1135_v31 = vpop.eup %1134 }
 0x141   : > { %v1137_v32 = vpop.eup %1136  ;;  %v472_v33 = vadd.f32 %v993_v27, %v458_v30  ;;  %v448_v34 = vmul.f32 %v1135_v31, %v1231_v28  ;;  %v740_v28 = vld [vmem:[%s1409_s5 + $0x10] sm:$0xff] }
 0x142   : > { %v445_v35 = vmul.f32 %v1137_v32, %v1225_v21 }
 0x143   : > { %1064 = vmatprep.mubr.msk.f32.mxu0 %vm346_vm0, %v472_v33  ;;  %v462_v36 = vmul.f32 %v992_v24, %v448_v34 }
 0x144   : > { %v1139_v37 = vpop.eup %1138  ;;  %v459_v40 = vmul.f32 %v992_v24, %v445_v35 }
 0x145   : > { %v1141_v41 = vpop.eup %1140  ;;  %v476_v20 = vadd.f32 %v993_v27, %v462_v36  ;;  %v449_v42 = vmul.f32 %v1139_v37, %v1233_v29 }
 0x146   : > { %v473_v43 = vadd.f32 %v993_v27, %v459_v40  ;;  %v446_v44 = vmul.f32 %v1141_v41, %v1241_v38 }
 0x147   : > { %1070 = vmatprep.mubr.msk.f32.mxu1 %vm346_vm0, %v476_v20  ;;  %v463_v45 = vmul.f32 %v992_v24, %v449_v42 }
 0x148   : > { %v1143_v21 = vpop.eup %1142  ;;  %1065 = vmatmul.mubr.msk.f32.vlgmr.msra.gmra.mxu0 %vm346_vm0, %v473_v43  ;;  %v460_v46 = vmul.f32 %v992_v24, %v446_v44 }
 0x149   : > { %v1145_v47 = vpop.eup %1144  ;;  %v477_v50 = vadd.f32 %v993_v27, %v463_v45  ;;  %1097 = vmatpush3.msra.mxu0 %v1278_v60  ;;  %v450_v29 = vmul.f32 %v1143_v21, %v1243_v39 }
 0x14a   : > { %v474_v51 = vadd.f32 %v993_v27, %v460_v46  ;;  %1098 = vmatprep.subr.mxu0 %v740_v28  ;;  %v447_v38 = vmul.f32 %v1145_v47, %v1251_v48  ;;  %v738_v48 = vld [vmem:[%s1409_s5] sm:$0xff] }
 0x14b   : > { %1071 = vmatmul.mubr.msk.f32.vlgmr.msra.gmra.mxu1 %vm346_vm0, %v477_v50  ;;  %1099 = vmatpush3.msra.mxu0 %v740_v28  ;;  %v464_v54 = vmul.f32 %v992_v24, %v450_v29 }
 0x14c   : > { %v1147_v55 = vpop.eup %1146  ;;  %1067 = vmatprep.mubr.msk.f32.mxu0 %vm346_vm0, %v474_v51  ;;  %v461_v39 = vmul.f32 %v992_v24, %v447_v38  ;;  %1077 = vmatpush3.msra.mxu1 %v1284_v61  ;;  %v621_v61 = vld [vmem:[%s1408_s4] sm:$0xff] }
 0x14d   : > { %v478_v56 = vadd.f32 %v993_v27, %v464_v54  ;;  %1100 = vmatprep.subr.mxu0 %v739_v52  ;;  %1078 = vmatprep.subr.mxu1 %v623_v53  ;;  %v451_v58 = vmul.f32 %v1147_v55, %v1253_v49 }
 0x14e   : > { %v475_v59 = vadd.f32 %v993_v27, %v461_v39  ;;  %1101 = vmatpush3.msra.mxu0 %v739_v52  ;;  %1079 = vmatpush3.msra.mxu1 %v623_v53 }
 0x14f   : > { %1073 = vmatprep.mubr.msk.f32.mxu1 %vm346_vm0, %v478_v56  ;;  %1102 = vmatprep.subr.mxu0 %v738_v48  ;;  %v465_v60 = vmul.f32 %v992_v24, %v451_v58 }
 0x150   : > { %1068 = vmatmul.mubr.msk.f32.gmra.mxu0 %vm346_vm0, %v475_v59  ;;  %1080 = vmatprep.subr.mxu1 %v622_v57 }
 0x151   : > { %1104 = vmatprep.mubr.msk.f32.mxu0 %vm346_vm0, %v472_v33  ;;  %1103 = vmatpush3.msra.mxu0 %v738_v48  ;;  %v479_v62 = vadd.f32 %v993_v27, %v465_v60 }
 0x152   : > { %1081 = vmatpush3.msra.mxu1 %v622_v57 }
 0x153   : > { %1074 = vmatmul.mubr.msk.f32.gmra.mxu1 %vm346_vm0, %v479_v62  ;;  %1082 = vmatprep.subr.mxu1 %v621_v61 }
 0x154   : > { %1105 = vmatmul.mubr.msk.f32.vlgmr.msra.gmra.mxu0 %vm346_vm0, %v473_v43  ;;  %1084 = vmatprep.mubr.msk.f32.mxu1 %vm346_vm0, %v472_v33 }
 0x155   : > { %1107 = vmatprep.mubr.msk.f32.mxu0 %vm346_vm0, %v474_v51  ;;  %1083 = vmatpush3.msra.mxu1 %v621_v61 }
 0x157   : > { %1085 = vmatmul.mubr.msk.f32.vlgmr.msra.gmra.mxu1 %vm346_vm0, %v473_v43 }
 0x158   : > { %1108 = vmatmul.mubr.msk.f32.gmra.mxu0 %vm346_vm0, %v475_v59  ;;  %1087 = vmatprep.mubr.msk.f32.mxu1 %vm346_vm0, %v474_v51 }
 0x159   : > { %1110 = vmatprep.mubr.msk.f32.mxu0 %vm346_vm0, %v476_v20 }
 0x15b   : > { %1088 = vmatmul.mubr.msk.f32.gmra.mxu1 %vm346_vm0, %v475_v59 }
 0x15c   : > { %1111 = vmatmul.mubr.msk.f32.gmra.mxu0 %vm346_vm0, %v477_v50  ;;  %1090 = vmatprep.mubr.msk.f32.mxu1 %vm346_vm0, %v476_v20 }
 0x15d   : > { %1113 = vmatprep.mubr.msk.f32.mxu0 %vm346_vm0, %v478_v56 }
 0x15f   : > { %1091 = vmatmul.mubr.msk.f32.gmra.mxu1 %vm346_vm0, %v477_v50 }
 0x160   : > { %1114 = vmatmul.mubr.msk.f32.gmra.mxu0 %vm346_vm0, %v479_v62  ;;  %1093 = vmatprep.mubr.msk.f32.mxu1 %vm346_vm0, %v478_v56 }
 0x163   : > { %1094 = vmatmul.mubr.msk.f32.gmra.mxu1 %vm346_vm0, %v479_v62 }
 0x208   : > { %v1066_v49 = vpop.f32.mrf.mxu0 }
 0x209   : > { %614 = vst.msk [vmem:[%s322_s22 + $0x8] sm:$0xff] %vm346_vm0, %v1066_v49 }
 0x20a   : > { %v574_v63 = vpop.f32.mrf.mxu0 }
 0x20b   : > { %613 = vst.msk [vmem:[%s322_s22] sm:$0xff] %vm346_vm0, %v574_v63  ;;  %v1072_v0 = vpop.f32.mrf.mxu1 }
 0x20c   : > { %618 = vst.msk [vmem:[%s322_s22 + $0x28] sm:$0xff] %vm346_vm0, %v1072_v0 }
 0x20d   : > { %v594_v1 = vpop.f32.mrf.mxu1 }
 0x20e   : > { %617 = vst.msk [vmem:[%s322_s22 + $0x20] sm:$0xff] %vm346_vm0, %v594_v1 }
 0x210   : > { %v1069_v2 = vpop.f32.mrf.mxu0 }
 0x211   : > { %616 = vst.msk [vmem:[%s322_s22 + $0x18] sm:$0xff] %vm346_vm0, %v1069_v2 }
 0x212   : > { %v584_v3 = vpop.f32.mrf.mxu0 }
 0x213   : > { %615 = vst.msk [vmem:[%s322_s22 + $0x10] sm:$0xff] %vm346_vm0, %v584_v3  ;;  %v1075_v4 = vpop.f32.mrf.mxu1 }
 0x214   : > { %620 = vst.msk [vmem:[%s322_s22 + $0x38] sm:$0xff] %vm346_vm0, %v1075_v4  ;;  %v1106_v5 = vpop.f32.mrf.mxu0 }
 0x215   : > { %848 = vst.msk [vmem:[%s1358_s25 + $0x8] sm:$0xff] %vm346_vm0, %v1106_v5  ;;  %v604_v6 = vpop.f32.mrf.mxu1 }
 0x216   : > { %619 = vst.msk [vmem:[%s322_s22 + $0x30] sm:$0xff] %vm346_vm0, %v604_v6  ;;  %v808_v7 = vpop.f32.mrf.mxu0 }
 0x217   : > { %847 = vst.msk [vmem:[%s1358_s25] sm:$0xff] %vm346_vm0, %v808_v7  ;;  %v1086_v8 = vpop.f32.mrf.mxu1 }
 0x218   : > { %731 = vst.msk [vmem:[%s1368_s29 + $0x8] sm:$0xff] %vm346_vm0, %v1086_v8  ;;  %v1109_v9 = vpop.f32.mrf.mxu0 }
 0x219   : > { %850 = vst.msk [vmem:[%s1358_s25 + $0x18] sm:$0xff] %vm346_vm0, %v1109_v9  ;;  %v691_v10 = vpop.f32.mrf.mxu1 }
 0x21a   : > { %730 = vst.msk [vmem:[%s1368_s29] sm:$0xff] %vm346_vm0, %v691_v10  ;;  %v818_v11 = vpop.f32.mrf.mxu0 }
 0x21b   : > { %849 = vst.msk [vmem:[%s1358_s25 + $0x10] sm:$0xff] %vm346_vm0, %v818_v11  ;;  %v1089_v12 = vpop.f32.mrf.mxu1 }
 0x21c   : > { %733 = vst.msk [vmem:[%s1368_s29 + $0x18] sm:$0xff] %vm346_vm0, %v1089_v12  ;;  %v1112_v13 = vpop.f32.mrf.mxu0 }
 0x21d   : > { %852 = vst.msk [vmem:[%s1358_s25 + $0x28] sm:$0xff] %vm346_vm0, %v1112_v13  ;;  %v701_v14 = vpop.f32.mrf.mxu1 }
 0x21e   : > { %732 = vst.msk [vmem:[%s1368_s29 + $0x10] sm:$0xff] %vm346_vm0, %v701_v14  ;;  %v828_v15 = vpop.f32.mrf.mxu0 }
 0x21f   : > { %851 = vst.msk [vmem:[%s1358_s25 + $0x20] sm:$0xff] %vm346_vm0, %v828_v15  ;;  %v1092_v16 = vpop.f32.mrf.mxu1 }
 0x220   : > { %735 = vst.msk [vmem:[%s1368_s29 + $0x28] sm:$0xff] %vm346_vm0, %v1092_v16  ;;  %v1115_v17 = vpop.f32.mrf.mxu0 }
 0x221   : > { %854 = vst.msk [vmem:[%s1358_s25 + $0x38] sm:$0xff] %vm346_vm0, %v1115_v17  ;;  %v711_v18 = vpop.f32.mrf.mxu1 }
 0x222   : > { %734 = vst.msk [vmem:[%s1368_s29 + $0x20] sm:$0xff] %vm346_vm0, %v711_v18  ;;  %v838_v19 = vpop.f32.mrf.mxu0 }
 0x223   : > { %853 = vst.msk [vmem:[%s1358_s25 + $0x30] sm:$0xff] %vm346_vm0, %v838_v19  ;;  %v1095_v22 = vpop.f32.mrf.mxu1 }
 0x224   : > { %737 = vst.msk [vmem:[%s1368_s29 + $0x38] sm:$0xff] %vm346_vm0, %v1095_v22 }
 0x225   : > { %v721_v23 = vpop.f32.mrf.mxu1 }
 0x226   : > { %736 = vst.msk [vmem:[%s1368_s29 + $0x30] sm:$0xff] %vm346_vm0, %v721_v23 }
 0x227 PF: > { %s19_s27 = sadd.s32 1, %s1154_s27  }
 0x228   : > { %p16_p4 = scmp.ge.s32.totalorder %s19_s27, 4  }
 0x22a   :  { %18 = sbr.rel (!%p16_p4) target bundleno = 1 (0x1), region = 98 }

// kernel: swin_block_forward.4
= control target key start
LH: loop header
LB: loop body
LE: loop exit
PB: predicated region body
PF: predicated region fallthrough
CT: control target
= control target key end

     0   :  { %s4547_s15 = smov 0   ;;  %s4549_s16 = smov 0   ;;  %s5459_s0 = inlined_call_operand.vmem [shape: f32[2,4,16,32], index: 0, kind: input, shape index: {}]   ;;  %s5460_s1 = inlined_call_operand.vmem [shape: f32[2,4,16,32], index: 1, kind: input, shape index: {}]   ;;  %s5461_s2 = inlined_call_operand.vmem [shape: f32[2,4,16,32], index: 2, kind: input, shape index: {}]   ;;  %s5462_s3 = inlined_call_operand.vmem [shape: f32[4,16,16], index: 3, kind: input, shape index: {}]   ;;  %s5463_s4 = inlined_call_operand.vmem [shape: f32[2,4,16,32], index: 4, kind: output, shape index: {}]  }
   0x1   :  { %s4551_s17 = smov 0  }
   0x2 LB: > { %s23_s18 = sadd.s32 1, %s4510_s16  ;;  %p3867_p0 = scmp.ge.s32.totalorder %s4514_s17, 1  ;;  %s4514_s17 = sphi %s4551_s17, %s14_s17   ;;  %s4510_s16 = sphi %s4549_s16, %s5480_s16   ;;  %s4506_s15 = sphi %s4547_s15, %s5479_s15  }
   0x3   : > { %p24_p1 = scmp.ge.s32.totalorder %s23_s18, 2  ;;  %p232_p2 = scmp.lt.s32.totalorder %s4514_s17, 3 }
   0x5   : > { %s5482_s18 = smov (%p24_p1, %s23_s18), 0  ;;  %p233_p3 = pnand %p3867_p0, %p232_p2 }
   0x7   : > { %236 = sbr.rel (%p233_p3) target bundleno = 1053 (0x41d), region = 36 }
   0xc   : > { %p295_p4 = scmp.lt.s32.totalorder %s4506_s15, 1  ;;  %vm561_vm0 = vcmask 64512   ;;  %s4516_s26 = smov 120   ;;  %vm1930_vm1 = vcmask 130048   ;;  %vm3691_vm2 = vcmask 195584   ;;  %vm3700_vm3 = vcmask 261120  }
   0xd   : > { %s4517_s27 = smov 112   ;;  %s4518_s28 = smov 104  }
   0xe   : > { %s5484_s15 = smov (!%p295_p4, %s4506_s15), 1 }
   0xf   : > { %s4565_s19 = sshll.u32 %s5484_s15, 6 }
  0x10   : > { %s4571_s22 = scalar_lea.vmem %s5460_s1, %s4565_s19  ;;  %s4577_s25 = scalar_lea.vmem %s5459_s0, %s4565_s19 }
  0x11   : > { %v4580_v0 = vld [vmem:[%s4571_s22 + $0x8] sm:$0xff]  ;;  %v4583_v1 = vld [vmem:[%s4571_s22] sm:$0xff]  ;;  %v4586_v2 = vld [vmem:[%s4571_s22 + $0x18] sm:$0xff]  ;;  %s4716_s5 = scalar_lea.vmem %s5461_s2, %s4565_s19 }
  0x12   : > { %427 = vrot.lane.b32.xlu0 %v4580_v0, %s4516_s26  ;;  %4106 = vmatprep.subr.msk.mxu0 %vm561_vm0, %v4580_v0  ;;  %v4593_v3 = vld [vmem:[%s4577_s25] sm:$0xff]  ;;  %v4602_v4 = vld [vmem:[%s4571_s22 + $0x10] sm:$0xff]  ;;  %v4611_v5 = vld [vmem:[%s4571_s22 + $0x28] sm:$0xff] }
  0x13   : > { %425 = vrot.lane.b32.xlu1 %v4583_v1, %s4516_s26  ;;  %4107 = vmatpush3.xpose.msk.msra.mxu0 %vm561_vm0, %v4580_v0  ;;  %v4614_v6 = vld [vmem:[%s4577_s25 + $0x10] sm:$0xff]  ;;  %v346_v7 = vld [vmem:[%s4577_s25 + $0x8] sm:$0xff]  ;;  %v348_v8 = vld [vmem:[%s4577_s25 + $0x18] sm:$0xff] }
  0x14   : > { %4113 = vmatprep.subr.msk.mxu1 %vm561_vm0, %v4586_v2  ;;  %4108 = vmatprep.subr.msk.mxu0 %vm561_vm0, %v4583_v1  ;;  %v416_v9 = vld [vmem:[%s4571_s22 + $0x38] sm:$0xff]  ;;  %v413_v10 = vld [vmem:[%s4571_s22 + $0x20] sm:$0xff]  ;;  %v415_v12 = vld [vmem:[%s4571_s22 + $0x30] sm:$0xff] }
  0x15   : > { %4114 = vmatpush3.xpose.msk.msra.mxu1 %vm561_vm0, %v4586_v2  ;;  %4110 = vmatprep.mubr.msk.f32.mxu0 %vm561_vm0, %v4593_v3  ;;  %v349_v11 = vld [vmem:[%s4577_s25 + $0x20] sm:$0xff]  ;;  %v351_v13 = vld [vmem:[%s4577_s25 + $0x30] sm:$0xff]  ;;  %v350_v14 = vld [vmem:[%s4577_s25 + $0x28] sm:$0xff] }
  0x16   : > { %431 = vrot.lane.b32.xlu0 %v4586_v2, %s4516_s26  ;;  %4115 = vmatprep.subr.msk.mxu1 %vm561_vm0, %v4602_v4  ;;  %v352_v15 = vld [vmem:[%s4577_s25 + $0x38] sm:$0xff]  ;;  %v4724_v17 = vld [vmem:[%s4716_s5 + $0x8] sm:$0xff]  ;;  %v4734_v19 = vld [vmem:[%s4716_s5] sm:$0xff] }
  0x17   : > { %429 = vrot.lane.b32.xlu1 %v4602_v4, %s4516_s26  ;;  %4109 = vmatpush3.xpose.msk.msra.mxu0 %vm561_vm0, %v4583_v1  ;;  %v4721_v16 = vld [vmem:[%s4716_s5 + $0x18] sm:$0xff]  ;;  %v4731_v18 = vld [vmem:[%s4716_s5 + $0x28] sm:$0xff]  ;;  %v477_v20 = vld [vmem:[%s4716_s5 + $0x20] sm:$0xff] }
  0x18   : > { %4120 = vmatprep.subr.msk.mxu0 %vm561_vm0, %v4611_v5  ;;  %4117 = vmatprep.mubr.msk.f32.mxu1 %vm561_vm0, %v4614_v6  ;;  %v4742_v21 = vld [vmem:[%s4716_s5 + $0x10] sm:$0xff]  ;;  %v4748_v22 = vld [vmem:[%s4716_s5 + $0x38] sm:$0xff] }
  0x19   : > { %4116 = vmatpush3.xpose.msk.msra.mxu1 %vm561_vm0, %v4602_v4  ;;  %v479_v23 = vld [vmem:[%s4716_s5 + $0x30] sm:$0xff] }
  0x1a   : > { %361 = vrot.lane.b32.xlu0 %v4593_v3, %s4516_s26  ;;  %4111 = vmatmul.mubr.msk.f32.vlgmr.msra.gmra.mxu0 %vm561_vm0, %v346_v7 }
  0x1b   : > { %365 = vrot.lane.b32.xlu1 %v4614_v6, %s4516_s26  ;;  %4121 = vmatpush3.xpose.msk.msra.mxu0 %vm561_vm0, %v4611_v5 }
  0x1c   : > { %4118 = vmatmul.mubr.msk.f32.vlgmr.msra.gmra.mxu1 %vm561_vm0, %v348_v8  ;;  %4127 = vmatprep.subr.msk.mxu1 %vm561_vm0, %v416_v9 }
  0x1d   : > { %4122 = vmatprep.subr.msk.mxu0 %vm561_vm0, %v413_v10  ;;  %4128 = vmatpush3.xpose.msk.msra.mxu1 %vm561_vm0, %v416_v9 }
  0x1e   : > { %435 = vrot.lane.b32.xlu0 %v4611_v5, %s4516_s26  ;;  %4124 = vmatprep.mubr.msk.f32.mxu0 %vm561_vm0, %v349_v11 }
  0x1f   : > { %439 = vrot.lane.b32.xlu1 %v416_v9, %s4516_s26  ;;  %4123 = vmatpush3.xpose.msk.msra.mxu0 %vm561_vm0, %v413_v10 }
  0x20   : > { %4129 = vmatprep.subr.msk.mxu1 %vm561_vm0, %v415_v12  ;;  %4131 = vmatprep.mubr.msk.f32.mxu1 %vm561_vm0, %v351_v13 }
  0x21   : > { %4130 = vmatpush3.xpose.msk.msra.mxu1 %vm561_vm0, %v415_v12 }
  0x22   : > { %363 = vrot.lane.b32.xlu0 %v346_v7, %s4516_s26  ;;  %4125 = vmatmul.mubr.msk.f32.vlgmr.msra.gmra.mxu0 %vm561_vm0, %v350_v14 }
  0x23   : > { %367 = vrot.lane.b32.xlu1 %v348_v8, %s4516_s26 }
  0x24   : > { %4132 = vmatmul.mubr.msk.f32.vlgmr.msra.gmra.mxu1 %vm561_vm0, %v352_v15 }
  0x26   : > { %433 = vrot.lane.b32.xlu0 %v413_v10, %s4516_s26 }
  0x27   : > { %437 = vrot.lane.b32.xlu1 %v415_v12, %s4516_s26 }
  0x2a   : > { %369 = vrot.lane.b32.xlu0 %v349_v11, %s4516_s26 }
  0x2b   : > { %373 = vrot.lane.b32.xlu1 %v351_v13, %s4516_s26 }
  0x2e   : > { %443 = vrot.lane.b32.xlu0 %v4580_v0, %s4517_s27 }
  0x2f   : > { %447 = vrot.lane.b32.xlu1 %v4586_v2, %s4517_s27 }
  0x32   : > { %371 = vrot.lane.b32.xlu0 %v350_v14, %s4516_s26 }
  0x33   : > { %375 = vrot.lane.b32.xlu1 %v352_v15, %s4516_s26 }
  0x36   : > { %441 = vrot.lane.b32.xlu0 %v4583_v1, %s4517_s27 }
  0x37   : > { %445 = vrot.lane.b32.xlu1 %v4602_v4, %s4517_s27 }
  0x3a   : > { %377 = vrot.lane.b32.xlu0 %v4593_v3, %s4517_s27 }
  0x3b   : > { %381 = vrot.lane.b32.xlu1 %v4614_v6, %s4517_s27 }
  0x3e   : > { %451 = vrot.lane.b32.xlu0 %v4611_v5, %s4517_s27 }
  0x3f   : > { %455 = vrot.lane.b32.xlu1 %v416_v9, %s4517_s27 }
  0x42   : > { %379 = vrot.lane.b32.xlu0 %v346_v7, %s4517_s27 }
  0x43   : > { %383 = vrot.lane.b32.xlu1 %v348_v8, %s4517_s27 }
  0x46   : > { %449 = vrot.lane.b32.xlu0 %v413_v10, %s4517_s27 }
  0x47   : > { %453 = vrot.lane.b32.xlu1 %v415_v12, %s4517_s27 }
  0x4a   : > { %385 = vrot.lane.b32.xlu0 %v349_v11, %s4517_s27 }
  0x4b   : > { %389 = vrot.lane.b32.xlu1 %v351_v13, %s4517_s27 }
  0x4e   : > { %459 = vrot.lane.b32.xlu0 %v4580_v0, %s4518_s28 }
  0x4f   : > { %463 = vrot.lane.b32.xlu1 %v4586_v2, %s4518_s28 }
  0x52   : > { %387 = vrot.lane.b32.xlu0 %v350_v14, %s4517_s27 }
  0x53   : > { %391 = vrot.lane.b32.xlu1 %v352_v15, %s4517_s27 }
  0x56   : > { %457 = vrot.lane.b32.xlu0 %v4583_v1, %s4518_s28 }
  0x57   : > { %461 = vrot.lane.b32.xlu1 %v4602_v4, %s4518_s28 }
  0x5a   : > { %393 = vrot.lane.b32.xlu0 %v4593_v3, %s4518_s28  ;;  %v4843_v3 = vld [vmem:[%s5462_s3 + $0x8] sm:$0xff] }
  0x5b   : > { %397 = vrot.lane.b32.xlu1 %v4614_v6, %s4518_s28  ;;  %v4850_v6 = vld [vmem:[%s5462_s3 + $0x18] sm:$0xff] }
  0x5e   : > { %467 = vrot.lane.b32.xlu0 %v4611_v5, %s4518_s28 }
  0x5f   : > { %471 = vrot.lane.b32.xlu1 %v416_v9, %s4518_s28 }
  0x62   : > { %395 = vrot.lane.b32.xlu0 %v346_v7, %s4518_s28 }
  0x63   : > { %399 = vrot.lane.b32.xlu1 %v348_v8, %s4518_s28 }
  0x66   : > { %465 = vrot.lane.b32.xlu0 %v413_v10, %s4518_s28  ;;  %v4861_v10 = vld [vmem:[%s5462_s3 + $0x10] sm:$0xff] }
  0x67   : > { %469 = vrot.lane.b32.xlu1 %v415_v12, %s4518_s28 }
  0x6a   : > { %401 = vrot.lane.b32.xlu0 %v349_v11, %s4518_s28 }
  0x6b   : > { %405 = vrot.lane.b32.xlu1 %v351_v13, %s4518_s28 }
  0x6e   : > { %403 = vrot.lane.b32.xlu0 %v350_v14, %s4518_s28  ;;  %v4873_v14 = vld [vmem:[%s5462_s3] sm:$0xff] }
  0x6f   : > { %407 = vrot.lane.b32.xlu1 %v352_v15, %s4518_s28 }
  0x72   : > { %495 = vrot.lane.b32.xlu0 %v4721_v16, %s4516_s26 }
  0x73   : > { %491 = vrot.lane.b32.xlu1 %v4724_v17, %s4516_s26 }
  0x76   : > { %499 = vrot.lane.b32.xlu0 %v4731_v18, %s4516_s26 }
  0x77   : > { %489 = vrot.lane.b32.xlu1 %v4734_v19, %s4516_s26 }
  0x7a   : > { %497 = vrot.lane.b32.xlu0 %v477_v20, %s4516_s26 }
  0x7b   : > { %493 = vrot.lane.b32.xlu1 %v4742_v21, %s4516_s26 }
  0x7e   : > { %515 = vrot.lane.b32.xlu0 %v4724_v17, %s4517_s27 }
  0x7f   : > { %503 = vrot.lane.b32.xlu1 %v4748_v22, %s4516_s26 }
  0x82   : > { %513 = vrot.lane.b32.xlu0 %v4734_v19, %s4517_s27 }
  0x83   : > { %501 = vrot.lane.b32.xlu1 %v479_v23, %s4516_s26  ;;  %s4519_s26 = smov 8  }
  0x84   : > { %v428_v24 = vpop.permute.xlu0 %427 }
  0x85   : > { %v426_v25 = vpop.permute.xlu1 %425  ;;  %4134 = vmatprep.subr.msk.mxu0 %vm561_vm0, %v428_v24 }
  0x86   : > { %4135 = vmatpush3.xpose.msk.msra.mxu0 %vm561_vm0, %v428_v24  ;;  %523 = vrot.lane.b32.xlu0 %v4731_v18, %s4517_s27 }
  0x87   : > { %4136 = vmatprep.subr.msk.mxu0 %vm561_vm0, %v426_v25  ;;  %519 = vrot.lane.b32.xlu1 %v4721_v16, %s4517_s27 }
  0x88   : > { %v432_v26 = vpop.permute.xlu0 %431 }
  0x89   : > { %v430_v27 = vpop.permute.xlu1 %429  ;;  %4141 = vmatprep.subr.msk.mxu1 %vm561_vm0, %v432_v26 }
  0x8a   : > { %4137 = vmatpush3.xpose.msk.msra.mxu0 %vm561_vm0, %v426_v25  ;;  %4142 = vmatpush3.xpose.msk.msra.mxu1 %vm561_vm0, %v432_v26 }
  0x8b   : > { %4143 = vmatprep.subr.msk.mxu1 %vm561_vm0, %v430_v27  ;;  %517 = vrot.lane.b32.xlu1 %v4742_v21, %s4517_s27 }
  0x8c   : > { %v362_v28 = vpop.permute.xlu0 %361  ;;  %521 = vrot.lane.b32.xlu0 %v477_v20, %s4517_s27 }
  0x8d   : > { %v366_v29 = vpop.permute.xlu1 %365  ;;  %4138 = vmatprep.mubr.msk.f32.mxu0 %vm561_vm0, %v362_v28 }
  0x8e   : > { %4144 = vmatpush3.xpose.msk.msra.mxu1 %vm561_vm0, %v430_v27  ;;  %4145 = vmatprep.mubr.msk.f32.mxu1 %vm561_vm0, %v366_v29  ;;  %v4887_v27 = vld [vmem:[%s5462_s3 + $0x28] sm:$0xff] }
  0x8f   : > { %527 = vrot.lane.b32.xlu1 %v4748_v22, %s4517_s27 }
  0x90   : > { %v436_v30 = vpop.permute.xlu0 %435  ;;  %539 = vrot.lane.b32.xlu0 %v4724_v17, %s4518_s28 }
  0x91   : > { %v440_v31 = vpop.permute.xlu1 %439  ;;  %4148 = vmatprep.subr.msk.mxu0 %vm561_vm0, %v436_v30 }
  0x92   : > { %4155 = vmatprep.subr.msk.mxu1 %vm561_vm0, %v440_v31 }
  0x93   : > { %525 = vrot.lane.b32.xlu1 %v479_v23, %s4517_s27  ;;  %s4520_s27 = smov 16  }
  0x94   : > { %v364_v32 = vpop.permute.xlu0 %363  ;;  %537 = vrot.lane.b32.xlu0 %v4734_v19, %s4518_s28 }
  0x95   : > { %v368_v33 = vpop.permute.xlu1 %367  ;;  %4139 = vmatmul.mubr.msk.f32.vlgmr.msra.gmra.mxu0 %vm561_vm0, %v364_v32  ;;  %v4901_v32 = vld [vmem:[%s5462_s3 + $0x20] sm:$0xff] }
  0x96   : > { %4146 = vmatmul.mubr.msk.f32.vlgmr.msra.gmra.mxu1 %vm561_vm0, %v368_v33  ;;  %4149 = vmatpush3.xpose.msk.msra.mxu0 %vm561_vm0, %v436_v30 }
  0x97   : > { %4156 = vmatpush3.xpose.msk.msra.mxu1 %vm561_vm0, %v440_v31  ;;  %543 = vrot.lane.b32.xlu1 %v4721_v16, %s4518_s28  ;;  %v4896_v31 = vld [vmem:[%s5462_s3 + $0x38] sm:$0xff] }
  0x98   : > { %v434_v34 = vpop.permute.xlu0 %433 }
  0x99   : > { %v438_v35 = vpop.permute.xlu1 %437  ;;  %4150 = vmatprep.subr.msk.mxu0 %vm561_vm0, %v434_v34 }
  0x9a   : > { %4151 = vmatpush3.xpose.msk.msra.mxu0 %vm561_vm0, %v434_v34  ;;  %4157 = vmatprep.subr.msk.mxu1 %vm561_vm0, %v438_v35 }
  0x9b   : > { %4158 = vmatpush3.xpose.msk.msra.mxu1 %vm561_vm0, %v438_v35  ;;  %541 = vrot.lane.b32.xlu1 %v4742_v21, %s4518_s28 }
  0x9c   : > { %v370_v36 = vpop.permute.xlu0 %369 }
  0x9d   : > { %v374_v37 = vpop.permute.xlu1 %373  ;;  %4152 = vmatprep.mubr.msk.f32.mxu0 %vm561_vm0, %v370_v36 }
  0x9e   : > { %4159 = vmatprep.mubr.msk.f32.mxu1 %vm561_vm0, %v374_v37 }
  0xa0   : > { %v444_v38 = vpop.permute.xlu0 %443 }
  0xa1   : > { %v448_v39 = vpop.permute.xlu1 %447  ;;  %4162 = vmatprep.subr.msk.mxu0 %vm561_vm0, %v444_v38 }
  0xa2   : > { %4169 = vmatprep.subr.msk.mxu1 %vm561_vm0, %v448_v39 }
  0xa4   : > { %v372_v40 = vpop.permute.xlu0 %371 }
  0xa5   : > { %v376_v41 = vpop.permute.xlu1 %375  ;;  %4153 = vmatmul.mubr.msk.f32.vlgmr.msra.gmra.mxu0 %vm561_vm0, %v372_v40 }
  0xa6   : > { %4160 = vmatmul.mubr.msk.f32.vlgmr.msra.gmra.mxu1 %vm561_vm0, %v376_v41  ;;  %4163 = vmatpush3.xpose.msk.msra.mxu0 %vm561_vm0, %v444_v38 }
  0xa7   : > { %4170 = vmatpush3.xpose.msk.msra.mxu1 %vm561_vm0, %v448_v39 }
  0xa8   : > { %v442_v42 = vpop.permute.xlu0 %441 }
  0xa9   : > { %v446_v43 = vpop.permute.xlu1 %445  ;;  %4164 = vmatprep.subr.msk.mxu0 %vm561_vm0, %v442_v42 }
  0xaa   : > { %4165 = vmatpush3.xpose.msk.msra.mxu0 %vm561_vm0, %v442_v42  ;;  %4171 = vmatprep.subr.msk.mxu1 %vm561_vm0, %v446_v43 }
  0xab   : > { %4172 = vmatpush3.xpose.msk.msra.mxu1 %vm561_vm0, %v446_v43 }
  0xac   : > { %v378_v44 = vpop.permute.xlu0 %377 }
  0xad   : > { %v382_v45 = vpop.permute.xlu1 %381  ;;  %4166 = vmatprep.mubr.msk.f32.mxu0 %vm561_vm0, %v378_v44 }
  0xae   : > { %4173 = vmatprep.mubr.msk.f32.mxu1 %vm561_vm0, %v382_v45 }
  0xb0   : > { %v452_v46 = vpop.permute.xlu0 %451 }
  0xb1   : > { %v456_v47 = vpop.permute.xlu1 %455  ;;  %4176 = vmatprep.subr.msk.mxu0 %vm561_vm0, %v452_v46 }
  0xb2   : > { %4183 = vmatprep.subr.msk.mxu1 %vm561_vm0, %v456_v47 }
  0xb4   : > { %v380_v48 = vpop.permute.xlu0 %379 }
  0xb5   : > { %v384_v49 = vpop.permute.xlu1 %383  ;;  %4167 = vmatmul.mubr.msk.f32.vlgmr.msra.gmra.mxu0 %vm561_vm0, %v380_v48 }
  0xb6   : > { %4174 = vmatmul.mubr.msk.f32.vlgmr.msra.gmra.mxu1 %vm561_vm0, %v384_v49  ;;  %4177 = vmatpush3.xpose.msk.msra.mxu0 %vm561_vm0, %v452_v46 }
  0xb7   : > { %4184 = vmatpush3.xpose.msk.msra.mxu1 %vm561_vm0, %v456_v47 }
  0xb8   : > { %v450_v50 = vpop.permute.xlu0 %449 }
  0xb9   : > { %v454_v51 = vpop.permute.xlu1 %453  ;;  %4178 = vmatprep.subr.msk.mxu0 %vm561_vm0, %v450_v50 }
  0xba   : > { %4179 = vmatpush3.xpose.msk.msra.mxu0 %vm561_vm0, %v450_v50  ;;  %4185 = vmatprep.subr.msk.mxu1 %vm561_vm0, %v454_v51 }
  0xbb   : > { %4186 = vmatpush3.xpose.msk.msra.mxu1 %vm561_vm0, %v454_v51 }
  0xbc   : > { %v386_v52 = vpop.permute.xlu0 %385 }
  0xbd   : > { %v390_v53 = vpop.permute.xlu1 %389  ;;  %4180 = vmatprep.mubr.msk.f32.mxu0 %vm561_vm0, %v386_v52 }
  0xbe   : > { %4187 = vmatprep.mubr.msk.f32.mxu1 %vm561_vm0, %v390_v53 }
  0xc0   : > { %v460_v54 = vpop.permute.xlu0 %459 }
  0xc1   : > { %v464_v55 = vpop.permute.xlu1 %463  ;;  %4190 = vmatprep.subr.msk.mxu0 %vm561_vm0, %v460_v54 }
  0xc2   : > { %4197 = vmatprep.subr.msk.mxu1 %vm561_vm0, %v464_v55 }
  0xc4   : > { %v388_v56 = vpop.permute.xlu0 %387 }
  0xc5   : > { %v392_v57 = vpop.permute.xlu1 %391  ;;  %4181 = vmatmul.mubr.msk.f32.vlgmr.msra.gmra.mxu0 %vm561_vm0, %v388_v56 }
  0xc6   : > { %4188 = vmatmul.mubr.msk.f32.vlgmr.msra.gmra.mxu1 %vm561_vm0, %v392_v57  ;;  %4191 = vmatpush3.xpose.msk.msra.mxu0 %vm561_vm0, %v460_v54 }
  0xc7   : > { %4198 = vmatpush3.xpose.msk.msra.mxu1 %vm561_vm0, %v464_v55 }
  0xc8   : > { %v458_v58 = vpop.permute.xlu0 %457 }
  0xc9   : > { %v462_v59 = vpop.permute.xlu1 %461  ;;  %4192 = vmatprep.subr.msk.mxu0 %vm561_vm0, %v458_v58 }
  0xca   : > { %4193 = vmatpush3.xpose.msk.msra.mxu0 %vm561_vm0, %v458_v58  ;;  %4199 = vmatprep.subr.msk.mxu1 %vm561_vm0, %v462_v59 }
  0xcb   : > { %4200 = vmatpush3.xpose.msk.msra.mxu1 %vm561_vm0, %v462_v59 }
  0xcc   : > { %v394_v60 = vpop.permute.xlu0 %393 }
  0xcd   : > { %v398_v61 = vpop.permute.xlu1 %397  ;;  %4194 = vmatprep.mubr.msk.f32.mxu0 %vm561_vm0, %v394_v60 }
  0xce   : > { %4201 = vmatprep.mubr.msk.f32.mxu1 %vm561_vm0, %v398_v61 }
  0xd0   : > { %v468_v62 = vpop.permute.xlu0 %467 }
  0xd1   : > { %v472_v63 = vpop.permute.xlu1 %471  ;;  %4204 = vmatprep.subr.msk.mxu0 %vm561_vm0, %v468_v62 }
  0xd2   : > { %4211 = vmatprep.subr.msk.mxu1 %vm561_vm0, %v472_v63 }
  0xd4   : > { %v396_v0 = vpop.permute.xlu0 %395 }
  0xd5   : > { %v400_v1 = vpop.permute.xlu1 %399  ;;  %4195 = vmatmul.mubr.msk.f32.vlgmr.msra.gmra.mxu0 %vm561_vm0, %v396_v0 }
  0xd6   : > { %4202 = vmatmul.mubr.msk.f32.vlgmr.msra.gmra.mxu1 %vm561_vm0, %v400_v1  ;;  %4205 = vmatpush3.xpose.msk.msra.mxu0 %vm561_vm0, %v468_v62 }
  0xd7   : > { %4212 = vmatpush3.xpose.msk.msra.mxu1 %vm561_vm0, %v472_v63 }
  0xd8   : > { %v466_v2 = vpop.permute.xlu0 %465 }
  0xd9   : > { %v470_v4 = vpop.permute.xlu1 %469  ;;  %4206 = vmatprep.subr.msk.mxu0 %vm561_vm0, %v466_v2 }
  0xda   : > { %v4112_v5 = vpop.f32.mrf.mxu0  ;;  %4207 = vmatpush3.xpose.msk.msra.mxu0 %vm561_vm0, %v466_v2  ;;  %4213 = vmatprep.subr.msk.mxu1 %vm561_vm0, %v470_v4 }
  0xdb   : > { %v4854_v7 = vadd.f32 %v4112_v5, %v4843_v3  ;;  %4214 = vmatpush3.xpose.msk.msra.mxu1 %vm561_vm0, %v470_v4  ;;  %4218 = vmatprep.subr.mxu0 %v4724_v17 }
  0xdc   : > { %v4119_v8 = vpop.f32.mrf.mxu1  ;;  %v402_v9 = vpop.permute.xlu0 %401  ;;  %4225 = vmatprep.subr.mxu1 %v4721_v16 }
  0xdd   : > { %v406_v11 = vpop.permute.xlu1 %405  ;;  %v4865_v12 = vadd.f32 %v4119_v8, %v4850_v6  ;;  %4208 = vmatprep.mubr.msk.f32.mxu0 %vm561_vm0, %v402_v9  ;;  %v1934_v13 = vsel %vm1930_vm1, %v4854_v7, -inf  ;;  %v636_v20 = vpop.f32.mrf.mxu0 }
  0xde   : > { %v719_v15 = vpop.f32.mrf.mxu1  ;;  %1935 = vmax.xlane.f32.xlu0 %v1934_v13  ;;  %4215 = vmatprep.mubr.msk.f32.mxu1 %vm561_vm0, %v406_v11  ;;  %v4880_v25 = vadd.f32 %v4873_v14, %v636_v20 }
  0xdf   : > { %v4877_v23 = vadd.f32 %v4861_v10, %v719_v15  ;;  %v1940_v26 = vsel %vm1930_vm1, %v4865_v12, -inf }
  0xe0   : > { %v404_v24 = vpop.permute.xlu0 %403  ;;  %v1931_v35 = vsel %vm1930_vm1, %v4880_v25, -inf }
  0xe1   : > { %v408_v28 = vpop.permute.xlu1 %407  ;;  %4209 = vmatmul.mubr.msk.f32.vlgmr.msra.gmra.mxu0 %vm561_vm0, %v404_v24  ;;  %v1937_v29 = vsel %vm1930_vm1, %v4877_v23, -inf }
  0xe2   : > { %4216 = vmatmul.mubr.msk.f32.vlgmr.msra.gmra.mxu1 %vm561_vm0, %v408_v28  ;;  %1938 = vmax.xlane.f32.xlu1 %v1937_v29  ;;  %v4126_v30 = vpop.f32.mrf.mxu0 }
  0xe3   : > { %1941 = vmax.xlane.f32.xlu0 %v1940_v26  ;;  %v4904_v33 = vadd.f32 %v4126_v30, %v4887_v27  ;;  %4219 = vmatpush3.msra.mxu0 %v4724_v17  ;;  %v4922_v17 = vld [vmem:[%s5462_s3 + $0x30] sm:$0xff] }
  0xe4   : > { %v4133_v34 = vpop.f32.mrf.mxu1  ;;  %v802_v36 = vpop.f32.mrf.mxu0  ;;  %4226 = vmatpush3.msra.mxu1 %v4721_v16  ;;  %4220 = vmatprep.subr.mxu0 %v4734_v19 }
  0xe5   : > { %v4912_v37 = vadd.f32 %v4133_v34, %v4896_v31  ;;  %v1946_v38 = vsel %vm1930_vm1, %v4904_v33, -inf  ;;  %v4917_v39 = vadd.f32 %v4901_v32, %v802_v36  ;;  %4227 = vmatprep.subr.mxu1 %v4742_v21  ;;  %4221 = vmatpush3.msra.mxu0 %v4734_v19  ;;  %v4998_v29 = vpop.permute.xlu1 %491  ;;  %v5000_v30 = vpop.permute.xlu0 %495 }
  0xe6   : > { %1947 = vmax.xlane.f32.xlu1 %v1946_v38  ;;  %v885_v16 = vpop.f32.mrf.mxu1  ;;  %4228 = vmatpush3.msra.mxu1 %v4742_v21 }
  0xe7   : > { %1932 = vmax.xlane.f32.xlu0 %v1931_v35  ;;  %v1943_v40 = vsel %vm1930_vm1, %v4917_v39, -inf  ;;  %4232 = vmatprep.subr.mxu0 %v4731_v18  ;;  %v4931_v41 = vadd.f32 %v4922_v17, %v885_v16  ;;  %v1952_v42 = vsel %vm1930_vm1, %v4912_v37, -inf }
  0xe8   : > { %4239 = vmatprep.subr.mxu1 %v4748_v22 }
  0xe9   : > { %v1949_v19 = vsel %vm1930_vm1, %v4931_v41, -inf  ;;  %v5002_v35 = vpop.permute.xlu1 %489  ;;  %v5007_v16 = vpop.permute.xlu0 %499 }
  0xea   : > { %1944 = vmax.xlane.f32.xlu1 %v1943_v40 }
  0xeb   : > { %1953 = vmax.xlane.f32.xlu0 %v1952_v42 }
  0xef   : > { %1950 = vmax.xlane.f32.xlu0 %v1949_v19 }
 0x155   : > { %v4140_v21 = vpop.f32.mrf.mxu0 }
 0x156   : > { %v4939_v43 = vadd.f32 %v4140_v21, %v4843_v3  ;;  %v4147_v44 = vpop.f32.mrf.mxu1 }
 0x157   : > { %v4942_v45 = vadd.f32 %v4147_v44, %v4850_v6  ;;  %v968_v46 = vpop.f32.mrf.mxu0 }
 0x158   : > { %v4945_v47 = vadd.f32 %v4873_v14, %v968_v46  ;;  %v1051_v48 = vpop.f32.mrf.mxu1  ;;  %v1958_v49 = vsel %vm1930_vm1, %v4939_v43, -inf }
 0x159   : > { %v4950_v50 = vadd.f32 %v4861_v10, %v1051_v48  ;;  %v1964_v51 = vsel %vm1930_vm1, %v4942_v45, -inf  ;;  %1959 = vmax.xlane.f32.xlu1 %v1958_v49 }
 0x15a   : > { %1965 = vmax.xlane.f32.xlu0 %v1964_v51  ;;  %v1955_v53 = vsel %vm1930_vm1, %v4945_v47, -inf  ;;  %v5024_v51 = vpop.permute.xlu1 %493 }
 0x15b   : > { %v1961_v52 = vsel %vm1930_vm1, %v4950_v50, -inf }
 0x15d   : > { %1956 = vmax.xlane.f32.xlu1 %v1955_v53  ;;  %v5028_v53 = vpop.permute.xlu0 %497 }
 0x15e   : > { %1962 = vmax.xlane.f32.xlu0 %v1961_v52 }
 0x165   : > { %v4154_v54 = vpop.f32.mrf.mxu0 }
 0x166   : > { %v4959_v55 = vadd.f32 %v4154_v54, %v4887_v27  ;;  %v4161_v56 = vpop.f32.mrf.mxu1  ;;  %v5030_v54 = vpop.permute.xlu1 %503 }
 0x167   : > { %v4962_v57 = vadd.f32 %v4161_v56, %v4896_v31  ;;  %v1134_v58 = vpop.f32.mrf.mxu0  ;;  %v5032_v56 = vpop.permute.xlu0 %515 }
 0x168   : > { %v4965_v59 = vadd.f32 %v4901_v32, %v1134_v58  ;;  %v1217_v60 = vpop.f32.mrf.mxu1  ;;  %v1970_v61 = vsel %vm1930_vm1, %v4959_v55, -inf }
 0x169   : > { %v4970_v62 = vadd.f32 %v4922_v17, %v1217_v60  ;;  %v1976_v63 = vsel %vm1930_vm1, %v4962_v57, -inf  ;;  %1971 = vmax.xlane.f32.xlu1 %v1970_v61 }
 0x16a   : > { %1977 = vmax.xlane.f32.xlu0 %v1976_v63  ;;  %v1967_v1 = vsel %vm1930_vm1, %v4965_v59, -inf }
 0x16b   : > { %v1973_v0 = vsel %vm1930_vm1, %v4970_v62, -inf }
 0x16d   : > { %1968 = vmax.xlane.f32.xlu1 %v1967_v1  ;;  %v5040_v1 = vpop.permute.xlu1 %501 }
 0x16e   : > { %1974 = vmax.xlane.f32.xlu0 %v1973_v0 }
 0x175   : > { %v4168_v2 = vpop.f32.mrf.mxu0 }
 0x176   : > { %v4979_v4 = vadd.f32 %v4168_v2, %v4843_v3  ;;  %v4175_v5 = vpop.f32.mrf.mxu1 }
 0x177   : > { %v4982_v8 = vadd.f32 %v4175_v5, %v4850_v6  ;;  %v1300_v9 = vpop.f32.mrf.mxu0 }
 0x178   : > { %v4985_v11 = vadd.f32 %v4873_v14, %v1300_v9  ;;  %v1383_v13 = vpop.f32.mrf.mxu1  ;;  %v1982_v15 = vsel %vm1930_vm1, %v4979_v4, -inf }
 0x179   : > { %v4990_v20 = vadd.f32 %v4861_v10, %v1383_v13  ;;  %v1988_v24 = vsel %vm1930_vm1, %v4982_v8, -inf  ;;  %1983 = vmax.xlane.f32.xlu1 %v1982_v15  ;;  %v5047_v13 = vpop.permute.xlu0 %513 }
 0x17a   : > { %1989 = vmax.xlane.f32.xlu0 %v1988_v24  ;;  %v1979_v28 = vsel %vm1930_vm1, %v4985_v11, -inf  ;;  %v5058_v24 = vpop.permute.xlu1 %519 }
 0x17b   : > { %v1985_v26 = vsel %vm1930_vm1, %v4990_v20, -inf }
 0x17d   : > { %1980 = vmax.xlane.f32.xlu1 %v1979_v28 }
 0x17e   : > { %1986 = vmax.xlane.f32.xlu0 %v1985_v26  ;;  %v5060_v26 = vpop.permute.xlu0 %523 }
 0x185   : > { %v4182_v34 = vpop.f32.mrf.mxu0 }
 0x186   : > { %v5005_v36 = vadd.f32 %v4182_v34, %v4887_v27  ;;  %v4189_v38 = vpop.f32.mrf.mxu1 }
 0x187   : > { %v5010_v40 = vadd.f32 %v4189_v38, %v4896_v31  ;;  %v1466_v42 = vpop.f32.mrf.mxu0 }
 0x188   : > { %v5013_v19 = vadd.f32 %v4901_v32, %v1466_v42  ;;  %v1549_v21 = vpop.f32.mrf.mxu1  ;;  %v1994_v44 = vsel %vm1930_vm1, %v5005_v36, -inf }
 0x189   : > { %v5018_v46 = vadd.f32 %v4922_v17, %v1549_v21  ;;  %v2000_v48 = vsel %vm1930_vm1, %v5010_v40, -inf  ;;  %1995 = vmax.xlane.f32.xlu1 %v1994_v44  ;;  %v5068_v21 = vpop.permute.xlu1 %517 }
 0x18a   : > { %2001 = vmax.xlane.f32.xlu0 %v2000_v48  ;;  %v1991_v52 = vsel %vm1930_vm1, %v5013_v19, -inf }
 0x18b   : > { %v1997_v49 = vsel %vm1930_vm1, %v5018_v46, -inf }
 0x18d   : > { %1992 = vmax.xlane.f32.xlu1 %v1991_v52  ;;  %v5075_v52 = vpop.permute.xlu0 %521 }
 0x18e   : > { %1998 = vmax.xlane.f32.xlu0 %v1997_v49 }
 0x195   : > { %v4196_v58 = vpop.f32.mrf.mxu0 }
 0x196   : > { %v5035_v60 = vadd.f32 %v4196_v58, %v4843_v3  ;;  %v4203_v61 = vpop.f32.mrf.mxu1 }
 0x197   : > { %v5038_v63 = vadd.f32 %v4203_v61, %v4850_v6  ;;  %v1632_v0 = vpop.f32.mrf.mxu0  ;;  %v5086_v61 = vpop.permute.xlu1 %527 }
 0x198   : > { %v5043_v2 = vadd.f32 %v4873_v14, %v1632_v0  ;;  %v1715_v5 = vpop.f32.mrf.mxu1  ;;  %v2006_v9 = vsel %vm1930_vm1, %v5035_v60, -inf  ;;  %v5088_v0 = vpop.permute.xlu0 %539 }
 0x199   : > { %v5050_v15 = vadd.f32 %v4861_v10, %v1715_v5  ;;  %v2012_v3 = vsel %vm1930_vm1, %v5038_v63, -inf  ;;  %2007 = vmax.xlane.f32.xlu1 %v2006_v9  ;;  %5469 = vst [vmem:[#allocation2_spill] sm:$0xff] %v5088_v0 }
 0x19a   : > { %2013 = vmax.xlane.f32.xlu0 %v2012_v3  ;;  %v2003_v14 = vsel %vm1930_vm1, %v5043_v2, -inf }
 0x19b   : > { %v2009_v6 = vsel %vm1930_vm1, %v5050_v15, -inf  ;;  %v5090_v5 = vpop.permute.xlu1 %525 }
 0x19c   : > { %5470 = vst [vmem:[#allocation3_spill] sm:$0xff] %v5090_v5 }
 0x19d   : > { %2004 = vmax.xlane.f32.xlu1 %v2003_v14 }
 0x19e   : > { %2010 = vmax.xlane.f32.xlu0 %v2009_v6 }
 0x19f   : > { %v5094_v9 = vpop.permute.xlu1 %543 }
 0x1a0   : > { %5472 = vst [vmem:[#allocation5_spill] sm:$0xff] %v5094_v9 }
 0x1a1   : > { %v4210_v28 = vpop.f32.mrf.mxu0 }
 0x1a2   : > { %v5063_v10 = vadd.f32 %v4210_v28, %v4887_v27  ;;  %v4217_v34 = vpop.f32.mrf.mxu1 }
 0x1a3   : > { %v5066_v38 = vadd.f32 %v4217_v34, %v4896_v31  ;;  %v1798_v42 = vpop.f32.mrf.mxu0  ;;  %v5098_v6 = vpop.permute.xlu1 %541 }
 0x1a4   : > { %v5071_v44 = vadd.f32 %v4901_v32, %v1798_v42  ;;  %v1881_v48 = vpop.f32.mrf.mxu1  ;;  %v2018_v49 = vsel %vm1930_vm1, %v5063_v10, -inf  ;;  %5473 = vst [vmem:[#allocation6_spill] sm:$0xff] %v5098_v6 }
 0x1a5   : > { %v5078_v58 = vadd.f32 %v4922_v17, %v1881_v48  ;;  %v2024_v27 = vsel %vm1930_vm1, %v5066_v38, -inf  ;;  %2019 = vmax.xlane.f32.xlu1 %v2018_v49  ;;  %v5092_v17 = vpop.permute.xlu0 %537 }
 0x1a6   : > { %2025 = vmax.xlane.f32.xlu0 %v2024_v27  ;;  %v2015_v32 = vsel %vm1930_vm1, %v5071_v44, -inf  ;;  %5471 = vst [vmem:[#allocation4_spill] sm:$0xff] %v5092_v17 }
 0x1a7   : > { %v2021_v31 = vsel %vm1930_vm1, %v5078_v58, -inf  ;;  %v1939_v28 = vpop.xlane.xlu1 %1938 }
 0x1a8   : > { %v2029_v17 = vsub.f32 %v4877_v23, %v1939_v28 }
 0x1a9   : > { %2016 = vmax.xlane.f32.xlu1 %v2015_v32  ;;  %v1936_v3 = vpop.xlane.xlu0 %1935 }
 0x1aa   : > { %2022 = vmax.xlane.f32.xlu0 %v2021_v31  ;;  %v2028_v42 = vsub.f32 %v4854_v7, %v1936_v3  ;;  %v2063_v0 = vmul.f32 1.442695, %v2029_v17 }
 0x1ab   : > { %v1948_v49 = vpop.xlane.xlu1 %1947 }
 0x1ac   : > { %v2061_v27 = vmul.f32 1.442695, %v2028_v42  ;;  %v2032_v9 = vsub.f32 %v4904_v33, %v1948_v49 }
 0x1ad   : > { %v1942_v14 = vpop.xlane.xlu0 %1941 }
 0x1ae   : > { %v2030_v48 = vsub.f32 %v4865_v12, %v1942_v14  ;;  %4360 = vpow2.f32 %v2061_v27  ;;  %v2069_v12 = vmul.f32 1.442695, %v2032_v9 }
 0x1af   : > { %v1945_v5 = vpop.xlane.xlu1 %1944 }
 0x1b0   : > { %v2031_v3 = vsub.f32 %v4917_v39, %v1945_v5 }
 0x1b1   : > { %v1933_v34 = vpop.xlane.xlu0 %1932 }
 0x1b2   : > { %v2027_v31 = vsub.f32 %v4880_v25, %v1933_v34  ;;  %v2067_v23 = vmul.f32 1.442695, %v2031_v3 }
 0x1b4   : > { %v2059_v6 = vmul.f32 1.442695, %v2027_v31 }
 0x1b5   : > { %v1954_v32 = vpop.xlane.xlu0 %1953 }
 0x1b9   : > { %v1951_v7 = vpop.xlane.xlu0 %1950 }
 0x1ba   : > { %551 = vrot.lane.b32.xlu1 %v4748_v22, %s4518_s28  ;;  %v2065_v22 = vmul.f32 1.442695, %v2030_v48  ;;  %v2033_v14 = vsub.f32 %v4931_v41, %v1951_v7 }
 0x1bb   : > { %v5110_v33 = vpop.eup %4360 }
 0x1bc   : > { %4362 = vpow2.f32 %v2065_v22  ;;  %v2071_v28 = vmul.f32 1.442695, %v2033_v14 }
 0x1bd   : > { %4364 = vpow2.f32 %v2059_v6 }
 0x1be   : > { %4366 = vpow2.f32 %v2063_v0 }
 0x1bf   : > { %4368 = vpow2.f32 %v2069_v12 }
 0x1c0   : > { %547 = vrot.lane.b32.xlu0 %v4731_v18, %s4518_s28  ;;  %v2034_v18 = vsub.f32 %v4912_v37, %v1954_v32  ;;  %v2126_v37 = vsel %vm1930_vm1, %v5110_v33, 0.0 }
 0x1c2   : > { %v2073_v25 = vmul.f32 1.442695, %v2034_v18 }
 0x1c4   : > { %4370 = vpow2.f32 %v2073_v25 }
 0x1c5   : > { %4372 = vpow2.f32 %v2067_v23 }
 0x1c6   : > { %4374 = vpow2.f32 %v2071_v28 }
 0x1c9   : > { %v5112_v17 = vpop.eup %4362 }
 0x1ca   : > { %v5116_v9 = vpop.eup %4364  ;;  %v2132_v39 = vsel %vm1930_vm1, %v5112_v17, 0.0 }
 0x1cb   : > { %v5120_v41 = vpop.eup %4366  ;;  %v2123_v0 = vsel %vm1930_vm1, %v5116_v9, 0.0 }
 0x1cc   : > { %v5124_v5 = vpop.eup %4368  ;;  %v2129_v6 = vsel %vm1930_vm1, %v5120_v41, 0.0 }
 0x1cd   : > { %v2138_v32 = vsel %vm1930_vm1, %v5124_v5, 0.0 }
 0x1d1   : > { %v5128_v42 = vpop.eup %4370 }
 0x1d2   : > { %v5134_v22 = vpop.eup %4372  ;;  %v2144_v7 = vsel %vm1930_vm1, %v5128_v42, 0.0 }
 0x1d3   : > { %v5138_v3 = vpop.eup %4374  ;;  %v2135_v23 = vsel %vm1930_vm1, %v5134_v22, 0.0 }
 0x1de   : > { %2127 = vadd.xlane.f32.xlu1 %v2126_v37  ;;  %v2141_v37 = vsel %vm1930_vm1, %v5138_v3, 0.0 }
 0x1df   : > { %2133 = vadd.xlane.f32.xlu0 %v2132_v39 }
 0x1e2   : > { %v1960_v34 = vpop.xlane.xlu1 %1959  ;;  %2124 = vadd.xlane.f32.xlu1 %v2123_v0 }
 0x1e3   : > { %2130 = vadd.xlane.f32.xlu0 %v2129_v6  ;;  %v1966_v48 = vpop.xlane.xlu0 %1965  ;;  %v2036_v49 = vsub.f32 %v4939_v43, %v1960_v34 }
 0x1e4   : > { %v2038_v27 = vsub.f32 %v4942_v45, %v1966_v48 }
 0x1e5   : > { %v2077_v31 = vmul.f32 1.442695, %v2036_v49 }
 0x1e6   : > { %v2081_v18 = vmul.f32 1.442695, %v2038_v27  ;;  %v1957_v12 = vpop.xlane.xlu1 %1956  ;;  %2139 = vadd.xlane.f32.xlu1 %v2138_v32 }
 0x1e7   : > { %4376 = vpow2.f32 %v2077_v31  ;;  %2145 = vadd.xlane.f32.xlu0 %v2144_v7  ;;  %v1963_v25 = vpop.xlane.xlu0 %1962  ;;  %v2035_v43 = vsub.f32 %v4945_v47, %v1957_v12 }
 0x1e8   : > { %4378 = vpow2.f32 %v2081_v18  ;;  %v2037_v45 = vsub.f32 %v4950_v50, %v1963_v25 }
 0x1e9   : > { %v2075_v14 = vmul.f32 1.442695, %v2035_v43 }
 0x1ea   : > { %v2079_v28 = vmul.f32 1.442695, %v2037_v45  ;;  %2136 = vadd.xlane.f32.xlu1 %v2135_v23 }
 0x1eb   : > { %4380 = vpow2.f32 %v2075_v14  ;;  %2142 = vadd.xlane.f32.xlu0 %v2141_v37 }
 0x1ec   : > { %4382 = vpow2.f32 %v2079_v28 }
 0x1f2   : > { %v1972_v39 = vpop.xlane.xlu1 %1971 }
 0x1f3   : > { %v1978_v0 = vpop.xlane.xlu0 %1977  ;;  %v2040_v6 = vsub.f32 %v4959_v55, %v1972_v39 }
 0x1f4   : > { %v5147_v47 = vpop.eup %4376  ;;  %v2042_v50 = vsub.f32 %v4962_v57, %v1978_v0 }
 0x1f5   : > { %v5150_v34 = vpop.eup %4378  ;;  %v2085_v48 = vmul.f32 1.442695, %v2040_v6  ;;  %v2150_v49 = vsel %vm1930_vm1, %v5147_v47, 0.0 }
 0x1f6   : > { %v2089_v27 = vmul.f32 1.442695, %v2042_v50  ;;  %v2156_v31 = vsel %vm1930_vm1, %v5150_v34, 0.0  ;;  %v1969_v32 = vpop.xlane.xlu1 %1968  ;;  %2151 = vadd.xlane.f32.xlu1 %v2150_v49 }
 0x1f7   : > { %4384 = vpow2.f32 %v2085_v48  ;;  %2157 = vadd.xlane.f32.xlu0 %v2156_v31  ;;  %v1975_v18 = vpop.xlane.xlu0 %1974  ;;  %v2039_v55 = vsub.f32 %v4965_v59, %v1969_v32 }
 0x1f8   : > { %v5157_v7 = vpop.eup %4380  ;;  %4386 = vpow2.f32 %v2089_v27  ;;  %v2041_v57 = vsub.f32 %v4970_v62, %v1975_v18 }
 0x1f9   : > { %v5160_v12 = vpop.eup %4382  ;;  %v2083_v25 = vmul.f32 1.442695, %v2039_v55  ;;  %v2147_v43 = vsel %vm1930_vm1, %v5157_v7, 0.0 }
 0x1fa   : > { %v2087_v45 = vmul.f32 1.442695, %v2041_v57  ;;  %v2153_v14 = vsel %vm1930_vm1, %v5160_v12, 0.0  ;;  %2148 = vadd.xlane.f32.xlu1 %v2147_v43 }
 0x1fb   : > { %4388 = vpow2.f32 %v2083_v25  ;;  %2154 = vadd.xlane.f32.xlu0 %v2153_v14 }
 0x1fc   : > { %4390 = vpow2.f32 %v2087_v45 }
 0x202   : > { %v1984_v59 = vpop.xlane.xlu1 %1983 }
 0x203   : > { %v1990_v23 = vpop.xlane.xlu0 %1989  ;;  %v2044_v28 = vsub.f32 %v4979_v4, %v1984_v59 }
 0x204   : > { %v5167_v37 = vpop.eup %4384  ;;  %v2046_v62 = vsub.f32 %v4982_v8, %v1990_v23 }
 0x205   : > { %v5170_v39 = vpop.eup %4386  ;;  %v2093_v0 = vmul.f32 1.442695, %v2044_v28  ;;  %v2162_v6 = vsel %vm1930_vm1, %v5167_v37, 0.0 }
 0x206   : > { %v2097_v50 = vmul.f32 1.442695, %v2046_v62  ;;  %v2168_v48 = vsel %vm1930_vm1, %v5170_v39, 0.0  ;;  %v1981_v49 = vpop.xlane.xlu1 %1980  ;;  %2163 = vadd.xlane.f32.xlu1 %v2162_v6 }
 0x207   : > { %4392 = vpow2.f32 %v2093_v0  ;;  %2169 = vadd.xlane.f32.xlu0 %v2168_v48  ;;  %v1987_v27 = vpop.xlane.xlu0 %1986  ;;  %v2043_v4 = vsub.f32 %v4985_v11, %v1981_v49 }
 0x208   : > { %v5177_v31 = vpop.eup %4388  ;;  %4394 = vpow2.f32 %v2097_v50  ;;  %v2045_v8 = vsub.f32 %v4990_v20, %v1987_v27 }
 0x209   : > { %v5180_v32 = vpop.eup %4390  ;;  %v2091_v18 = vmul.f32 1.442695, %v2043_v4  ;;  %v2159_v55 = vsel %vm1930_vm1, %v5177_v31, 0.0 }
 0x20a   : > { %v2095_v57 = vmul.f32 1.442695, %v2045_v8  ;;  %v2165_v25 = vsel %vm1930_vm1, %v5180_v32, 0.0  ;;  %2160 = vadd.xlane.f32.xlu1 %v2159_v55 }
 0x20b   : > { %4396 = vpow2.f32 %v2091_v18  ;;  %2166 = vadd.xlane.f32.xlu0 %v2165_v25 }
 0x20c   : > { %4398 = vpow2.f32 %v2095_v57 }
 0x212   : > { %v1996_v11 = vpop.xlane.xlu1 %1995 }
 0x213   : > { %v2002_v43 = vpop.xlane.xlu0 %2001  ;;  %v2048_v45 = vsub.f32 %v5005_v36, %v1996_v11 }
 0x214   : > { %v5187_v14 = vpop.eup %4392  ;;  %v2050_v20 = vsub.f32 %v5010_v40, %v2002_v43 }
 0x215   : > { %v5190_v59 = vpop.eup %4394  ;;  %v2101_v23 = vmul.f32 1.442695, %v2048_v45  ;;  %v2174_v28 = vsel %vm1930_vm1, %v5187_v14, 0.0 }
 0x216   : > { %v2105_v62 = vmul.f32 1.442695, %v2050_v20  ;;  %v2180_v0 = vsel %vm1930_vm1, %v5190_v59, 0.0  ;;  %v1993_v6 = vpop.xlane.xlu1 %1992  ;;  %2175 = vadd.xlane.f32.xlu1 %v2174_v28 }
 0x217   : > { %4400 = vpow2.f32 %v2101_v23  ;;  %2181 = vadd.xlane.f32.xlu0 %v2180_v0  ;;  %v1999_v50 = vpop.xlane.xlu0 %1998  ;;  %v2047_v36 = vsub.f32 %v5013_v19, %v1993_v6 }
 0x218   : > { %v5197_v48 = vpop.eup %4396  ;;  %4402 = vpow2.f32 %v2105_v62  ;;  %v2049_v40 = vsub.f32 %v5018_v46, %v1999_v50 }
 0x219   : > { %v5200_v49 = vpop.eup %4398  ;;  %v2099_v27 = vmul.f32 1.442695, %v2047_v36  ;;  %v2171_v4 = vsel %vm1930_vm1, %v5197_v48, 0.0 }
 0x21a   : > { %v2103_v8 = vmul.f32 1.442695, %v2049_v40  ;;  %v2177_v18 = vsel %vm1930_vm1, %v5200_v49, 0.0  ;;  %2172 = vadd.xlane.f32.xlu1 %v2171_v4 }
 0x21b   : > { %4404 = vpow2.f32 %v2099_v27  ;;  %2178 = vadd.xlane.f32.xlu0 %v2177_v18 }
 0x21c   : > { %4406 = vpow2.f32 %v2103_v8 }
 0x222   : > { %v2008_v19 = vpop.xlane.xlu1 %2007 }
 0x223   : > { %v2014_v55 = vpop.xlane.xlu0 %2013  ;;  %v2052_v57 = vsub.f32 %v5035_v60, %v2008_v19 }
 0x224   : > { %v5207_v25 = vpop.eup %4400  ;;  %v2054_v46 = vsub.f32 %v5038_v63, %v2014_v55 }
 0x225   : > { %v5210_v11 = vpop.eup %4402  ;;  %v2109_v43 = vmul.f32 1.442695, %v2052_v57  ;;  %v2186_v45 = vsel %vm1930_vm1, %v5207_v25, 0.0 }
 0x226   : > { %v2113_v20 = vmul.f32 1.442695, %v2054_v46  ;;  %v2192_v23 = vsel %vm1930_vm1, %v5210_v11, 0.0  ;;  %v2005_v28 = vpop.xlane.xlu1 %2004  ;;  %2187 = vadd.xlane.f32.xlu1 %v2186_v45 }
 0x227   : > { %4408 = vpow2.f32 %v2109_v43  ;;  %2193 = vadd.xlane.f32.xlu0 %v2192_v23  ;;  %v2011_v62 = vpop.xlane.xlu0 %2010  ;;  %v2051_v60 = vsub.f32 %v5043_v2, %v2005_v28 }
 0x228   : > { %v5217_v0 = vpop.eup %4404  ;;  %4410 = vpow2.f32 %v2113_v20  ;;  %v2053_v63 = vsub.f32 %v5050_v15, %v2011_v62 }
 0x229   : > { %v5220_v6 = vpop.eup %4406  ;;  %v2107_v50 = vmul.f32 1.442695, %v2051_v60  ;;  %v2183_v36 = vsel %vm1930_vm1, %v5217_v0, 0.0 }
 0x22a   : > { %v2111_v40 = vmul.f32 1.442695, %v2053_v63  ;;  %v2189_v27 = vsel %vm1930_vm1, %v5220_v6, 0.0  ;;  %2184 = vadd.xlane.f32.xlu1 %v2183_v36 }
 0x22b   : > { %4412 = vpow2.f32 %v2107_v50  ;;  %2190 = vadd.xlane.f32.xlu0 %v2189_v27 }
 0x22c   : > { %4414 = vpow2.f32 %v2111_v40 }
 0x22e   : > { %v2020_v2 = vpop.xlane.xlu1 %2019 }
 0x22f   : > { %v2026_v4 = vpop.xlane.xlu0 %2025  ;;  %v2056_v8 = vsub.f32 %v5063_v10, %v2020_v2 }
 0x230   : > { %v2058_v15 = vsub.f32 %v5066_v38, %v2026_v4 }
 0x231   : > { %v2117_v18 = vmul.f32 1.442695, %v2056_v8 }
 0x232   : > { %v2121_v19 = vmul.f32 1.442695, %v2058_v15  ;;  %v2017_v55 = vpop.xlane.xlu1 %2016  ;;  %v4488_v15 = vld [vmem:[%s4716_s5 + $0x30] sm:$0xff] }
 0x233   : > { %4416 = vpow2.f32 %v2117_v18  ;;  %v2023_v57 = vpop.xlane.xlu0 %2022  ;;  %v2055_v46 = vsub.f32 %v5071_v44, %v2017_v55  ;;  %v4489_v18 = vld [vmem:[%s4716_s5 + $0x20] sm:$0xff] }
 0x234   : > { %v5229_v43 = vpop.eup %4408  ;;  %4418 = vpow2.f32 %v2121_v19  ;;  %v2057_v45 = vsub.f32 %v5078_v58, %v2023_v57 }
 0x235   : > { %v5232_v20 = vpop.eup %4410  ;;  %v2115_v23 = vmul.f32 1.442695, %v2055_v46  ;;  %v2198_v10 = vsel %vm1930_vm1, %v5229_v43, 0.0 }
 0x236   : > { %v2119_v28 = vmul.f32 1.442695, %v2057_v45  ;;  %v2204_v38 = vsel %vm1930_vm1, %v5232_v20, 0.0  ;;  %2199 = vadd.xlane.f32.xlu1 %v2198_v10  ;;  %v5266_v19 = vpop.permute.xlu1 %551 }
 0x237   : > { %4420 = vpow2.f32 %v2115_v23  ;;  %2205 = vadd.xlane.f32.xlu0 %v2204_v38  ;;  %v5268_v55 = vpop.permute.xlu0 %547 }
 0x238   : > { %v5238_v62 = vpop.eup %4412  ;;  %4422 = vpow2.f32 %v2119_v28 }
 0x239   : > { %v5240_v44 = vpop.eup %4414  ;;  %v2195_v58 = vsel %vm1930_vm1, %v5238_v62, 0.0 }
 0x23a   : > { %v2201_v60 = vsel %vm1930_vm1, %v5240_v44, 0.0  ;;  %2196 = vadd.xlane.f32.xlu1 %v2195_v58 }
 0x23b   : > { %2202 = vadd.xlane.f32.xlu0 %v2201_v60 }
 0x240   : > { %v5246_v63 = vpop.eup %4416 }
 0x241   : > { %v5248_v50 = vpop.eup %4418  ;;  %v2210_v36 = vsel %vm1930_vm1, %v5246_v63, 0.0 }
 0x242   : > { %v2216_v40 = vsel %vm1930_vm1, %v5248_v50, 0.0  ;;  %2211 = vadd.xlane.f32.xlu1 %v2210_v36 }
 0x243   : > { %2217 = vadd.xlane.f32.xlu0 %v2216_v40 }
 0x244   : > { %v5254_v27 = vpop.eup %4420 }
 0x245   : > { %v5256_v2 = vpop.eup %4422  ;;  %v2207_v4 = vsel %vm1930_vm1, %v5254_v27, 0.0 }
 0x246   : > { %v2213_v8 = vsel %vm1930_vm1, %v5256_v2, 0.0  ;;  %2208 = vadd.xlane.f32.xlu1 %v2207_v4 }
 0x247   : > { %2214 = vadd.xlane.f32.xlu0 %v2213_v8 }
 0x257   : > { %549 = vrot.lane.b32.xlu1 %v4488_v15, %s4518_s28 }
 0x25d   : > { %545 = vrot.lane.b32.xlu0 %v4489_v18, %s4518_s28  ;;  %s4521_s28 = smov 24  }
 0x267   : > { %v2128_v57 = vpop.xlane.xlu1 %2127 }
 0x268   : > { %v2134_v46 = vpop.xlane.xlu0 %2133  ;;  %4424 = vrcp.f32 %v2128_v57 }
 0x269   : > { %4426 = vrcp.f32 %v2134_v46 }
 0x26b   : > { %v2125_v45 = vpop.xlane.xlu1 %2124 }
 0x26c   : > { %v2131_v23 = vpop.xlane.xlu0 %2130  ;;  %4428 = vrcp.f32 %v2125_v45 }
 0x26d   : > { %4430 = vrcp.f32 %v2131_v23  ;;  %v4490_v23 = vld [vmem:[%s4716_s5 + $0x28] sm:$0xff] }
 0x26f   : > { %v2140_v10 = vpop.xlane.xlu1 %2139 }
 0x270   : > { %v2146_v28 = vpop.xlane.xlu0 %2145  ;;  %4432 = vrcp.f32 %v2140_v10 }
 0x271   : > { %4434 = vrcp.f32 %v2146_v28  ;;  %v4491_v28 = vld [vmem:[%s4716_s5 + $0x38] sm:$0xff]  ;;  %s5402_s5 = scalar_lea.vmem %s5463_s4, %s4565_s19 }
 0x273   : > { %v2137_v38 = vpop.xlane.xlu1 %2136 }
 0x274   : > { %v2143_v58 = vpop.xlane.xlu0 %2142  ;;  %4436 = vrcp.f32 %v2137_v38 }
 0x275   : > { %4438 = vrcp.f32 %v2143_v58  ;;  %v4425_v60 = vpop.eup %4424 }
 0x276   : > { %v4427_v36 = vpop.eup %4426  ;;  %v2252_v46 = vmul.f32 %v4425_v60, %v5110_v33 }
 0x277   : > { %v2254_v45 = vmul.f32 %v4427_v36, %v5112_v17 }
 0x279   : > { %v4429_v40 = vpop.eup %4428 }
 0x27a   : > { %v4431_v4 = vpop.eup %4430  ;;  %v2251_v8 = vmul.f32 %v4429_v40, %v5116_v9 }
 0x27b   : > { %v2253_v57 = vmul.f32 %v4431_v4, %v5120_v41 }
 0x27c   : > { %4222 = vmatprep.mubr.msk.f32.mxu0 %vm1930_vm1, %v2251_v8 }
 0x27d   : > { %4229 = vmatprep.mubr.msk.f32.mxu1 %vm1930_vm1, %v2253_v57  ;;  %4223 = vmatmul.mubr.msk.f32.vlgmr.msra.gmra.mxu0 %vm1930_vm1, %v2252_v46  ;;  %v4433_v10 = vpop.eup %4432 }
 0x27e   : > { %4230 = vmatmul.mubr.msk.f32.vlgmr.msra.gmra.mxu1 %vm1930_vm1, %v2254_v45  ;;  %4233 = vmatpush3.msra.mxu0 %v4490_v23  ;;  %v4435_v41 = vpop.eup %4434  ;;  %v2256_v40 = vmul.f32 %v4433_v10, %v5124_v5 }
 0x27f   : > { %4240 = vmatpush3.msra.mxu1 %v4491_v28  ;;  %4234 = vmatprep.subr.mxu0 %v4489_v18  ;;  %v2152_v9 = vpop.xlane.xlu1 %2151 }
 0x280   : > { %4241 = vmatprep.subr.mxu1 %v4488_v15  ;;  %v2158_v33 = vpop.xlane.xlu0 %2157  ;;  %4235 = vmatpush3.msra.mxu0 %v4489_v18  ;;  %4440 = vrcp.f32 %v2152_v9 }
 0x281   : > { %v4437_v38 = vpop.eup %4436  ;;  %4242 = vmatpush3.msra.mxu1 %v4488_v15  ;;  %4246 = vmatprep.subr.mxu0 %v4998_v29  ;;  %4442 = vrcp.f32 %v2158_v33  ;;  %v2258_v15 = vmul.f32 %v4435_v41, %v5128_v42 }
 0x282   : > { %v4439_v17 = vpop.eup %4438  ;;  %4253 = vmatprep.subr.mxu1 %v5000_v30  ;;  %v2255_v58 = vmul.f32 %v4437_v38, %v5134_v22 }
 0x283   : > { %v2149_v60 = vpop.xlane.xlu1 %2148  ;;  %v2257_v36 = vmul.f32 %v4439_v17, %v5138_v3 }
 0x284   : > { %v2155_v4 = vpop.xlane.xlu0 %2154  ;;  %4444 = vrcp.f32 %v2149_v60  ;;  %4236 = vmatprep.mubr.msk.f32.mxu0 %vm1930_vm1, %v2255_v58 }
 0x285   : > { %4446 = vrcp.f32 %v2155_v4  ;;  %4243 = vmatprep.mubr.msk.f32.mxu1 %vm1930_vm1, %v2257_v36  ;;  %4237 = vmatmul.mubr.msk.f32.vlgmr.msra.gmra.mxu0 %vm1930_vm1, %v2256_v40 }
 0x286   : > { %4244 = vmatmul.mubr.msk.f32.vlgmr.msra.gmra.mxu1 %vm1930_vm1, %v2258_v15  ;;  %4247 = vmatpush3.msra.mxu0 %v4998_v29 }
 0x287   : > { %4254 = vmatpush3.msra.mxu1 %v5000_v30  ;;  %4248 = vmatprep.subr.mxu0 %v5002_v35 }
 0x288   : > { %4255 = vmatprep.subr.mxu1 %v5024_v51  ;;  %4249 = vmatpush3.msra.mxu0 %v5002_v35 }
 0x289   : > { %4256 = vmatpush3.msra.mxu1 %v5024_v51  ;;  %4260 = vmatprep.subr.mxu0 %v5007_v16 }
 0x28a   : > { %4267 = vmatprep.subr.mxu1 %v5030_v54 }
 0x28d   : > { %v4441_v5 = vpop.eup %4440 }
 0x28e   : > { %v4443_v22 = vpop.eup %4442  ;;  %v2260_v35 = vmul.f32 %v4441_v5, %v5147_v47 }
 0x28f   : > { %v2164_v42 = vpop.xlane.xlu1 %2163  ;;  %v2262_v46 = vmul.f32 %v4443_v22, %v5150_v34 }
 0x290   : > { %v2170_v3 = vpop.xlane.xlu0 %2169  ;;  %4448 = vrcp.f32 %v2164_v42 }
 0x291   : > { %v4445_v18 = vpop.eup %4444  ;;  %4450 = vrcp.f32 %v2170_v3 }
 0x292   : > { %v4447_v29 = vpop.eup %4446  ;;  %v2259_v30 = vmul.f32 %v4445_v18, %v5157_v7 }
 0x293   : > { %v2161_v8 = vpop.xlane.xlu1 %2160  ;;  %v2261_v57 = vmul.f32 %v4447_v29, %v5160_v12 }
 0x294   : > { %v2167_v51 = vpop.xlane.xlu0 %2166  ;;  %4452 = vrcp.f32 %v2161_v8  ;;  %4250 = vmatprep.mubr.msk.f32.mxu0 %vm1930_vm1, %v2259_v30 }
 0x295   : > { %4454 = vrcp.f32 %v2167_v51  ;;  %4257 = vmatprep.mubr.msk.f32.mxu1 %vm1930_vm1, %v2261_v57  ;;  %4251 = vmatmul.mubr.msk.f32.vlgmr.msra.gmra.mxu0 %vm1930_vm1, %v2260_v35 }
 0x296   : > { %4258 = vmatmul.mubr.msk.f32.vlgmr.msra.gmra.mxu1 %vm1930_vm1, %v2262_v46  ;;  %4261 = vmatpush3.msra.mxu0 %v5007_v16 }
 0x297   : > { %4268 = vmatpush3.msra.mxu1 %v5030_v54  ;;  %4262 = vmatprep.subr.mxu0 %v5028_v53 }
 0x298   : > { %4269 = vmatprep.subr.mxu1 %v5040_v1  ;;  %4263 = vmatpush3.msra.mxu0 %v5028_v53 }
 0x299   : > { %4270 = vmatpush3.msra.mxu1 %v5040_v1  ;;  %4274 = vmatprep.subr.mxu0 %v5032_v56 }
 0x29a   : > { %4281 = vmatprep.subr.mxu1 %v5058_v24 }
 0x29d   : > { %v4449_v47 = vpop.eup %4448 }
 0x29e   : > { %v4451_v7 = vpop.eup %4450  ;;  %v2264_v53 = vmul.f32 %v4449_v47, %v5167_v37 }
 0x29f   : > { %v2176_v34 = vpop.xlane.xlu1 %2175  ;;  %v2266_v28 = vmul.f32 %v4451_v7, %v5170_v39 }
 0x2a0   : > { %v2182_v12 = vpop.xlane.xlu0 %2181  ;;  %4456 = vrcp.f32 %v2176_v34 }
 0x2a1   : > { %v4453_v45 = vpop.eup %4452  ;;  %4458 = vrcp.f32 %v2182_v12 }
 0x2a2   : > { %v4455_v16 = vpop.eup %4454  ;;  %v2263_v54 = vmul.f32 %v4453_v45, %v5177_v31 }
 0x2a3   : > { %v2173_v23 = vpop.xlane.xlu1 %2172  ;;  %v2265_v10 = vmul.f32 %v4455_v16, %v5180_v32 }
 0x2a4   : > { %v2179_v1 = vpop.xlane.xlu0 %2178  ;;  %4460 = vrcp.f32 %v2173_v23  ;;  %4264 = vmatprep.mubr.msk.f32.mxu0 %vm1930_vm1, %v2263_v54 }
 0x2a5   : > { %4462 = vrcp.f32 %v2179_v1  ;;  %4271 = vmatprep.mubr.msk.f32.mxu1 %vm1930_vm1, %v2265_v10  ;;  %4265 = vmatmul.mubr.msk.f32.vlgmr.msra.gmra.mxu0 %vm1930_vm1, %v2264_v53 }
 0x2a6   : > { %4272 = vmatmul.mubr.msk.f32.vlgmr.msra.gmra.mxu1 %vm1930_vm1, %v2266_v28  ;;  %4275 = vmatpush3.msra.mxu0 %v5032_v56 }
 0x2a7   : > { %4282 = vmatpush3.msra.mxu1 %v5058_v24  ;;  %4276 = vmatprep.subr.mxu0 %v5047_v13 }
 0x2a8   : > { %4283 = vmatprep.subr.mxu1 %v5068_v21  ;;  %4277 = vmatpush3.msra.mxu0 %v5047_v13 }
 0x2a9   : > { %4284 = vmatpush3.msra.mxu1 %v5068_v21  ;;  %4288 = vmatprep.subr.mxu0 %v5060_v26 }
 0x2aa   : > { %4295 = vmatprep.subr.mxu1 %v5086_v61 }
 0x2ad   : > { %v4457_v37 = vpop.eup %4456 }
 0x2ae   : > { %v4459_v31 = vpop.eup %4458  ;;  %v2268_v13 = vmul.f32 %v4457_v37, %v5187_v14  ;;  %v5474_v14 = vld [vmem:[#allocation3_spill] sm:$0xff] }
 0x2af   : > { %v2188_v39 = vpop.xlane.xlu1 %2187  ;;  %v2270_v38 = vmul.f32 %v4459_v31, %v5190_v59  ;;  %v5475_v59 = vld [vmem:[#allocation2_spill] sm:$0xff] }
 0x2b0   : > { %v2194_v32 = vpop.xlane.xlu0 %2193  ;;  %4464 = vrcp.f32 %v2188_v39 }
 0x2b1   : > { %v4461_v9 = vpop.eup %4460  ;;  %4466 = vrcp.f32 %v2194_v32 }
 0x2b2   : > { %v4463_v56 = vpop.eup %4462  ;;  %v2267_v24 = vmul.f32 %v4461_v9, %v5197_v48  ;;  %v5476_v48 = vld [vmem:[#allocation5_spill] sm:$0xff] }
 0x2b3   : > { %v2185_v41 = vpop.xlane.xlu1 %2184  ;;  %v2269_v33 = vmul.f32 %v4463_v56, %v5200_v49 }
 0x2b4   : > { %v2191_v21 = vpop.xlane.xlu0 %2190  ;;  %4468 = vrcp.f32 %v2185_v41  ;;  %4278 = vmatprep.mubr.msk.f32.mxu0 %vm1930_vm1, %v2267_v24 }
 0x2b5   : > { %4470 = vrcp.f32 %v2191_v21  ;;  %4285 = vmatprep.mubr.msk.f32.mxu1 %vm1930_vm1, %v2269_v33  ;;  %4279 = vmatmul.mubr.msk.f32.vlgmr.msra.gmra.mxu0 %vm1930_vm1, %v2268_v13 }
 0x2b6   : > { %4286 = vmatmul.mubr.msk.f32.vlgmr.msra.gmra.mxu1 %vm1930_vm1, %v2270_v38  ;;  %4289 = vmatpush3.msra.mxu0 %v5060_v26 }
 0x2b7   : > { %4296 = vmatpush3.msra.mxu1 %v5086_v61  ;;  %4290 = vmatprep.subr.mxu0 %v5075_v52 }
 0x2b8   : > { %4297 = vmatprep.subr.mxu1 %v5474_v14  ;;  %4291 = vmatpush3.msra.mxu0 %v5075_v52 }
 0x2b9   : > { %4298 = vmatpush3.msra.mxu1 %v5474_v14  ;;  %4302 = vmatprep.subr.mxu0 %v5475_v59 }
 0x2ba   : > { %4309 = vmatprep.subr.mxu1 %v5476_v48 }
 0x2bd   : > { %v4465_v49 = vpop.eup %4464 }
 0x2be   : > { %v4467_v58 = vpop.eup %4466  ;;  %v2272_v52 = vmul.f32 %v4465_v49, %v5207_v25  ;;  %v5478_v25 = vld [vmem:[#allocation6_spill] sm:$0xff] }
 0x2bf   : > { %v2200_v17 = vpop.xlane.xlu1 %2199  ;;  %v2274_v5 = vmul.f32 %v4467_v58, %v5210_v11 }
 0x2c0   : > { %v2206_v60 = vpop.xlane.xlu0 %2205  ;;  %4472 = vrcp.f32 %v2200_v17 }
 0x2c1   : > { %v4469_v36 = vpop.eup %4468  ;;  %4474 = vrcp.f32 %v2206_v60 }
 0x2c2   : > { %v4471_v26 = vpop.eup %4470  ;;  %v2271_v61 = vmul.f32 %v4469_v36, %v5217_v0  ;;  %v5477_v0 = vld [vmem:[#allocation4_spill] sm:$0xff] }
 0x2c3   : > { %v2197_v40 = vpop.xlane.xlu1 %2196  ;;  %v2273_v4 = vmul.f32 %v4471_v26, %v5220_v6 }
 0x2c4   : > { %v2203_v15 = vpop.xlane.xlu0 %2202  ;;  %4476 = vrcp.f32 %v2197_v40  ;;  %4292 = vmatprep.mubr.msk.f32.mxu0 %vm1930_vm1, %v2271_v61 }
 0x2c5   : > { %4478 = vrcp.f32 %v2203_v15  ;;  %4299 = vmatprep.mubr.msk.f32.mxu1 %vm1930_vm1, %v2273_v4  ;;  %4293 = vmatmul.mubr.msk.f32.vlgmr.msra.gmra.mxu0 %vm1930_vm1, %v2272_v52 }
 0x2c6   : > { %4300 = vmatmul.mubr.msk.f32.vlgmr.msra.gmra.mxu1 %vm1930_vm1, %v2274_v5  ;;  %4303 = vmatpush3.msra.mxu0 %v5475_v59 }
 0x2c7   : > { %4310 = vmatpush3.msra.mxu1 %v5476_v48  ;;  %4304 = vmatprep.subr.mxu0 %v5477_v0 }
 0x2c8   : > { %4311 = vmatprep.subr.mxu1 %v5478_v25  ;;  %4305 = vmatpush3.msra.mxu0 %v5477_v0 }
 0x2c9   : > { %4312 = vmatpush3.msra.mxu1 %v5478_v25  ;;  %4316 = vmatprep.subr.mxu0 %v5268_v55 }
 0x2ca   : > { %4323 = vmatprep.subr.mxu1 %v5266_v19 }
 0x2cb   : > { %v2212_v11 = vpop.xlane.xlu1 %2211 }
 0x2cc   : > { %v2218_v6 = vpop.xlane.xlu0 %2217  ;;  %4480 = vrcp.f32 %v2212_v11 }
 0x2cd   : > { %v4473_v42 = vpop.eup %4472  ;;  %4482 = vrcp.f32 %v2218_v6 }
 0x2ce   : > { %v4475_v3 = vpop.eup %4474  ;;  %v2276_v35 = vmul.f32 %v4473_v42, %v5229_v43 }
 0x2cf   : > { %v2209_v22 = vpop.xlane.xlu1 %2208  ;;  %v2278_v51 = vmul.f32 %v4475_v3, %v5232_v20 }
 0x2d0   : > { %v2215_v18 = vpop.xlane.xlu0 %2214  ;;  %4484 = vrcp.f32 %v2209_v22 }
 0x2d1   : > { %v4477_v29 = vpop.eup %4476  ;;  %4486 = vrcp.f32 %v2215_v18 }
 0x2d2   : > { %v4479_v30 = vpop.eup %4478  ;;  %v2275_v8 = vmul.f32 %v4477_v29, %v5238_v62 }
 0x2d3   : > { %v2277_v57 = vmul.f32 %v4479_v30, %v5240_v44  ;;  %v550_v47 = vpop.permute.xlu1 %549 }
 0x2d4   : > { %4306 = vmatprep.mubr.msk.f32.mxu0 %vm1930_vm1, %v2275_v8  ;;  %v546_v46 = vpop.permute.xlu0 %545 }
 0x2d5   : > { %4313 = vmatprep.mubr.msk.f32.mxu1 %vm1930_vm1, %v2277_v57  ;;  %4307 = vmatmul.mubr.msk.f32.vlgmr.msra.gmra.mxu0 %vm1930_vm1, %v2276_v35 }
 0x2d6   : > { %4314 = vmatmul.mubr.msk.f32.vlgmr.msra.gmra.mxu1 %vm1930_vm1, %v2278_v51  ;;  %4317 = vmatpush3.msra.mxu0 %v5268_v55 }
 0x2d7   : > { %4324 = vmatpush3.msra.mxu1 %v5266_v19  ;;  %4318 = vmatprep.subr.mxu0 %v546_v46 }
 0x2d8   : > { %4319 = vmatpush3.msra.mxu0 %v546_v46  ;;  %4325 = vmatprep.subr.mxu1 %v550_v47 }
 0x2d9   : > { %4326 = vmatpush3.msra.mxu1 %v550_v47  ;;  %v4481_v43 = vpop.eup %4480 }
 0x2da   : > { %v4483_v62 = vpop.eup %4482  ;;  %v2280_v12 = vmul.f32 %v4481_v43, %v5246_v63 }
 0x2db   : > { %v2282_v55 = vmul.f32 %v4483_v62, %v5248_v50 }
 0x2dd   : > { %v4485_v44 = vpop.eup %4484 }
 0x2de   : > { %v4487_v20 = vpop.eup %4486  ;;  %v2279_v34 = vmul.f32 %v4485_v44, %v5254_v27 }
 0x2df   : > { %v2281_v7 = vmul.f32 %v4487_v20, %v5256_v2 }
 0x2e0   : > { %4320 = vmatprep.mubr.msk.f32.mxu0 %vm1930_vm1, %v2279_v34 }
 0x2e1   : > { %4327 = vmatprep.mubr.msk.f32.mxu1 %vm1930_vm1, %v2281_v7  ;;  %4321 = vmatmul.mubr.msk.f32.vlgmr.msra.gmra.mxu0 %vm1930_vm1, %v2280_v12 }
 0x2e2   : > { %4328 = vmatmul.mubr.msk.f32.vlgmr.msra.gmra.mxu1 %vm1930_vm1, %v2282_v55 }
 0x33d   : > { %v5380_v19 = vpop.f32.mrf.mxu0 }
 0x33e   : > { %v5382_v45 = vpop.f32.mrf.mxu1 }
 0x33f   : > { %v5384_v16 = vpop.f32.mrf.mxu0 }
 0x340   : > { %v5386_v27 = vpop.f32.mrf.mxu1 }
 0x345   : > { %v5388_v2 = vpop.f32.mrf.mxu0 }
 0x346   : > { %v5390_v63 = vpop.f32.mrf.mxu1 }
 0x347   : > { %v5392_v54 = vpop.f32.mrf.mxu0 }
 0x348   : > { %v5394_v50 = vpop.f32.mrf.mxu1 }
 0x355   : > { %v4252_v23 = vpop.f32.mrf.mxu0 }
 0x356   : > { %3589 = vrot.lane.b32.xlu1 %v4252_v23, %s4519_s26  ;;  %v4259_v10 = vpop.f32.mrf.mxu1 }
 0x357   : > { %v2679_v53 = vpop.f32.mrf.mxu0 }
 0x358   : > { %3587 = vrot.lane.b32.xlu0 %v2679_v53, %s4519_s26  ;;  %v2760_v1 = vpop.f32.mrf.mxu1 }
 0x35a   : > { %3593 = vrot.lane.b32.xlu1 %v4259_v10, %s4519_s26 }
 0x35c   : > { %3591 = vrot.lane.b32.xlu0 %v2760_v1, %s4519_s26 }
 0x365   : > { %v4266_v28 = vpop.f32.mrf.mxu0 }
 0x366   : > { %3597 = vrot.lane.b32.xlu1 %v4266_v28, %s4519_s26  ;;  %v4273_v37 = vpop.f32.mrf.mxu1 }
 0x367   : > { %v2841_v39 = vpop.f32.mrf.mxu0 }
 0x368   : > { %3595 = vrot.lane.b32.xlu0 %v2841_v39, %s4519_s26  ;;  %v2922_v31 = vpop.f32.mrf.mxu1 }
 0x36a   : > { %3601 = vrot.lane.b32.xlu1 %v4273_v37, %s4519_s26 }
 0x36c   : > { %3599 = vrot.lane.b32.xlu0 %v2922_v31, %s4519_s26 }
 0x375   : > { %v4280_v32 = vpop.f32.mrf.mxu0 }
 0x376   : > { %3621 = vrot.lane.b32.xlu1 %v4280_v32, %s4520_s27  ;;  %v4287_v9 = vpop.f32.mrf.mxu1 }
 0x377   : > { %v3003_v56 = vpop.f32.mrf.mxu0 }
 0x378   : > { %3619 = vrot.lane.b32.xlu0 %v3003_v56, %s4520_s27  ;;  %v3084_v24 = vpop.f32.mrf.mxu1 }
 0x37a   : > { %3625 = vrot.lane.b32.xlu1 %v4287_v9, %s4520_s27 }
 0x37c   : > { %3623 = vrot.lane.b32.xlu0 %v3084_v24, %s4520_s27 }
 0x385   : > { %v4294_v41 = vpop.f32.mrf.mxu0 }
 0x386   : > { %3629 = vrot.lane.b32.xlu1 %v4294_v41, %s4520_s27  ;;  %v4301_v33 = vpop.f32.mrf.mxu1 }
 0x387   : > { %v3165_v13 = vpop.f32.mrf.mxu0 }
 0x388   : > { %3627 = vrot.lane.b32.xlu0 %v3165_v13, %s4520_s27  ;;  %v3246_v21 = vpop.f32.mrf.mxu1 }
 0x38a   : > { %3633 = vrot.lane.b32.xlu1 %v4301_v33, %s4520_s27 }
 0x38c   : > { %3631 = vrot.lane.b32.xlu0 %v3246_v21, %s4520_s27 }
 0x395   : > { %v4308_v38 = vpop.f32.mrf.mxu0 }
 0x396   : > { %3653 = vrot.lane.b32.xlu1 %v4308_v38, %s4521_s28  ;;  %v4315_v14 = vpop.f32.mrf.mxu1 }
 0x397   : > { %v3327_v59 = vpop.f32.mrf.mxu0 }
 0x398   : > { %3651 = vrot.lane.b32.xlu0 %v3327_v59, %s4521_s28  ;;  %v3408_v48 = vpop.f32.mrf.mxu1 }
 0x39a   : > { %3657 = vrot.lane.b32.xlu1 %v4315_v14, %s4521_s28 }
 0x39c   : > { %3655 = vrot.lane.b32.xlu0 %v3408_v48, %s4521_s28 }
 0x3a1   : > { %v4322_v49 = vpop.f32.mrf.mxu0 }
 0x3a2   : > { %3661 = vrot.lane.b32.xlu1 %v4322_v49, %s4521_s28  ;;  %v4329_v17 = vpop.f32.mrf.mxu1 }
 0x3a3   : > { %v3489_v58 = vpop.f32.mrf.mxu0 }
 0x3a4   : > { %3659 = vrot.lane.b32.xlu0 %v3489_v58, %s4521_s28  ;;  %v3570_v60 = vpop.f32.mrf.mxu1 }
 0x3a6   : > { %3665 = vrot.lane.b32.xlu1 %v4329_v17, %s4521_s28 }
 0x3a8   : > { %3663 = vrot.lane.b32.xlu0 %v3570_v60, %s4521_s28 }
 0x3c8   : > { %v3590_v36 = vpop.permute.xlu1 %3589 }
 0x3c9   : > { %v3676_v29 = vsel %vm561_vm0, %v5380_v19, %v3590_v36 }
 0x3ca   : > { %v3588_v26 = vpop.permute.xlu0 %3587 }
 0x3cb   : > { %v3675_v57 = vsel %vm561_vm0, %v5384_v16, %v3588_v26 }
 0x3cc   : > { %v3594_v61 = vpop.permute.xlu1 %3593 }
 0x3cd   : > { %v3678_v47 = vsel %vm561_vm0, %v5382_v45, %v3594_v61 }
 0x3ce   : > { %v3592_v40 = vpop.permute.xlu0 %3591 }
 0x3cf   : > { %v3677_v20 = vsel %vm561_vm0, %v5386_v27, %v3592_v40 }
 0x3d8   : > { %v3598_v4 = vpop.permute.xlu1 %3597 }
 0x3d9   : > { %v3680_v19 = vsel %vm561_vm0, %v5388_v2, %v3598_v4 }
 0x3da   : > { %v3596_v52 = vpop.permute.xlu0 %3595 }
 0x3db   : > { %v3679_v27 = vsel %vm561_vm0, %v5392_v54, %v3596_v52 }
 0x3dc   : > { %v3602_v15 = vpop.permute.xlu1 %3601 }
 0x3dd   : > { %v3682_v1 = vsel %vm561_vm0, %v5390_v63, %v3602_v15 }
 0x3de   : > { %v3600_v5 = vpop.permute.xlu0 %3599 }
 0x3df   : > { %v3681_v54 = vsel %vm561_vm0, %v5394_v50, %v3600_v5 }
 0x3e8   : > { %v3622_v0 = vpop.permute.xlu1 %3621 }
 0x3e9   : > { %v3684_v30 = vsel %vm1930_vm1, %v3676_v29, %v3622_v0 }
 0x3ea   : > { %v3620_v25 = vpop.permute.xlu0 %3619 }
 0x3eb   : > { %v3683_v51 = vsel %vm1930_vm1, %v3675_v57, %v3620_v25 }
 0x3ec   : > { %v3626_v11 = vpop.permute.xlu1 %3625 }
 0x3ed   : > { %v3686_v62 = vsel %vm1930_vm1, %v3678_v47, %v3626_v11 }
 0x3ee   : > { %v3624_v6 = vpop.permute.xlu0 %3623 }
 0x3ef   : > { %v3685_v7 = vsel %vm1930_vm1, %v3677_v20, %v3624_v6 }
 0x3f8   : > { %v3630_v42 = vpop.permute.xlu1 %3629 }
 0x3f9   : > { %v3688_v45 = vsel %vm1930_vm1, %v3680_v19, %v3630_v42 }
 0x3fa   : > { %v3628_v22 = vpop.permute.xlu0 %3627 }
 0x3fb   : > { %v3687_v10 = vsel %vm1930_vm1, %v3679_v27, %v3628_v22 }
 0x3fc   : > { %v3634_v3 = vpop.permute.xlu1 %3633 }
 0x3fd   : > { %v3690_v28 = vsel %vm1930_vm1, %v3682_v1, %v3634_v3 }
 0x3fe   : > { %v3632_v18 = vpop.permute.xlu0 %3631 }
 0x3ff   : > { %v3689_v31 = vsel %vm1930_vm1, %v3681_v54, %v3632_v18 }
 0x408   : > { %v3654_v8 = vpop.permute.xlu1 %3653 }
 0x409   : > { %v3693_v35 = vsel %vm3691_vm2, %v3684_v30, %v3654_v8 }
 0x40a   : > { %3702 = vst.msk [vmem:[%s5402_s5 + $0x8] sm:$0xff] %vm3700_vm3, %v3693_v35  ;;  %v3652_v46 = vpop.permute.xlu0 %3651 }
 0x40b   : > { %v3692_v43 = vsel %vm3691_vm2, %v3683_v51, %v3652_v46 }
 0x40c   : > { %3701 = vst.msk [vmem:[%s5402_s5] sm:$0xff] %vm3700_vm3, %v3692_v43  ;;  %v3658_v44 = vpop.permute.xlu1 %3657 }
 0x40d   : > { %v3695_v34 = vsel %vm3691_vm2, %v3686_v62, %v3658_v44 }
 0x40e   : > { %3704 = vst.msk [vmem:[%s5402_s5 + $0x18] sm:$0xff] %vm3700_vm3, %v3695_v34  ;;  %v3656_v12 = vpop.permute.xlu0 %3655 }
 0x40f   : > { %v3694_v55 = vsel %vm3691_vm2, %v3685_v7, %v3656_v12 }
 0x410   : > { %3703 = vst.msk [vmem:[%s5402_s5 + $0x10] sm:$0xff] %vm3700_vm3, %v3694_v55 }
 0x414   : > { %v3662_v16 = vpop.permute.xlu1 %3661 }
 0x415   : > { %v3697_v23 = vsel %vm3691_vm2, %v3688_v45, %v3662_v16 }
 0x416   : > { %3706 = vst.msk [vmem:[%s5402_s5 + $0x28] sm:$0xff] %vm3700_vm3, %v3697_v23  ;;  %v3660_v53 = vpop.permute.xlu0 %3659 }
 0x417   : > { %v3696_v2 = vsel %vm3691_vm2, %v3687_v10, %v3660_v53 }
 0x418   : > { %3705 = vst.msk [vmem:[%s5402_s5 + $0x20] sm:$0xff] %vm3700_vm3, %v3696_v2  ;;  %v3666_v37 = vpop.permute.xlu1 %3665 }
 0x419   : > { %v3699_v39 = vsel %vm3691_vm2, %v3690_v28, %v3666_v37 }
 0x41a   : > { %3708 = vst.msk [vmem:[%s5402_s5 + $0x38] sm:$0xff] %vm3700_vm3, %v3699_v39  ;;  %v3664_v32 = vpop.permute.xlu0 %3663 }
 0x41b   : > { %v3698_v9 = vsel %vm3691_vm2, %v3689_v31, %v3664_v32 }
 0x41c   : > { %3707 = vst.msk [vmem:[%s5402_s5 + $0x30] sm:$0xff] %vm3700_vm3, %v3698_v9 }
 0x41d PF: > { %s14_s17 = sadd.s32 1, %s4514_s17   ;;  %s5479_s15 = smov %s4510_s16 }
 0x41e   : > { %p11_p5 = scmp.ge.s32.totalorder %s14_s17, 4   ;;  %s5480_s16 = smov %s5482_s18 }
 0x420   :  { %13 = sbr.rel (!%p11_p5) target bundleno = 2 (0x2), region = 75 }

</bundles_post_ra>
